<compile_context>
chip_gen: v7x
topology: tpu7x:2x2x1
jax: 0.10.0
libtpu: 0.0.40
codegen_flags: <defaults>
</compile_context>

<pallas_src>
import jax
import jax.numpy as jnp
from jax.experimental import pallas as pl
from jax.experimental.pallas import tpu as pltpu

_REFS_PER_LAYER = 4   # wih_fb (D,8H), b_fb (1,8H), whh_f_T (H,4H), whh_b_T (H,4H)
_N_HEAD_REFS = 10     # wa, ba, bnc_scale, bnc_shift, w1, b1, bn1_scale, bn1_shift, w2, b2


# ----------------------------------------------------------------------------
# Fused kernel: full model, single invocation, everything VMEM resident.
# ----------------------------------------------------------------------------
def fused_bilstm_kernel(*refs):
    # refs = x, [4 per layer], [10 head], out, [1 VMEM scratch per layer]
    n_layers = (len(refs) - 2 - _N_HEAD_REFS) // (_REFS_PER_LAYER + 1)
    x_ref = refs[0]
    lstm_refs = refs[1:1 + _REFS_PER_LAYER * n_layers]
    head_refs = refs[1 + _REFS_PER_LAYER * n_layers:
                     1 + _REFS_PER_LAYER * n_layers + _N_HEAD_REFS]
    out_ref = refs[1 + _REFS_PER_LAYER * n_layers + _N_HEAD_REFS]
    h_scr = refs[2 + _REFS_PER_LAYER * n_layers + _N_HEAD_REFS:]

    (wa_ref, ba_ref, bnc_s_ref, bnc_t_ref,
     w1_ref, b1_ref, bn1_s_ref, bn1_t_ref,
     w2_ref, b2_ref) = head_refs

    H4 = lstm_refs[2].shape[1]        # whh_f_T: (H, 4H)
    H = H4 // 4
    B, T, _ = x_ref.shape

    # Lane mask selecting the g-gate lanes [2H, 3H) of the merged gate vector.
    lane = jax.lax.broadcasted_iota(jnp.int32, (B, H4), 1)
    g_mask = (lane >= 2 * H) & (lane < 3 * H)

    def cell_step(xw_t, h, c, whh_T):
        """One LSTM cell update: single merged-gate (B,H)x(H,4H) matmul, two
        full-width activation passes, lane-mask select, then gate split."""
        gates = xw_t + jnp.dot(h, whh_T, preferred_element_type=jnp.float32)   # (B,4H)
        sg = jax.nn.sigmoid(gates)
        th = jnp.tanh(gates)
        act = jnp.where(g_mask, th, sg)
        i_g = act[:, 0 * H:1 * H]
        f_g = act[:, 1 * H:2 * H]
        g_g = act[:, 2 * H:3 * H]
        o_g = act[:, 3 * H:4 * H]
        c_n = f_g * c + i_g * g_g
        h_n = o_g * jnp.tanh(c_n)
        return h_n, c_n

    # ---- stacked bidirectional LSTM ----
    x_cur = x_ref[...]                                                # (B, T, D_in)
    for layer in range(n_layers):
        wih_ref, b_ref, whh_f_ref, whh_b_ref = \
            lstm_refs[_REFS_PER_LAYER * layer:_REFS_PER_LAYER * (layer + 1)]
        out_scr = h_scr[layer]
        d_in = x_cur.shape[-1]

        # Hoisted, time-batched input projection for BOTH directions at once:
        # one (B*T, D) x (D, 8H) matmul.
        xw = (jnp.dot(x_cur.reshape(B * T, d_in), wih_ref[...],
                      preferred_element_type=jnp.float32)
              + b_ref[...]).reshape(B, T, 8 * H)
        xw_f = xw[:, :, :4 * H]                   # 128-lane-aligned splits
        xw_b = xw[:, :, 4 * H:]
        whh_f = whh_f_ref[...]                    # (H, 4H)
        whh_b = whh_b_ref[...]

        h_f = jnp.zeros((B, H), jnp.float32)
        c_f = jnp.zeros((B, H), jnp.float32)
        h_b = jnp.zeros((B, H), jnp.float32)
        c_b = jnp.zeros((B, H), jnp.float32)

        # Interleave the two independent recurrences (fwd t = 0..T-1,
        # bwd t = T-1..0) so their serial MXU/EUP latencies overlap.
        for i in range(T):                        # fully unrolled (T small)
            tf = i
            tb = T - 1 - i
            h_f, c_f = cell_step(xw_f[:, tf, :], h_f, c_f, whh_f)
            h_b, c_b = cell_step(xw_b[:, tb, :], h_b, c_b, whh_b)
            out_scr[:, tf, 0:H] = h_f             # write straight into VMEM scratch
            out_scr[:, tb, H:2 * H] = h_b

        x_cur = out_scr[...]                      # (B, T, 2H) for next layer / head

    # ---- ReLU + attention (softmax over time) ----
    y = jnp.maximum(x_cur, 0.0)                                       # (B, T, 2H)
    scores = jnp.sum(y * wa_ref[...], axis=-1, keepdims=True) + ba_ref[...]   # (B,T,1)
    m = jnp.max(scores, axis=1, keepdims=True)
    e = jnp.exp(scores - m)
    denom = jnp.sum(e, axis=1, keepdims=True)
    attn = e / denom                              # exact divide: (B,1,1) is tiny
    context = jnp.sum(y * attn, axis=1)                               # (B, 2H)

    # ---- BatchNorm (inference, folded to scale/shift) + classifier ----
    ctx = context * bnc_s_ref[...] + bnc_t_ref[...]
    h1 = jnp.dot(ctx, w1_ref[...], preferred_element_type=jnp.float32) + b1_ref[...]
    h1 = jnp.maximum(h1, 0.0)
    h1 = h1 * bn1_s_ref[...] + bn1_t_ref[...]
    out_ref[...] = (jnp.dot(h1, w2_ref[...], preferred_element_type=jnp.float32)
                    + b2_ref[...])
    # TODO(synk): Dropout layers are identity at inference; not implemented.


# ----------------------------------------------------------------------------
# Parameter packing (done ONCE, outside the forward call).
# ----------------------------------------------------------------------------
def pack_params(p, eps=1e-5):
    """PyTorch-layout params -> kernel layout (pre-transposed / pre-fused)."""
    packed = []
    for layer in p["lstm"]:
        H = layer["fwd"]["whh"].shape[1]
        # Fused per-layer input projection: (D, 8H) = [W_ih_fwd^T | W_ih_bwd^T]
        packed.append(jnp.concatenate(
            [jnp.transpose(layer["fwd"]["wih"]),
             jnp.transpose(layer["bwd"]["wih"])], axis=1))            # (D, 8H)
        # Summed biases (b_ih + b_hh) for both directions: (1, 8H)
        b_f = layer["fwd"]["b_ih"] + layer["fwd"]["b_hh"]
        b_b = layer["bwd"]["b_ih"] + layer["bwd"]["b_hh"]
        packed.append(jnp.concatenate([b_f, b_b]).reshape(1, 8 * H))
        # Merged recurrent weights, one per direction: (H, 4H)
        packed.append(jnp.transpose(layer["fwd"]["whh"]))
        packed.append(jnp.transpose(layer["bwd"]["whh"]))

    d2 = p["attn_w"].shape[1]
    Hc = p["w1"].shape[0]
    bnc_s = p["bn_ctx_g"] * jax.lax.rsqrt(p["bn_ctx_v"] + eps)
    bnc_t = p["bn_ctx_b"] - p["bn_ctx_m"] * bnc_s
    bn1_s = p["bn1_g"] * jax.lax.rsqrt(p["bn1_v"] + eps)
    bn1_t = p["bn1_b"] - p["bn1_m"] * bn1_s
    packed += [
        p["attn_w"].reshape(1, d2), p["attn_b"].reshape(1, 1),
        bnc_s.reshape(1, d2), bnc_t.reshape(1, d2),
        jnp.transpose(p["w1"]), p["b1"].reshape(1, Hc),
        bn1_s.reshape(1, Hc), bn1_t.reshape(1, Hc),
        jnp.transpose(p["w2"]), p["b2"].reshape(1, -1),
    ]
    return [jnp.asarray(a, jnp.float32) for a in packed]


# ----------------------------------------------------------------------------
# Forward wrapper: one reshape + one pallas_call.
# ----------------------------------------------------------------------------
def bilstm_attention_forward(x, packed):
    B, T, L, C = x.shape
    n_layers = (len(packed) - _N_HEAD_REFS) // _REFS_PER_LAYER
    H = packed[2].shape[1] // 4
    n_classes = packed[-1].shape[1]
    x2 = x.reshape(B, T, L * C)
    return pl.pallas_call(
        fused_bilstm_kernel,
        out_shape=jax.ShapeDtypeStruct((B, n_classes), jnp.float32),
        scratch_shapes=[pltpu.VMEM((B, T, 2 * H), jnp.float32)
                        for _ in range(n_layers)],
    )(x2, *packed)


forward_jit = jax.jit(bilstm_attention_forward)


# ----------------------------------------------------------------------------
# Parameter init (PyTorch layout) + pure-JAX reference for correctness check.
# ----------------------------------------------------------------------------
def init_params(key, input_size, hidden, n_classes, n_layers=2):
    keys = iter(jax.random.split(key, 256))

    def u(shape, scale):
        return jax.random.uniform(next(keys), shape, jnp.float32, -scale, scale)

    k_lstm = 1.0 / float(hidden) ** 0.5
    lstm = []
    in_dim = input_size
    for _ in range(n_layers):
        layer = {}
        for d in ("fwd", "bwd"):
            layer[d] = dict(
                wih=u((4 * hidden, in_dim), k_lstm),
                whh=u((4 * hidden, hidden), k_lstm),
                b_ih=u((4 * hidden,), k_lstm),
                b_hh=u((4 * hidden,), k_lstm),
            )
        lstm.append(layer)
        in_dim = 2 * hidden

    d2 = 2 * hidden
    k_attn = 1.0 / float(d2) ** 0.5
    k_cls1 = 1.0 / float(d2) ** 0.5
    k_cls2 = 1.0 / float(hidden) ** 0.5
    return dict(
        lstm=lstm,
        attn_w=u((1, d2), k_attn), attn_b=u((1,), k_attn),
        bn_ctx_g=jnp.ones((d2,), jnp.float32), bn_ctx_b=jnp.zeros((d2,), jnp.float32),
        bn_ctx_m=jnp.zeros((d2,), jnp.float32), bn_ctx_v=jnp.ones((d2,), jnp.float32),
        w1=u((hidden, d2), k_cls1), b1=u((hidden,), k_cls1),
        bn1_g=jnp.ones((hidden,), jnp.float32), bn1_b=jnp.zeros((hidden,), jnp.float32),
        bn1_m=jnp.zeros((hidden,), jnp.float32), bn1_v=jnp.ones((hidden,), jnp.float32),
        w2=u((n_classes, hidden), k_cls2), b2=u((n_classes,), k_cls2),
    )


def _ref_lstm_dir(x_btd, wih, whh, b):
    B, T, D = x_btd.shape
    H = whh.shape[1]

    def step(carry, x_t):
        h, c = carry
        gates = x_t @ wih.T + h @ whh.T + b
        i = jax.nn.sigmoid(gates[:, :H])
        f = jax.nn.sigmoid(gates[:, H:2 * H])
        g = jnp.tanh(gates[:, 2 * H:3 * H])
        o = jax.nn.sigmoid(gates[:, 3 * H:])
        c = f * c + i * g
        h = o * jnp.tanh(c)
        return (h, c), h

    x_tbd = jnp.transpose(x_btd, (1, 0, 2))
    (_, _), hs = jax.lax.scan(
        step, (jnp.zeros((B, H), jnp.float32), jnp.zeros((B, H), jnp.float32)), x_tbd)
    return jnp.transpose(hs, (1, 0, 2))


def reference_forward(x, p):
    B, T, L, C = x.shape
    h = x.reshape(B, T, L * C)
    for lp in p["lstm"]:
        hf = _ref_lstm_dir(h, lp["fwd"]["wih"], lp["fwd"]["whh"],
                           lp["fwd"]["b_ih"] + lp["fwd"]["b_hh"])
        hb = _ref_lstm_dir(h[:, ::-1], lp["bwd"]["wih"], lp["bwd"]["whh"],
                           lp["bwd"]["b_ih"] + lp["bwd"]["b_hh"])[:, ::-1]
        h = jnp.concatenate([hf, hb], axis=-1)
    y = jnp.maximum(h, 0.0)
    scores = y @ p["attn_w"].T + p["attn_b"]
    w = jax.nn.softmax(scores, axis=1)
    context = jnp.sum(y * w, axis=1)
    eps = 1e-5
    ctx = (context - p["bn_ctx_m"]) / jnp.sqrt(p["bn_ctx_v"] + eps) \
          * p["bn_ctx_g"] + p["bn_ctx_b"]
    h1 = jnp.maximum(ctx @ p["w1"].T + p["b1"], 0.0)
    h1 = (h1 - p["bn1_m"]) / jnp.sqrt(p["bn1_v"] + eps) * p["bn1_g"] + p["bn1_b"]
    return h1 @ p["w2"].T + p["b2"]


if __name__ == "__main__":
    # (B, T, n_landmarks, coords) -> input_size = L*C = 16
    B, T, L, C = 2, 8, 8, 2
    hidden = 32
    n_classes = 10

    key = jax.random.PRNGKey(0)
    kx, kp = jax.random.split(key)
    x = jax.random.normal(kx, (B, T, L, C), jnp.float32)
    params = init_params(kp, L * C, hidden, n_classes)
    packed = pack_params(params)            # one-time weight re-layout

    logits = jax.block_until_ready(forward_jit(x, packed))

    ref = reference_forward(x, params)
    assert logits.shape == (B, n_classes)
    err = float(jnp.max(jnp.abs(logits - ref)))
    assert err < 2e-3, f"max abs err {err}"

    print("KERNEL_OK")
</pallas_src>

<mosaic_0001>
module attributes {stable_mosaic.version = 11 : i64} {
  func.func @fused_bilstm_kernel(%arg0: memref<2x8x16xf32, #tpu.memory_space<vmem>>, %arg1: memref<16x256xf32, #tpu.memory_space<vmem>>, %arg2: memref<1x256xf32, #tpu.memory_space<vmem>>, %arg3: memref<32x128xf32, #tpu.memory_space<vmem>>, %arg4: memref<32x128xf32, #tpu.memory_space<vmem>>, %arg5: memref<64x256xf32, #tpu.memory_space<vmem>>, %arg6: memref<1x256xf32, #tpu.memory_space<vmem>>, %arg7: memref<32x128xf32, #tpu.memory_space<vmem>>, %arg8: memref<32x128xf32, #tpu.memory_space<vmem>>, %arg9: memref<1x64xf32, #tpu.memory_space<vmem>>, %arg10: memref<1x1xf32, #tpu.memory_space<vmem>>, %arg11: memref<1x64xf32, #tpu.memory_space<vmem>>, %arg12: memref<1x64xf32, #tpu.memory_space<vmem>>, %arg13: memref<64x32xf32, #tpu.memory_space<vmem>>, %arg14: memref<1x32xf32, #tpu.memory_space<vmem>>, %arg15: memref<1x32xf32, #tpu.memory_space<vmem>>, %arg16: memref<1x32xf32, #tpu.memory_space<vmem>>, %arg17: memref<32x10xf32, #tpu.memory_space<vmem>>, %arg18: memref<1x10xf32, #tpu.memory_space<vmem>>, %arg19: memref<2x10xf32, #tpu.memory_space<vmem>>, %arg20: memref<2x8x64xf32, #tpu.memory_space<vmem>>, %arg21: memref<2x8x64xf32, #tpu.memory_space<vmem>>) attributes {dimension_semantics = [], scalar_prefetch = 0 : i64, scratch_operands = 2 : i64, tpu.core_type = #tpu.core_type<tc>} {
    %0 = tpu.iota {dimensions = array<i32: 1>} : vector<2x128xi32>
    %c64_i32 = arith.constant 64 : i32
    %1 = vector.broadcast %c64_i32 : i32 to vector<2x128xi32>
    %2 = arith.cmpi sge, %0, %1 : vector<2x128xi32>
    %c96_i32 = arith.constant 96 : i32
    %3 = vector.broadcast %c96_i32 : i32 to vector<2x128xi32>
    %4 = arith.cmpi slt, %0, %3 : vector<2x128xi32>
    %5 = arith.andi %2, %4 : vector<2x128xi1>
    %c0 = arith.constant 0 : index
    %c0_0 = arith.constant 0 : index
    %c0_1 = arith.constant 0 : index
    %6 = vector.load %arg0[%c0, %c0_0, %c0_1] : memref<2x8x16xf32, #tpu.memory_space<vmem>>, vector<2x8x16xf32>
    %7 = vector.shape_cast %6 : vector<2x8x16xf32> to vector<16x16xf32>
    %c0_2 = arith.constant 0 : index
    %c0_3 = arith.constant 0 : index
    %8 = vector.load %arg1[%c0_2, %c0_3] : memref<16x256xf32, #tpu.memory_space<vmem>>, vector<16x256xf32>
    %cst = arith.constant dense<0.000000e+00> : vector<16x256xf32>
    %9 = tpu.matmul %7, %8, %cst {dimension_numbers = #tpu.dot_dimension_numbers<[1], [0], [0], [1], [0, 0, 1, 1], [], []>} : vector<16x16xf32>, vector<16x256xf32>, vector<16x256xf32> -> vector<16x256xf32>
    %c0_4 = arith.constant 0 : index
    %c0_5 = arith.constant 0 : index
    %10 = vector.load %arg2[%c0_4, %c0_5] : memref<1x256xf32, #tpu.memory_space<vmem>>, vector<1x256xf32>
    %11 = vector.broadcast %10 : vector<1x256xf32> to vector<16x256xf32>
    %12 = arith.addf %9, %11 : vector<16x256xf32>
    %13 = vector.shape_cast %12 : vector<16x256xf32> to vector<2x8x256xf32>
    %14 = vector.extract_strided_slice %13 {offsets = [0, 0, 0], sizes = [2, 8, 128], strides = [1, 1, 1]} : vector<2x8x256xf32> to vector<2x8x128xf32>
    %15 = vector.extract_strided_slice %13 {offsets = [0, 0, 128], sizes = [2, 8, 128], strides = [1, 1, 1]} : vector<2x8x256xf32> to vector<2x8x128xf32>
    %c0_6 = arith.constant 0 : index
    %c0_7 = arith.constant 0 : index
    %16 = vector.load %arg3[%c0_6, %c0_7] : memref<32x128xf32, #tpu.memory_space<vmem>>, vector<32x128xf32>
    %c0_8 = arith.constant 0 : index
    %c0_9 = arith.constant 0 : index
    %17 = vector.load %arg4[%c0_8, %c0_9] : memref<32x128xf32, #tpu.memory_space<vmem>>, vector<32x128xf32>
    %cst_10 = arith.constant 0.000000e+00 : f32
    %18 = vector.broadcast %cst_10 : f32 to vector<2x32xf32>
    %cst_11 = arith.constant 0.000000e+00 : f32
    %19 = vector.broadcast %cst_11 : f32 to vector<2x32xf32>
    %cst_12 = arith.constant 0.000000e+00 : f32
    %20 = vector.broadcast %cst_12 : f32 to vector<2x32xf32>
    %cst_13 = arith.constant 0.000000e+00 : f32
    %21 = vector.broadcast %cst_13 : f32 to vector<2x32xf32>
    %22 = vector.extract_strided_slice %14 {offsets = [0, 0, 0], sizes = [2, 1, 128], strides = [1, 1, 1]} : vector<2x8x128xf32> to vector<2x1x128xf32>
    %23 = vector.shape_cast %22 : vector<2x1x128xf32> to vector<2x128xf32>
    %cst_14 = arith.constant dense<0.000000e+00> : vector<2x128xf32>
    %24 = tpu.matmul %18, %16, %cst_14 {dimension_numbers = #tpu.dot_dimension_numbers<[1], [0], [0], [1], [0, 0, 1, 1], [], []>} : vector<2x32xf32>, vector<32x128xf32>, vector<2x128xf32> -> vector<2x128xf32>
    %25 = arith.addf %23, %24 : vector<2x128xf32>
    %26 = arith.negf %25 : vector<2x128xf32>
    %27 = math.exp %26 : vector<2x128xf32>
    %cst_15 = arith.constant 1.000000e+00 : f32
    %28 = vector.broadcast %cst_15 : f32 to vector<2x128xf32>
    %29 = arith.addf %28, %27 : vector<2x128xf32>
    %30 = arith.divf %28, %29 : vector<2x128xf32>
    %31 = math.tanh %25 : vector<2x128xf32>
    %32 = arith.select %5, %31, %30 : vector<2x128xi1>, vector<2x128xf32>
    %33 = vector.extract_strided_slice %32 {offsets = [0, 0], sizes = [2, 32], strides = [1, 1]} : vector<2x128xf32> to vector<2x32xf32>
    %34 = vector.extract_strided_slice %32 {offsets = [0, 32], sizes = [2, 32], strides = [1, 1]} : vector<2x128xf32> to vector<2x32xf32>
    %35 = vector.extract_strided_slice %32 {offsets = [0, 64], sizes = [2, 32], strides = [1, 1]} : vector<2x128xf32> to vector<2x32xf32>
    %36 = vector.extract_strided_slice %32 {offsets = [0, 96], sizes = [2, 32], strides = [1, 1]} : vector<2x128xf32> to vector<2x32xf32>
    %37 = arith.mulf %34, %19 : vector<2x32xf32>
    %38 = arith.mulf %33, %35 : vector<2x32xf32>
    %39 = arith.addf %37, %38 : vector<2x32xf32>
    %40 = math.tanh %39 : vector<2x32xf32>
    %41 = arith.mulf %36, %40 : vector<2x32xf32>
    %42 = vector.extract_strided_slice %15 {offsets = [0, 7, 0], sizes = [2, 1, 128], strides = [1, 1, 1]} : vector<2x8x128xf32> to vector<2x1x128xf32>
    %43 = vector.shape_cast %42 : vector<2x1x128xf32> to vector<2x128xf32>
    %cst_16 = arith.constant dense<0.000000e+00> : vector<2x128xf32>
    %44 = tpu.matmul %20, %17, %cst_16 {dimension_numbers = #tpu.dot_dimension_numbers<[1], [0], [0], [1], [0, 0, 1, 1], [], []>} : vector<2x32xf32>, vector<32x128xf32>, vector<2x128xf32> -> vector<2x128xf32>
    %45 = arith.addf %43, %44 : vector<2x128xf32>
    %46 = arith.negf %45 : vector<2x128xf32>
    %47 = math.exp %46 : vector<2x128xf32>
    %cst_17 = arith.constant 1.000000e+00 : f32
    %48 = vector.broadcast %cst_17 : f32 to vector<2x128xf32>
    %49 = arith.addf %48, %47 : vector<2x128xf32>
    %50 = arith.divf %48, %49 : vector<2x128xf32>
    %51 = math.tanh %45 : vector<2x128xf32>
    %52 = arith.select %5, %51, %50 : vector<2x128xi1>, vector<2x128xf32>
    %53 = vector.extract_strided_slice %52 {offsets = [0, 0], sizes = [2, 32], strides = [1, 1]} : vector<2x128xf32> to vector<2x32xf32>
    %54 = vector.extract_strided_slice %52 {offsets = [0, 32], sizes = [2, 32], strides = [1, 1]} : vector<2x128xf32> to vector<2x32xf32>
    %55 = vector.extract_strided_slice %52 {offsets = [0, 64], sizes = [2, 32], strides = [1, 1]} : vector<2x128xf32> to vector<2x32xf32>
    %56 = vector.extract_strided_slice %52 {offsets = [0, 96], sizes = [2, 32], strides = [1, 1]} : vector<2x128xf32> to vector<2x32xf32>
    %57 = arith.mulf %54, %21 : vector<2x32xf32>
    %58 = arith.mulf %53, %55 : vector<2x32xf32>
    %59 = arith.addf %57, %58 : vector<2x32xf32>
    %60 = math.tanh %59 : vector<2x32xf32>
    %61 = arith.mulf %56, %60 : vector<2x32xf32>
    %c0_18 = arith.constant 0 : index
    %c0_19 = arith.constant 0 : index
    %c0_20 = arith.constant 0 : index
    %62 = vector.load %arg20[%c0_18, %c0_19, %c0_20] : memref<2x8x64xf32, #tpu.memory_space<vmem>>, vector<2x1x32xf32>
    %63 = vector.shape_cast %62 : vector<2x1x32xf32> to vector<2x32xf32>
    %64 = vector.shape_cast %41 : vector<2x32xf32> to vector<2x1x32xf32>
    tpu.vector_store %arg20[%c0_18, %c0_19, %c0_20], %64 {strides = array<i32>} : memref<2x8x64xf32, #tpu.memory_space<vmem>>, vector<2x1x32xf32>,
    %c0_21 = arith.constant 0 : index
    %c7 = arith.constant 7 : index
    %c32 = arith.constant 32 : index
    %65 = vector.load %arg20[%c0_21, %c7, %c32] : memref<2x8x64xf32, #tpu.memory_space<vmem>>, vector<2x1x32xf32>
    %66 = vector.shape_cast %65 : vector<2x1x32xf32> to vector<2x32xf32>
    %67 = vector.shape_cast %61 : vector<2x32xf32> to vector<2x1x32xf32>
    tpu.vector_store %arg20[%c0_21, %c7, %c32], %67 {strides = array<i32>} : memref<2x8x64xf32, #tpu.memory_space<vmem>>, vector<2x1x32xf32>,
    %68 = vector.extract_strided_slice %14 {offsets = [0, 1, 0], sizes = [2, 1, 128], strides = [1, 1, 1]} : vector<2x8x128xf32> to vector<2x1x128xf32>
    %69 = vector.shape_cast %68 : vector<2x1x128xf32> to vector<2x128xf32>
    %cst_22 = arith.constant dense<0.000000e+00> : vector<2x128xf32>
    %70 = tpu.matmul %41, %16, %cst_22 {dimension_numbers = #tpu.dot_dimension_numbers<[1], [0], [0], [1], [0, 0, 1, 1], [], []>} : vector<2x32xf32>, vector<32x128xf32>, vector<2x128xf32> -> vector<2x128xf32>
    %71 = arith.addf %69, %70 : vector<2x128xf32>
    %72 = arith.negf %71 : vector<2x128xf32>
    %73 = math.exp %72 : vector<2x128xf32>
    %cst_23 = arith.constant 1.000000e+00 : f32
    %74 = vector.broadcast %cst_23 : f32 to vector<2x128xf32>
    %75 = arith.addf %74, %73 : vector<2x128xf32>
    %76 = arith.divf %74, %75 : vector<2x128xf32>
    %77 = math.tanh %71 : vector<2x128xf32>
    %78 = arith.select %5, %77, %76 : vector<2x128xi1>, vector<2x128xf32>
    %79 = vector.extract_strided_slice %78 {offsets = [0, 0], sizes = [2, 32], strides = [1, 1]} : vector<2x128xf32> to vector<2x32xf32>
    %80 = vector.extract_strided_slice %78 {offsets = [0, 32], sizes = [2, 32], strides = [1, 1]} : vector<2x128xf32> to vector<2x32xf32>
    %81 = vector.extract_strided_slice %78 {offsets = [0, 64], sizes = [2, 32], strides = [1, 1]} : vector<2x128xf32> to vector<2x32xf32>
    %82 = vector.extract_strided_slice %78 {offsets = [0, 96], sizes = [2, 32], strides = [1, 1]} : vector<2x128xf32> to vector<2x32xf32>
    %83 = arith.mulf %80, %39 : vector<2x32xf32>
    %84 = arith.mulf %79, %81 : vector<2x32xf32>
    %85 = arith.addf %83, %84 : vector<2x32xf32>
    %86 = math.tanh %85 : vector<2x32xf32>
    %87 = arith.mulf %82, %86 : vector<2x32xf32>
    %88 = vector.extract_strided_slice %15 {offsets = [0, 6, 0], sizes = [2, 1, 128], strides = [1, 1, 1]} : vector<2x8x128xf32> to vector<2x1x128xf32>
    %89 = vector.shape_cast %88 : vector<2x1x128xf32> to vector<2x128xf32>
    %cst_24 = arith.constant dense<0.000000e+00> : vector<2x128xf32>
    %90 = tpu.matmul %61, %17, %cst_24 {dimension_numbers = #tpu.dot_dimension_numbers<[1], [0], [0], [1], [0, 0, 1, 1], [], []>} : vector<2x32xf32>, vector<32x128xf32>, vector<2x128xf32> -> vector<2x128xf32>
    %91 = arith.addf %89, %90 : vector<2x128xf32>
    %92 = arith.negf %91 : vector<2x128xf32>
    %93 = math.exp %92 : vector<2x128xf32>
    %cst_25 = arith.constant 1.000000e+00 : f32
    %94 = vector.broadcast %cst_25 : f32 to vector<2x128xf32>
    %95 = arith.addf %94, %93 : vector<2x128xf32>
    %96 = arith.divf %94, %95 : vector<2x128xf32>
    %97 = math.tanh %91 : vector<2x128xf32>
    %98 = arith.select %5, %97, %96 : vector<2x128xi1>, vector<2x128xf32>
    %99 = vector.extract_strided_slice %98 {offsets = [0, 0], sizes = [2, 32], strides = [1, 1]} : vector<2x128xf32> to vector<2x32xf32>
    %100 = vector.extract_strided_slice %98 {offsets = [0, 32], sizes = [2, 32], strides = [1, 1]} : vector<2x128xf32> to vector<2x32xf32>
    %101 = vector.extract_strided_slice %98 {offsets = [0, 64], sizes = [2, 32], strides = [1, 1]} : vector<2x128xf32> to vector<2x32xf32>
    %102 = vector.extract_strided_slice %98 {offsets = [0, 96], sizes = [2, 32], strides = [1, 1]} : vector<2x128xf32> to vector<2x32xf32>
    %103 = arith.mulf %100, %59 : vector<2x32xf32>
    %104 = arith.mulf %99, %101 : vector<2x32xf32>
    %105 = arith.addf %103, %104 : vector<2x32xf32>
    %106 = math.tanh %105 : vector<2x32xf32>
    %107 = arith.mulf %102, %106 : vector<2x32xf32>
    %c0_26 = arith.constant 0 : index
    %c1 = arith.constant 1 : index
    %c0_27 = arith.constant 0 : index
    %108 = vector.load %arg20[%c0_26, %c1, %c0_27] : memref<2x8x64xf32, #tpu.memory_space<vmem>>, vector<2x1x32xf32>
    %109 = vector.shape_cast %108 : vector<2x1x32xf32> to vector<2x32xf32>
    %110 = vector.shape_cast %87 : vector<2x32xf32> to vector<2x1x32xf32>
    tpu.vector_store %arg20[%c0_26, %c1, %c0_27], %110 {strides = array<i32>} : memref<2x8x64xf32, #tpu.memory_space<vmem>>, vector<2x1x32xf32>,
    %c0_28 = arith.constant 0 : index
    %c6 = arith.constant 6 : index
    %c32_29 = arith.constant 32 : index
    %111 = vector.load %arg20[%c0_28, %c6, %c32_29] : memref<2x8x64xf32, #tpu.memory_space<vmem>>, vector<2x1x32xf32>
    %112 = vector.shape_cast %111 : vector<2x1x32xf32> to vector<2x32xf32>
    %113 = vector.shape_cast %107 : vector<2x32xf32> to vector<2x1x32xf32>
    tpu.vector_store %arg20[%c0_28, %c6, %c32_29], %113 {strides = array<i32>} : memref<2x8x64xf32, #tpu.memory_space<vmem>>, vector<2x1x32xf32>,
    %114 = vector.extract_strided_slice %14 {offsets = [0, 2, 0], sizes = [2, 1, 128], strides = [1, 1, 1]} : vector<2x8x128xf32> to vector<2x1x128xf32>
    %115 = vector.shape_cast %114 : vector<2x1x128xf32> to vector<2x128xf32>
    %cst_30 = arith.constant dense<0.000000e+00> : vector<2x128xf32>
    %116 = tpu.matmul %87, %16, %cst_30 {dimension_numbers = #tpu.dot_dimension_numbers<[1], [0], [0], [1], [0, 0, 1, 1], [], []>} : vector<2x32xf32>, vector<32x128xf32>, vector<2x128xf32> -> vector<2x128xf32>
    %117 = arith.addf %115, %116 : vector<2x128xf32>
    %118 = arith.negf %117 : vector<2x128xf32>
    %119 = math.exp %118 : vector<2x128xf32>
    %cst_31 = arith.constant 1.000000e+00 : f32
    %120 = vector.broadcast %cst_31 : f32 to vector<2x128xf32>
    %121 = arith.addf %120, %119 : vector<2x128xf32>
    %122 = arith.divf %120, %121 : vector<2x128xf32>
    %123 = math.tanh %117 : vector<2x128xf32>
    %124 = arith.select %5, %123, %122 : vector<2x128xi1>, vector<2x128xf32>
    %125 = vector.extract_strided_slice %124 {offsets = [0, 0], sizes = [2, 32], strides = [1, 1]} : vector<2x128xf32> to vector<2x32xf32>
    %126 = vector.extract_strided_slice %124 {offsets = [0, 32], sizes = [2, 32], strides = [1, 1]} : vector<2x128xf32> to vector<2x32xf32>
    %127 = vector.extract_strided_slice %124 {offsets = [0, 64], sizes = [2, 32], strides = [1, 1]} : vector<2x128xf32> to vector<2x32xf32>
    %128 = vector.extract_strided_slice %124 {offsets = [0, 96], sizes = [2, 32], strides = [1, 1]} : vector<2x128xf32> to vector<2x32xf32>
    %129 = arith.mulf %126, %85 : vector<2x32xf32>
    %130 = arith.mulf %125, %127 : vector<2x32xf32>
    %131 = arith.addf %129, %130 : vector<2x32xf32>
    %132 = math.tanh %131 : vector<2x32xf32>
    %133 = arith.mulf %128, %132 : vector<2x32xf32>
    %134 = vector.extract_strided_slice %15 {offsets = [0, 5, 0], sizes = [2, 1, 128], strides = [1, 1, 1]} : vector<2x8x128xf32> to vector<2x1x128xf32>
    %135 = vector.shape_cast %134 : vector<2x1x128xf32> to vector<2x128xf32>
    %cst_32 = arith.constant dense<0.000000e+00> : vector<2x128xf32>
    %136 = tpu.matmul %107, %17, %cst_32 {dimension_numbers = #tpu.dot_dimension_numbers<[1], [0], [0], [1], [0, 0, 1, 1], [], []>} : vector<2x32xf32>, vector<32x128xf32>, vector<2x128xf32> -> vector<2x128xf32>
    %137 = arith.addf %135, %136 : vector<2x128xf32>
    %138 = arith.negf %137 : vector<2x128xf32>
    %139 = math.exp %138 : vector<2x128xf32>
    %cst_33 = arith.constant 1.000000e+00 : f32
    %140 = vector.broadcast %cst_33 : f32 to vector<2x128xf32>
    %141 = arith.addf %140, %139 : vector<2x128xf32>
    %142 = arith.divf %140, %141 : vector<2x128xf32>
    %143 = math.tanh %137 : vector<2x128xf32>
    %144 = arith.select %5, %143, %142 : vector<2x128xi1>, vector<2x128xf32>
    %145 = vector.extract_strided_slice %144 {offsets = [0, 0], sizes = [2, 32], strides = [1, 1]} : vector<2x128xf32> to vector<2x32xf32>
    %146 = vector.extract_strided_slice %144 {offsets = [0, 32], sizes = [2, 32], strides = [1, 1]} : vector<2x128xf32> to vector<2x32xf32>
    %147 = vector.extract_strided_slice %144 {offsets = [0, 64], sizes = [2, 32], strides = [1, 1]} : vector<2x128xf32> to vector<2x32xf32>
    %148 = vector.extract_strided_slice %144 {offsets = [0, 96], sizes = [2, 32], strides = [1, 1]} : vector<2x128xf32> to vector<2x32xf32>
    %149 = arith.mulf %146, %105 : vector<2x32xf32>
    %150 = arith.mulf %145, %147 : vector<2x32xf32>
    %151 = arith.addf %149, %150 : vector<2x32xf32>
    %152 = math.tanh %151 : vector<2x32xf32>
    %153 = arith.mulf %148, %152 : vector<2x32xf32>
    %c0_34 = arith.constant 0 : index
    %c2 = arith.constant 2 : index
    %c0_35 = arith.constant 0 : index
    %154 = vector.load %arg20[%c0_34, %c2, %c0_35] : memref<2x8x64xf32, #tpu.memory_space<vmem>>, vector<2x1x32xf32>
    %155 = vector.shape_cast %154 : vector<2x1x32xf32> to vector<2x32xf32>
    %156 = vector.shape_cast %133 : vector<2x32xf32> to vector<2x1x32xf32>
    tpu.vector_store %arg20[%c0_34, %c2, %c0_35], %156 {strides = array<i32>} : memref<2x8x64xf32, #tpu.memory_space<vmem>>, vector<2x1x32xf32>,
    %c0_36 = arith.constant 0 : index
    %c5 = arith.constant 5 : index
    %c32_37 = arith.constant 32 : index
    %157 = vector.load %arg20[%c0_36, %c5, %c32_37] : memref<2x8x64xf32, #tpu.memory_space<vmem>>, vector<2x1x32xf32>
    %158 = vector.shape_cast %157 : vector<2x1x32xf32> to vector<2x32xf32>
    %159 = vector.shape_cast %153 : vector<2x32xf32> to vector<2x1x32xf32>
    tpu.vector_store %arg20[%c0_36, %c5, %c32_37], %159 {strides = array<i32>} : memref<2x8x64xf32, #tpu.memory_space<vmem>>, vector<2x1x32xf32>,
    %160 = vector.extract_strided_slice %14 {offsets = [0, 3, 0], sizes = [2, 1, 128], strides = [1, 1, 1]} : vector<2x8x128xf32> to vector<2x1x128xf32>
    %161 = vector.shape_cast %160 : vector<2x1x128xf32> to vector<2x128xf32>
    %cst_38 = arith.constant dense<0.000000e+00> : vector<2x128xf32>
    %162 = tpu.matmul %133, %16, %cst_38 {dimension_numbers = #tpu.dot_dimension_numbers<[1], [0], [0], [1], [0, 0, 1, 1], [], []>} : vector<2x32xf32>, vector<32x128xf32>, vector<2x128xf32> -> vector<2x128xf32>
    %163 = arith.addf %161, %162 : vector<2x128xf32>
    %164 = arith.negf %163 : vector<2x128xf32>
    %165 = math.exp %164 : vector<2x128xf32>
    %cst_39 = arith.constant 1.000000e+00 : f32
    %166 = vector.broadcast %cst_39 : f32 to vector<2x128xf32>
    %167 = arith.addf %166, %165 : vector<2x128xf32>
    %168 = arith.divf %166, %167 : vector<2x128xf32>
    %169 = math.tanh %163 : vector<2x128xf32>
    %170 = arith.select %5, %169, %168 : vector<2x128xi1>, vector<2x128xf32>
    %171 = vector.extract_strided_slice %170 {offsets = [0, 0], sizes = [2, 32], strides = [1, 1]} : vector<2x128xf32> to vector<2x32xf32>
    %172 = vector.extract_strided_slice %170 {offsets = [0, 32], sizes = [2, 32], strides = [1, 1]} : vector<2x128xf32> to vector<2x32xf32>
    %173 = vector.extract_strided_slice %170 {offsets = [0, 64], sizes = [2, 32], strides = [1, 1]} : vector<2x128xf32> to vector<2x32xf32>
    %174 = vector.extract_strided_slice %170 {offsets = [0, 96], sizes = [2, 32], strides = [1, 1]} : vector<2x128xf32> to vector<2x32xf32>
    %175 = arith.mulf %172, %131 : vector<2x32xf32>
    %176 = arith.mulf %171, %173 : vector<2x32xf32>
    %177 = arith.addf %175, %176 : vector<2x32xf32>
    %178 = math.tanh %177 : vector<2x32xf32>
    %179 = arith.mulf %174, %178 : vector<2x32xf32>
    %180 = vector.extract_strided_slice %15 {offsets = [0, 4, 0], sizes = [2, 1, 128], strides = [1, 1, 1]} : vector<2x8x128xf32> to vector<2x1x128xf32>
    %181 = vector.shape_cast %180 : vector<2x1x128xf32> to vector<2x128xf32>
    %cst_40 = arith.constant dense<0.000000e+00> : vector<2x128xf32>
    %182 = tpu.matmul %153, %17, %cst_40 {dimension_numbers = #tpu.dot_dimension_numbers<[1], [0], [0], [1], [0, 0, 1, 1], [], []>} : vector<2x32xf32>, vector<32x128xf32>, vector<2x128xf32> -> vector<2x128xf32>
    %183 = arith.addf %181, %182 : vector<2x128xf32>
    %184 = arith.negf %183 : vector<2x128xf32>
    %185 = math.exp %184 : vector<2x128xf32>
    %cst_41 = arith.constant 1.000000e+00 : f32
    %186 = vector.broadcast %cst_41 : f32 to vector<2x128xf32>
    %187 = arith.addf %186, %185 : vector<2x128xf32>
    %188 = arith.divf %186, %187 : vector<2x128xf32>
    %189 = math.tanh %183 : vector<2x128xf32>
    %190 = arith.select %5, %189, %188 : vector<2x128xi1>, vector<2x128xf32>
    %191 = vector.extract_strided_slice %190 {offsets = [0, 0], sizes = [2, 32], strides = [1, 1]} : vector<2x128xf32> to vector<2x32xf32>
    %192 = vector.extract_strided_slice %190 {offsets = [0, 32], sizes = [2, 32], strides = [1, 1]} : vector<2x128xf32> to vector<2x32xf32>
    %193 = vector.extract_strided_slice %190 {offsets = [0, 64], sizes = [2, 32], strides = [1, 1]} : vector<2x128xf32> to vector<2x32xf32>
    %194 = vector.extract_strided_slice %190 {offsets = [0, 96], sizes = [2, 32], strides = [1, 1]} : vector<2x128xf32> to vector<2x32xf32>
    %195 = arith.mulf %192, %151 : vector<2x32xf32>
    %196 = arith.mulf %191, %193 : vector<2x32xf32>
    %197 = arith.addf %195, %196 : vector<2x32xf32>
    %198 = math.tanh %197 : vector<2x32xf32>
    %199 = arith.mulf %194, %198 : vector<2x32xf32>
    %c0_42 = arith.constant 0 : index
    %c3 = arith.constant 3 : index
    %c0_43 = arith.constant 0 : index
    %200 = vector.load %arg20[%c0_42, %c3, %c0_43] : memref<2x8x64xf32, #tpu.memory_space<vmem>>, vector<2x1x32xf32>
    %201 = vector.shape_cast %200 : vector<2x1x32xf32> to vector<2x32xf32>
    %202 = vector.shape_cast %179 : vector<2x32xf32> to vector<2x1x32xf32>
    tpu.vector_store %arg20[%c0_42, %c3, %c0_43], %202 {strides = array<i32>} : memref<2x8x64xf32, #tpu.memory_space<vmem>>, vector<2x1x32xf32>,
    %c0_44 = arith.constant 0 : index
    %c4 = arith.constant 4 : index
    %c32_45 = arith.constant 32 : index
    %203 = vector.load %arg20[%c0_44, %c4, %c32_45] : memref<2x8x64xf32, #tpu.memory_space<vmem>>, vector<2x1x32xf32>
    %204 = vector.shape_cast %203 : vector<2x1x32xf32> to vector<2x32xf32>
    %205 = vector.shape_cast %199 : vector<2x32xf32> to vector<2x1x32xf32>
    tpu.vector_store %arg20[%c0_44, %c4, %c32_45], %205 {strides = array<i32>} : memref<2x8x64xf32, #tpu.memory_space<vmem>>, vector<2x1x32xf32>,
    %206 = vector.extract_strided_slice %14 {offsets = [0, 4, 0], sizes = [2, 1, 128], strides = [1, 1, 1]} : vector<2x8x128xf32> to vector<2x1x128xf32>
    %207 = vector.shape_cast %206 : vector<2x1x128xf32> to vector<2x128xf32>
    %cst_46 = arith.constant dense<0.000000e+00> : vector<2x128xf32>
    %208 = tpu.matmul %179, %16, %cst_46 {dimension_numbers = #tpu.dot_dimension_numbers<[1], [0], [0], [1], [0, 0, 1, 1], [], []>} : vector<2x32xf32>, vector<32x128xf32>, vector<2x128xf32> -> vector<2x128xf32>
    %209 = arith.addf %207, %208 : vector<2x128xf32>
    %210 = arith.negf %209 : vector<2x128xf32>
    %211 = math.exp %210 : vector<2x128xf32>
    %cst_47 = arith.constant 1.000000e+00 : f32
    %212 = vector.broadcast %cst_47 : f32 to vector<2x128xf32>
    %213 = arith.addf %212, %211 : vector<2x128xf32>
    %214 = arith.divf %212, %213 : vector<2x128xf32>
    %215 = math.tanh %209 : vector<2x128xf32>
    %216 = arith.select %5, %215, %214 : vector<2x128xi1>, vector<2x128xf32>
    %217 = vector.extract_strided_slice %216 {offsets = [0, 0], sizes = [2, 32], strides = [1, 1]} : vector<2x128xf32> to vector<2x32xf32>
    %218 = vector.extract_strided_slice %216 {offsets = [0, 32], sizes = [2, 32], strides = [1, 1]} : vector<2x128xf32> to vector<2x32xf32>
    %219 = vector.extract_strided_slice %216 {offsets = [0, 64], sizes = [2, 32], strides = [1, 1]} : vector<2x128xf32> to vector<2x32xf32>
    %220 = vector.extract_strided_slice %216 {offsets = [0, 96], sizes = [2, 32], strides = [1, 1]} : vector<2x128xf32> to vector<2x32xf32>
    %221 = arith.mulf %218, %177 : vector<2x32xf32>
    %222 = arith.mulf %217, %219 : vector<2x32xf32>
    %223 = arith.addf %221, %222 : vector<2x32xf32>
    %224 = math.tanh %223 : vector<2x32xf32>
    %225 = arith.mulf %220, %224 : vector<2x32xf32>
    %226 = vector.extract_strided_slice %15 {offsets = [0, 3, 0], sizes = [2, 1, 128], strides = [1, 1, 1]} : vector<2x8x128xf32> to vector<2x1x128xf32>
    %227 = vector.shape_cast %226 : vector<2x1x128xf32> to vector<2x128xf32>
    %cst_48 = arith.constant dense<0.000000e+00> : vector<2x128xf32>
    %228 = tpu.matmul %199, %17, %cst_48 {dimension_numbers = #tpu.dot_dimension_numbers<[1], [0], [0], [1], [0, 0, 1, 1], [], []>} : vector<2x32xf32>, vector<32x128xf32>, vector<2x128xf32> -> vector<2x128xf32>
    %229 = arith.addf %227, %228 : vector<2x128xf32>
    %230 = arith.negf %229 : vector<2x128xf32>
    %231 = math.exp %230 : vector<2x128xf32>
    %cst_49 = arith.constant 1.000000e+00 : f32
    %232 = vector.broadcast %cst_49 : f32 to vector<2x128xf32>
    %233 = arith.addf %232, %231 : vector<2x128xf32>
    %234 = arith.divf %232, %233 : vector<2x128xf32>
    %235 = math.tanh %229 : vector<2x128xf32>
    %236 = arith.select %5, %235, %234 : vector<2x128xi1>, vector<2x128xf32>
    %237 = vector.extract_strided_slice %236 {offsets = [0, 0], sizes = [2, 32], strides = [1, 1]} : vector<2x128xf32> to vector<2x32xf32>
    %238 = vector.extract_strided_slice %236 {offsets = [0, 32], sizes = [2, 32], strides = [1, 1]} : vector<2x128xf32> to vector<2x32xf32>
    %239 = vector.extract_strided_slice %236 {offsets = [0, 64], sizes = [2, 32], strides = [1, 1]} : vector<2x128xf32> to vector<2x32xf32>
    %240 = vector.extract_strided_slice %236 {offsets = [0, 96], sizes = [2, 32], strides = [1, 1]} : vector<2x128xf32> to vector<2x32xf32>
    %241 = arith.mulf %238, %197 : vector<2x32xf32>
    %242 = arith.mulf %237, %239 : vector<2x32xf32>
    %243 = arith.addf %241, %242 : vector<2x32xf32>
    %244 = math.tanh %243 : vector<2x32xf32>
    %245 = arith.mulf %240, %244 : vector<2x32xf32>
    %c0_50 = arith.constant 0 : index
    %c4_51 = arith.constant 4 : index
    %c0_52 = arith.constant 0 : index
    %246 = vector.load %arg20[%c0_50, %c4_51, %c0_52] : memref<2x8x64xf32, #tpu.memory_space<vmem>>, vector<2x1x32xf32>
    %247 = vector.shape_cast %246 : vector<2x1x32xf32> to vector<2x32xf32>
    %248 = vector.shape_cast %225 : vector<2x32xf32> to vector<2x1x32xf32>
    tpu.vector_store %arg20[%c0_50, %c4_51, %c0_52], %248 {strides = array<i32>} : memref<2x8x64xf32, #tpu.memory_space<vmem>>, vector<2x1x32xf32>,
    %c0_53 = arith.constant 0 : index
    %c3_54 = arith.constant 3 : index
    %c32_55 = arith.constant 32 : index
    %249 = vector.load %arg20[%c0_53, %c3_54, %c32_55] : memref<2x8x64xf32, #tpu.memory_space<vmem>>, vector<2x1x32xf32>
    %250 = vector.shape_cast %249 : vector<2x1x32xf32> to vector<2x32xf32>
    %251 = vector.shape_cast %245 : vector<2x32xf32> to vector<2x1x32xf32>
    tpu.vector_store %arg20[%c0_53, %c3_54, %c32_55], %251 {strides = array<i32>} : memref<2x8x64xf32, #tpu.memory_space<vmem>>, vector<2x1x32xf32>,
    %252 = vector.extract_strided_slice %14 {offsets = [0, 5, 0], sizes = [2, 1, 128], strides = [1, 1, 1]} : vector<2x8x128xf32> to vector<2x1x128xf32>
    %253 = vector.shape_cast %252 : vector<2x1x128xf32> to vector<2x128xf32>
    %cst_56 = arith.constant dense<0.000000e+00> : vector<2x128xf32>
    %254 = tpu.matmul %225, %16, %cst_56 {dimension_numbers = #tpu.dot_dimension_numbers<[1], [0], [0], [1], [0, 0, 1, 1], [], []>} : vector<2x32xf32>, vector<32x128xf32>, vector<2x128xf32> -> vector<2x128xf32>
    %255 = arith.addf %253, %254 : vector<2x128xf32>
    %256 = arith.negf %255 : vector<2x128xf32>
    %257 = math.exp %256 : vector<2x128xf32>
    %cst_57 = arith.constant 1.000000e+00 : f32
    %258 = vector.broadcast %cst_57 : f32 to vector<2x128xf32>
    %259 = arith.addf %258, %257 : vector<2x128xf32>
    %260 = arith.divf %258, %259 : vector<2x128xf32>
    %261 = math.tanh %255 : vector<2x128xf32>
    %262 = arith.select %5, %261, %260 : vector<2x128xi1>, vector<2x128xf32>
    %263 = vector.extract_strided_slice %262 {offsets = [0, 0], sizes = [2, 32], strides = [1, 1]} : vector<2x128xf32> to vector<2x32xf32>
    %264 = vector.extract_strided_slice %262 {offsets = [0, 32], sizes = [2, 32], strides = [1, 1]} : vector<2x128xf32> to vector<2x32xf32>
    %265 = vector.extract_strided_slice %262 {offsets = [0, 64], sizes = [2, 32], strides = [1, 1]} : vector<2x128xf32> to vector<2x32xf32>
    %266 = vector.extract_strided_slice %262 {offsets = [0, 96], sizes = [2, 32], strides = [1, 1]} : vector<2x128xf32> to vector<2x32xf32>
    %267 = arith.mulf %264, %223 : vector<2x32xf32>
    %268 = arith.mulf %263, %265 : vector<2x32xf32>
    %269 = arith.addf %267, %268 : vector<2x32xf32>
    %270 = math.tanh %269 : vector<2x32xf32>
    %271 = arith.mulf %266, %270 : vector<2x32xf32>
    %272 = vector.extract_strided_slice %15 {offsets = [0, 2, 0], sizes = [2, 1, 128], strides = [1, 1, 1]} : vector<2x8x128xf32> to vector<2x1x128xf32>
    %273 = vector.shape_cast %272 : vector<2x1x128xf32> to vector<2x128xf32>
    %cst_58 = arith.constant dense<0.000000e+00> : vector<2x128xf32>
    %274 = tpu.matmul %245, %17, %cst_58 {dimension_numbers = #tpu.dot_dimension_numbers<[1], [0], [0], [1], [0, 0, 1, 1], [], []>} : vector<2x32xf32>, vector<32x128xf32>, vector<2x128xf32> -> vector<2x128xf32>
    %275 = arith.addf %273, %274 : vector<2x128xf32>
    %276 = arith.negf %275 : vector<2x128xf32>
    %277 = math.exp %276 : vector<2x128xf32>
    %cst_59 = arith.constant 1.000000e+00 : f32
    %278 = vector.broadcast %cst_59 : f32 to vector<2x128xf32>
    %279 = arith.addf %278, %277 : vector<2x128xf32>
    %280 = arith.divf %278, %279 : vector<2x128xf32>
    %281 = math.tanh %275 : vector<2x128xf32>
    %282 = arith.select %5, %281, %280 : vector<2x128xi1>, vector<2x128xf32>
    %283 = vector.extract_strided_slice %282 {offsets = [0, 0], sizes = [2, 32], strides = [1, 1]} : vector<2x128xf32> to vector<2x32xf32>
    %284 = vector.extract_strided_slice %282 {offsets = [0, 32], sizes = [2, 32], strides = [1, 1]} : vector<2x128xf32> to vector<2x32xf32>
    %285 = vector.extract_strided_slice %282 {offsets = [0, 64], sizes = [2, 32], strides = [1, 1]} : vector<2x128xf32> to vector<2x32xf32>
    %286 = vector.extract_strided_slice %282 {offsets = [0, 96], sizes = [2, 32], strides = [1, 1]} : vector<2x128xf32> to vector<2x32xf32>
    %287 = arith.mulf %284, %243 : vector<2x32xf32>
    %288 = arith.mulf %283, %285 : vector<2x32xf32>
    %289 = arith.addf %287, %288 : vector<2x32xf32>
    %290 = math.tanh %289 : vector<2x32xf32>
    %291 = arith.mulf %286, %290 : vector<2x32xf32>
    %c0_60 = arith.constant 0 : index
    %c5_61 = arith.constant 5 : index
    %c0_62 = arith.constant 0 : index
    %292 = vector.load %arg20[%c0_60, %c5_61, %c0_62] : memref<2x8x64xf32, #tpu.memory_space<vmem>>, vector<2x1x32xf32>
    %293 = vector.shape_cast %292 : vector<2x1x32xf32> to vector<2x32xf32>
    %294 = vector.shape_cast %271 : vector<2x32xf32> to vector<2x1x32xf32>
    tpu.vector_store %arg20[%c0_60, %c5_61, %c0_62], %294 {strides = array<i32>} : memref<2x8x64xf32, #tpu.memory_space<vmem>>, vector<2x1x32xf32>,
    %c0_63 = arith.constant 0 : index
    %c2_64 = arith.constant 2 : index
    %c32_65 = arith.constant 32 : index
    %295 = vector.load %arg20[%c0_63, %c2_64, %c32_65] : memref<2x8x64xf32, #tpu.memory_space<vmem>>, vector<2x1x32xf32>
    %296 = vector.shape_cast %295 : vector<2x1x32xf32> to vector<2x32xf32>
    %297 = vector.shape_cast %291 : vector<2x32xf32> to vector<2x1x32xf32>
    tpu.vector_store %arg20[%c0_63, %c2_64, %c32_65], %297 {strides = array<i32>} : memref<2x8x64xf32, #tpu.memory_space<vmem>>, vector<2x1x32xf32>,
    %298 = vector.extract_strided_slice %14 {offsets = [0, 6, 0], sizes = [2, 1, 128], strides = [1, 1, 1]} : vector<2x8x128xf32> to vector<2x1x128xf32>
    %299 = vector.shape_cast %298 : vector<2x1x128xf32> to vector<2x128xf32>
    %cst_66 = arith.constant dense<0.000000e+00> : vector<2x128xf32>
    %300 = tpu.matmul %271, %16, %cst_66 {dimension_numbers = #tpu.dot_dimension_numbers<[1], [0], [0], [1], [0, 0, 1, 1], [], []>} : vector<2x32xf32>, vector<32x128xf32>, vector<2x128xf32> -> vector<2x128xf32>
    %301 = arith.addf %299, %300 : vector<2x128xf32>
    %302 = arith.negf %301 : vector<2x128xf32>
    %303 = math.exp %302 : vector<2x128xf32>
    %cst_67 = arith.constant 1.000000e+00 : f32
    %304 = vector.broadcast %cst_67 : f32 to vector<2x128xf32>
    %305 = arith.addf %304, %303 : vector<2x128xf32>
    %306 = arith.divf %304, %305 : vector<2x128xf32>
    %307 = math.tanh %301 : vector<2x128xf32>
    %308 = arith.select %5, %307, %306 : vector<2x128xi1>, vector<2x128xf32>
    %309 = vector.extract_strided_slice %308 {offsets = [0, 0], sizes = [2, 32], strides = [1, 1]} : vector<2x128xf32> to vector<2x32xf32>
    %310 = vector.extract_strided_slice %308 {offsets = [0, 32], sizes = [2, 32], strides = [1, 1]} : vector<2x128xf32> to vector<2x32xf32>
    %311 = vector.extract_strided_slice %308 {offsets = [0, 64], sizes = [2, 32], strides = [1, 1]} : vector<2x128xf32> to vector<2x32xf32>
    %312 = vector.extract_strided_slice %308 {offsets = [0, 96], sizes = [2, 32], strides = [1, 1]} : vector<2x128xf32> to vector<2x32xf32>
    %313 = arith.mulf %310, %269 : vector<2x32xf32>
    %314 = arith.mulf %309, %311 : vector<2x32xf32>
    %315 = arith.addf %313, %314 : vector<2x32xf32>
    %316 = math.tanh %315 : vector<2x32xf32>
    %317 = arith.mulf %312, %316 : vector<2x32xf32>
    %318 = vector.extract_strided_slice %15 {offsets = [0, 1, 0], sizes = [2, 1, 128], strides = [1, 1, 1]} : vector<2x8x128xf32> to vector<2x1x128xf32>
    %319 = vector.shape_cast %318 : vector<2x1x128xf32> to vector<2x128xf32>
    %cst_68 = arith.constant dense<0.000000e+00> : vector<2x128xf32>
    %320 = tpu.matmul %291, %17, %cst_68 {dimension_numbers = #tpu.dot_dimension_numbers<[1], [0], [0], [1], [0, 0, 1, 1], [], []>} : vector<2x32xf32>, vector<32x128xf32>, vector<2x128xf32> -> vector<2x128xf32>
    %321 = arith.addf %319, %320 : vector<2x128xf32>
    %322 = arith.negf %321 : vector<2x128xf32>
    %323 = math.exp %322 : vector<2x128xf32>
    %cst_69 = arith.constant 1.000000e+00 : f32
    %324 = vector.broadcast %cst_69 : f32 to vector<2x128xf32>
    %325 = arith.addf %324, %323 : vector<2x128xf32>
    %326 = arith.divf %324, %325 : vector<2x128xf32>
    %327 = math.tanh %321 : vector<2x128xf32>
    %328 = arith.select %5, %327, %326 : vector<2x128xi1>, vector<2x128xf32>
    %329 = vector.extract_strided_slice %328 {offsets = [0, 0], sizes = [2, 32], strides = [1, 1]} : vector<2x128xf32> to vector<2x32xf32>
    %330 = vector.extract_strided_slice %328 {offsets = [0, 32], sizes = [2, 32], strides = [1, 1]} : vector<2x128xf32> to vector<2x32xf32>
    %331 = vector.extract_strided_slice %328 {offsets = [0, 64], sizes = [2, 32], strides = [1, 1]} : vector<2x128xf32> to vector<2x32xf32>
    %332 = vector.extract_strided_slice %328 {offsets = [0, 96], sizes = [2, 32], strides = [1, 1]} : vector<2x128xf32> to vector<2x32xf32>
    %333 = arith.mulf %330, %289 : vector<2x32xf32>
    %334 = arith.mulf %329, %331 : vector<2x32xf32>
    %335 = arith.addf %333, %334 : vector<2x32xf32>
    %336 = math.tanh %335 : vector<2x32xf32>
    %337 = arith.mulf %332, %336 : vector<2x32xf32>
    %c0_70 = arith.constant 0 : index
    %c6_71 = arith.constant 6 : index
    %c0_72 = arith.constant 0 : index
    %338 = vector.load %arg20[%c0_70, %c6_71, %c0_72] : memref<2x8x64xf32, #tpu.memory_space<vmem>>, vector<2x1x32xf32>
    %339 = vector.shape_cast %338 : vector<2x1x32xf32> to vector<2x32xf32>
    %340 = vector.shape_cast %317 : vector<2x32xf32> to vector<2x1x32xf32>
    tpu.vector_store %arg20[%c0_70, %c6_71, %c0_72], %340 {strides = array<i32>} : memref<2x8x64xf32, #tpu.memory_space<vmem>>, vector<2x1x32xf32>,
    %c0_73 = arith.constant 0 : index
    %c1_74 = arith.constant 1 : index
    %c32_75 = arith.constant 32 : index
    %341 = vector.load %arg20[%c0_73, %c1_74, %c32_75] : memref<2x8x64xf32, #tpu.memory_space<vmem>>, vector<2x1x32xf32>
    %342 = vector.shape_cast %341 : vector<2x1x32xf32> to vector<2x32xf32>
    %343 = vector.shape_cast %337 : vector<2x32xf32> to vector<2x1x32xf32>
    tpu.vector_store %arg20[%c0_73, %c1_74, %c32_75], %343 {strides = array<i32>} : memref<2x8x64xf32, #tpu.memory_space<vmem>>, vector<2x1x32xf32>,
    %344 = vector.extract_strided_slice %14 {offsets = [0, 7, 0], sizes = [2, 1, 128], strides = [1, 1, 1]} : vector<2x8x128xf32> to vector<2x1x128xf32>
    %345 = vector.shape_cast %344 : vector<2x1x128xf32> to vector<2x128xf32>
    %cst_76 = arith.constant dense<0.000000e+00> : vector<2x128xf32>
    %346 = tpu.matmul %317, %16, %cst_76 {dimension_numbers = #tpu.dot_dimension_numbers<[1], [0], [0], [1], [0, 0, 1, 1], [], []>} : vector<2x32xf32>, vector<32x128xf32>, vector<2x128xf32> -> vector<2x128xf32>
    %347 = arith.addf %345, %346 : vector<2x128xf32>
    %348 = arith.negf %347 : vector<2x128xf32>
    %349 = math.exp %348 : vector<2x128xf32>
    %cst_77 = arith.constant 1.000000e+00 : f32
    %350 = vector.broadcast %cst_77 : f32 to vector<2x128xf32>
    %351 = arith.addf %350, %349 : vector<2x128xf32>
    %352 = arith.divf %350, %351 : vector<2x128xf32>
    %353 = math.tanh %347 : vector<2x128xf32>
    %354 = arith.select %5, %353, %352 : vector<2x128xi1>, vector<2x128xf32>
    %355 = vector.extract_strided_slice %354 {offsets = [0, 0], sizes = [2, 32], strides = [1, 1]} : vector<2x128xf32> to vector<2x32xf32>
    %356 = vector.extract_strided_slice %354 {offsets = [0, 32], sizes = [2, 32], strides = [1, 1]} : vector<2x128xf32> to vector<2x32xf32>
    %357 = vector.extract_strided_slice %354 {offsets = [0, 64], sizes = [2, 32], strides = [1, 1]} : vector<2x128xf32> to vector<2x32xf32>
    %358 = vector.extract_strided_slice %354 {offsets = [0, 96], sizes = [2, 32], strides = [1, 1]} : vector<2x128xf32> to vector<2x32xf32>
    %359 = arith.mulf %356, %315 : vector<2x32xf32>
    %360 = arith.mulf %355, %357 : vector<2x32xf32>
    %361 = arith.addf %359, %360 : vector<2x32xf32>
    %362 = math.tanh %361 : vector<2x32xf32>
    %363 = arith.mulf %358, %362 : vector<2x32xf32>
    %364 = vector.extract_strided_slice %15 {offsets = [0, 0, 0], sizes = [2, 1, 128], strides = [1, 1, 1]} : vector<2x8x128xf32> to vector<2x1x128xf32>
    %365 = vector.shape_cast %364 : vector<2x1x128xf32> to vector<2x128xf32>
    %cst_78 = arith.constant dense<0.000000e+00> : vector<2x128xf32>
    %366 = tpu.matmul %337, %17, %cst_78 {dimension_numbers = #tpu.dot_dimension_numbers<[1], [0], [0], [1], [0, 0, 1, 1], [], []>} : vector<2x32xf32>, vector<32x128xf32>, vector<2x128xf32> -> vector<2x128xf32>
    %367 = arith.addf %365, %366 : vector<2x128xf32>
    %368 = arith.negf %367 : vector<2x128xf32>
    %369 = math.exp %368 : vector<2x128xf32>
    %cst_79 = arith.constant 1.000000e+00 : f32
    %370 = vector.broadcast %cst_79 : f32 to vector<2x128xf32>
    %371 = arith.addf %370, %369 : vector<2x128xf32>
    %372 = arith.divf %370, %371 : vector<2x128xf32>
    %373 = math.tanh %367 : vector<2x128xf32>
    %374 = arith.select %5, %373, %372 : vector<2x128xi1>, vector<2x128xf32>
    %375 = vector.extract_strided_slice %374 {offsets = [0, 0], sizes = [2, 32], strides = [1, 1]} : vector<2x128xf32> to vector<2x32xf32>
    %376 = vector.extract_strided_slice %374 {offsets = [0, 32], sizes = [2, 32], strides = [1, 1]} : vector<2x128xf32> to vector<2x32xf32>
    %377 = vector.extract_strided_slice %374 {offsets = [0, 64], sizes = [2, 32], strides = [1, 1]} : vector<2x128xf32> to vector<2x32xf32>
    %378 = vector.extract_strided_slice %374 {offsets = [0, 96], sizes = [2, 32], strides = [1, 1]} : vector<2x128xf32> to vector<2x32xf32>
    %379 = arith.mulf %376, %335 : vector<2x32xf32>
    %380 = arith.mulf %375, %377 : vector<2x32xf32>
    %381 = arith.addf %379, %380 : vector<2x32xf32>
    %382 = math.tanh %381 : vector<2x32xf32>
    %383 = arith.mulf %378, %382 : vector<2x32xf32>
    %c0_80 = arith.constant 0 : index
    %c7_81 = arith.constant 7 : index
    %c0_82 = arith.constant 0 : index
    %384 = vector.load %arg20[%c0_80, %c7_81, %c0_82] : memref<2x8x64xf32, #tpu.memory_space<vmem>>, vector<2x1x32xf32>
    %385 = vector.shape_cast %384 : vector<2x1x32xf32> to vector<2x32xf32>
    %386 = vector.shape_cast %363 : vector<2x32xf32> to vector<2x1x32xf32>
    tpu.vector_store %arg20[%c0_80, %c7_81, %c0_82], %386 {strides = array<i32>} : memref<2x8x64xf32, #tpu.memory_space<vmem>>, vector<2x1x32xf32>,
    %c0_83 = arith.constant 0 : index
    %c0_84 = arith.constant 0 : index
    %c32_85 = arith.constant 32 : index
    %387 = vector.load %arg20[%c0_83, %c0_84, %c32_85] : memref<2x8x64xf32, #tpu.memory_space<vmem>>, vector<2x1x32xf32>
    %388 = vector.shape_cast %387 : vector<2x1x32xf32> to vector<2x32xf32>
    %389 = vector.shape_cast %383 : vector<2x32xf32> to vector<2x1x32xf32>
    tpu.vector_store %arg20[%c0_83, %c0_84, %c32_85], %389 {strides = array<i32>} : memref<2x8x64xf32, #tpu.memory_space<vmem>>, vector<2x1x32xf32>,
    %c0_86 = arith.constant 0 : index
    %c0_87 = arith.constant 0 : index
    %c0_88 = arith.constant 0 : index
    %390 = vector.load %arg20[%c0_86, %c0_87, %c0_88] : memref<2x8x64xf32, #tpu.memory_space<vmem>>, vector<2x8x64xf32>
    %391 = vector.shape_cast %390 : vector<2x8x64xf32> to vector<16x64xf32>
    %c0_89 = arith.constant 0 : index
    %c0_90 = arith.constant 0 : index
    %392 = vector.load %arg5[%c0_89, %c0_90] : memref<64x256xf32, #tpu.memory_space<vmem>>, vector<64x256xf32>
    %cst_91 = arith.constant dense<0.000000e+00> : vector<16x256xf32>
    %393 = tpu.matmul %391, %392, %cst_91 {dimension_numbers = #tpu.dot_dimension_numbers<[1], [0], [0], [1], [0, 0, 1, 1], [], []>} : vector<16x64xf32>, vector<64x256xf32>, vector<16x256xf32> -> vector<16x256xf32>
    %c0_92 = arith.constant 0 : index
    %c0_93 = arith.constant 0 : index
    %394 = vector.load %arg6[%c0_92, %c0_93] : memref<1x256xf32, #tpu.memory_space<vmem>>, vector<1x256xf32>
    %395 = vector.broadcast %394 : vector<1x256xf32> to vector<16x256xf32>
    %396 = arith.addf %393, %395 : vector<16x256xf32>
    %397 = vector.shape_cast %396 : vector<16x256xf32> to vector<2x8x256xf32>
    %398 = vector.extract_strided_slice %397 {offsets = [0, 0, 0], sizes = [2, 8, 128], strides = [1, 1, 1]} : vector<2x8x256xf32> to vector<2x8x128xf32>
    %399 = vector.extract_strided_slice %397 {offsets = [0, 0, 128], sizes = [2, 8, 128], strides = [1, 1, 1]} : vector<2x8x256xf32> to vector<2x8x128xf32>
    %c0_94 = arith.constant 0 : index
    %c0_95 = arith.constant 0 : index
    %400 = vector.load %arg7[%c0_94, %c0_95] : memref<32x128xf32, #tpu.memory_space<vmem>>, vector<32x128xf32>
    %c0_96 = arith.constant 0 : index
    %c0_97 = arith.constant 0 : index
    %401 = vector.load %arg8[%c0_96, %c0_97] : memref<32x128xf32, #tpu.memory_space<vmem>>, vector<32x128xf32>
    %cst_98 = arith.constant 0.000000e+00 : f32
    %402 = vector.broadcast %cst_98 : f32 to vector<2x32xf32>
    %cst_99 = arith.constant 0.000000e+00 : f32
    %403 = vector.broadcast %cst_99 : f32 to vector<2x32xf32>
    %cst_100 = arith.constant 0.000000e+00 : f32
    %404 = vector.broadcast %cst_100 : f32 to vector<2x32xf32>
    %cst_101 = arith.constant 0.000000e+00 : f32
    %405 = vector.broadcast %cst_101 : f32 to vector<2x32xf32>
    %406 = vector.extract_strided_slice %398 {offsets = [0, 0, 0], sizes = [2, 1, 128], strides = [1, 1, 1]} : vector<2x8x128xf32> to vector<2x1x128xf32>
    %407 = vector.shape_cast %406 : vector<2x1x128xf32> to vector<2x128xf32>
    %cst_102 = arith.constant dense<0.000000e+00> : vector<2x128xf32>
    %408 = tpu.matmul %402, %400, %cst_102 {dimension_numbers = #tpu.dot_dimension_numbers<[1], [0], [0], [1], [0, 0, 1, 1], [], []>} : vector<2x32xf32>, vector<32x128xf32>, vector<2x128xf32> -> vector<2x128xf32>
    %409 = arith.addf %407, %408 : vector<2x128xf32>
    %410 = arith.negf %409 : vector<2x128xf32>
    %411 = math.exp %410 : vector<2x128xf32>
    %cst_103 = arith.constant 1.000000e+00 : f32
    %412 = vector.broadcast %cst_103 : f32 to vector<2x128xf32>
    %413 = arith.addf %412, %411 : vector<2x128xf32>
    %414 = arith.divf %412, %413 : vector<2x128xf32>
    %415 = math.tanh %409 : vector<2x128xf32>
    %416 = arith.select %5, %415, %414 : vector<2x128xi1>, vector<2x128xf32>
    %417 = vector.extract_strided_slice %416 {offsets = [0, 0], sizes = [2, 32], strides = [1, 1]} : vector<2x128xf32> to vector<2x32xf32>
    %418 = vector.extract_strided_slice %416 {offsets = [0, 32], sizes = [2, 32], strides = [1, 1]} : vector<2x128xf32> to vector<2x32xf32>
    %419 = vector.extract_strided_slice %416 {offsets = [0, 64], sizes = [2, 32], strides = [1, 1]} : vector<2x128xf32> to vector<2x32xf32>
    %420 = vector.extract_strided_slice %416 {offsets = [0, 96], sizes = [2, 32], strides = [1, 1]} : vector<2x128xf32> to vector<2x32xf32>
    %421 = arith.mulf %418, %403 : vector<2x32xf32>
    %422 = arith.mulf %417, %419 : vector<2x32xf32>
    %423 = arith.addf %421, %422 : vector<2x32xf32>
    %424 = math.tanh %423 : vector<2x32xf32>
    %425 = arith.mulf %420, %424 : vector<2x32xf32>
    %426 = vector.extract_strided_slice %399 {offsets = [0, 7, 0], sizes = [2, 1, 128], strides = [1, 1, 1]} : vector<2x8x128xf32> to vector<2x1x128xf32>
    %427 = vector.shape_cast %426 : vector<2x1x128xf32> to vector<2x128xf32>
    %cst_104 = arith.constant dense<0.000000e+00> : vector<2x128xf32>
    %428 = tpu.matmul %404, %401, %cst_104 {dimension_numbers = #tpu.dot_dimension_numbers<[1], [0], [0], [1], [0, 0, 1, 1], [], []>} : vector<2x32xf32>, vector<32x128xf32>, vector<2x128xf32> -> vector<2x128xf32>
    %429 = arith.addf %427, %428 : vector<2x128xf32>
    %430 = arith.negf %429 : vector<2x128xf32>
    %431 = math.exp %430 : vector<2x128xf32>
    %cst_105 = arith.constant 1.000000e+00 : f32
    %432 = vector.broadcast %cst_105 : f32 to vector<2x128xf32>
    %433 = arith.addf %432, %431 : vector<2x128xf32>
    %434 = arith.divf %432, %433 : vector<2x128xf32>
    %435 = math.tanh %429 : vector<2x128xf32>
    %436 = arith.select %5, %435, %434 : vector<2x128xi1>, vector<2x128xf32>
    %437 = vector.extract_strided_slice %436 {offsets = [0, 0], sizes = [2, 32], strides = [1, 1]} : vector<2x128xf32> to vector<2x32xf32>
    %438 = vector.extract_strided_slice %436 {offsets = [0, 32], sizes = [2, 32], strides = [1, 1]} : vector<2x128xf32> to vector<2x32xf32>
    %439 = vector.extract_strided_slice %436 {offsets = [0, 64], sizes = [2, 32], strides = [1, 1]} : vector<2x128xf32> to vector<2x32xf32>
    %440 = vector.extract_strided_slice %436 {offsets = [0, 96], sizes = [2, 32], strides = [1, 1]} : vector<2x128xf32> to vector<2x32xf32>
    %441 = arith.mulf %438, %405 : vector<2x32xf32>
    %442 = arith.mulf %437, %439 : vector<2x32xf32>
    %443 = arith.addf %441, %442 : vector<2x32xf32>
    %444 = math.tanh %443 : vector<2x32xf32>
    %445 = arith.mulf %440, %444 : vector<2x32xf32>
    %c0_106 = arith.constant 0 : index
    %c0_107 = arith.constant 0 : index
    %c0_108 = arith.constant 0 : index
    %446 = vector.load %arg21[%c0_106, %c0_107, %c0_108] : memref<2x8x64xf32, #tpu.memory_space<vmem>>, vector<2x1x32xf32>
    %447 = vector.shape_cast %446 : vector<2x1x32xf32> to vector<2x32xf32>
    %448 = vector.shape_cast %425 : vector<2x32xf32> to vector<2x1x32xf32>
    tpu.vector_store %arg21[%c0_106, %c0_107, %c0_108], %448 {strides = array<i32>} : memref<2x8x64xf32, #tpu.memory_space<vmem>>, vector<2x1x32xf32>,
    %c0_109 = arith.constant 0 : index
    %c7_110 = arith.constant 7 : index
    %c32_111 = arith.constant 32 : index
    %449 = vector.load %arg21[%c0_109, %c7_110, %c32_111] : memref<2x8x64xf32, #tpu.memory_space<vmem>>, vector<2x1x32xf32>
    %450 = vector.shape_cast %449 : vector<2x1x32xf32> to vector<2x32xf32>
    %451 = vector.shape_cast %445 : vector<2x32xf32> to vector<2x1x32xf32>
    tpu.vector_store %arg21[%c0_109, %c7_110, %c32_111], %451 {strides = array<i32>} : memref<2x8x64xf32, #tpu.memory_space<vmem>>, vector<2x1x32xf32>,
    %452 = vector.extract_strided_slice %398 {offsets = [0, 1, 0], sizes = [2, 1, 128], strides = [1, 1, 1]} : vector<2x8x128xf32> to vector<2x1x128xf32>
    %453 = vector.shape_cast %452 : vector<2x1x128xf32> to vector<2x128xf32>
    %cst_112 = arith.constant dense<0.000000e+00> : vector<2x128xf32>
    %454 = tpu.matmul %425, %400, %cst_112 {dimension_numbers = #tpu.dot_dimension_numbers<[1], [0], [0], [1], [0, 0, 1, 1], [], []>} : vector<2x32xf32>, vector<32x128xf32>, vector<2x128xf32> -> vector<2x128xf32>
    %455 = arith.addf %453, %454 : vector<2x128xf32>
    %456 = arith.negf %455 : vector<2x128xf32>
    %457 = math.exp %456 : vector<2x128xf32>
    %cst_113 = arith.constant 1.000000e+00 : f32
    %458 = vector.broadcast %cst_113 : f32 to vector<2x128xf32>
    %459 = arith.addf %458, %457 : vector<2x128xf32>
    %460 = arith.divf %458, %459 : vector<2x128xf32>
    %461 = math.tanh %455 : vector<2x128xf32>
    %462 = arith.select %5, %461, %460 : vector<2x128xi1>, vector<2x128xf32>
    %463 = vector.extract_strided_slice %462 {offsets = [0, 0], sizes = [2, 32], strides = [1, 1]} : vector<2x128xf32> to vector<2x32xf32>
    %464 = vector.extract_strided_slice %462 {offsets = [0, 32], sizes = [2, 32], strides = [1, 1]} : vector<2x128xf32> to vector<2x32xf32>
    %465 = vector.extract_strided_slice %462 {offsets = [0, 64], sizes = [2, 32], strides = [1, 1]} : vector<2x128xf32> to vector<2x32xf32>
    %466 = vector.extract_strided_slice %462 {offsets = [0, 96], sizes = [2, 32], strides = [1, 1]} : vector<2x128xf32> to vector<2x32xf32>
    %467 = arith.mulf %464, %423 : vector<2x32xf32>
    %468 = arith.mulf %463, %465 : vector<2x32xf32>
    %469 = arith.addf %467, %468 : vector<2x32xf32>
    %470 = math.tanh %469 : vector<2x32xf32>
    %471 = arith.mulf %466, %470 : vector<2x32xf32>
    %472 = vector.extract_strided_slice %399 {offsets = [0, 6, 0], sizes = [2, 1, 128], strides = [1, 1, 1]} : vector<2x8x128xf32> to vector<2x1x128xf32>
    %473 = vector.shape_cast %472 : vector<2x1x128xf32> to vector<2x128xf32>
    %cst_114 = arith.constant dense<0.000000e+00> : vector<2x128xf32>
    %474 = tpu.matmul %445, %401, %cst_114 {dimension_numbers = #tpu.dot_dimension_numbers<[1], [0], [0], [1], [0, 0, 1, 1], [], []>} : vector<2x32xf32>, vector<32x128xf32>, vector<2x128xf32> -> vector<2x128xf32>
    %475 = arith.addf %473, %474 : vector<2x128xf32>
    %476 = arith.negf %475 : vector<2x128xf32>
    %477 = math.exp %476 : vector<2x128xf32>
    %cst_115 = arith.constant 1.000000e+00 : f32
    %478 = vector.broadcast %cst_115 : f32 to vector<2x128xf32>
    %479 = arith.addf %478, %477 : vector<2x128xf32>
    %480 = arith.divf %478, %479 : vector<2x128xf32>
    %481 = math.tanh %475 : vector<2x128xf32>
    %482 = arith.select %5, %481, %480 : vector<2x128xi1>, vector<2x128xf32>
    %483 = vector.extract_strided_slice %482 {offsets = [0, 0], sizes = [2, 32], strides = [1, 1]} : vector<2x128xf32> to vector<2x32xf32>
    %484 = vector.extract_strided_slice %482 {offsets = [0, 32], sizes = [2, 32], strides = [1, 1]} : vector<2x128xf32> to vector<2x32xf32>
    %485 = vector.extract_strided_slice %482 {offsets = [0, 64], sizes = [2, 32], strides = [1, 1]} : vector<2x128xf32> to vector<2x32xf32>
    %486 = vector.extract_strided_slice %482 {offsets = [0, 96], sizes = [2, 32], strides = [1, 1]} : vector<2x128xf32> to vector<2x32xf32>
    %487 = arith.mulf %484, %443 : vector<2x32xf32>
    %488 = arith.mulf %483, %485 : vector<2x32xf32>
    %489 = arith.addf %487, %488 : vector<2x32xf32>
    %490 = math.tanh %489 : vector<2x32xf32>
    %491 = arith.mulf %486, %490 : vector<2x32xf32>
    %c0_116 = arith.constant 0 : index
    %c1_117 = arith.constant 1 : index
    %c0_118 = arith.constant 0 : index
    %492 = vector.load %arg21[%c0_116, %c1_117, %c0_118] : memref<2x8x64xf32, #tpu.memory_space<vmem>>, vector<2x1x32xf32>
    %493 = vector.shape_cast %492 : vector<2x1x32xf32> to vector<2x32xf32>
    %494 = vector.shape_cast %471 : vector<2x32xf32> to vector<2x1x32xf32>
    tpu.vector_store %arg21[%c0_116, %c1_117, %c0_118], %494 {strides = array<i32>} : memref<2x8x64xf32, #tpu.memory_space<vmem>>, vector<2x1x32xf32>,
    %c0_119 = arith.constant 0 : index
    %c6_120 = arith.constant 6 : index
    %c32_121 = arith.constant 32 : index
    %495 = vector.load %arg21[%c0_119, %c6_120, %c32_121] : memref<2x8x64xf32, #tpu.memory_space<vmem>>, vector<2x1x32xf32>
    %496 = vector.shape_cast %495 : vector<2x1x32xf32> to vector<2x32xf32>
    %497 = vector.shape_cast %491 : vector<2x32xf32> to vector<2x1x32xf32>
    tpu.vector_store %arg21[%c0_119, %c6_120, %c32_121], %497 {strides = array<i32>} : memref<2x8x64xf32, #tpu.memory_space<vmem>>, vector<2x1x32xf32>,
    %498 = vector.extract_strided_slice %398 {offsets = [0, 2, 0], sizes = [2, 1, 128], strides = [1, 1, 1]} : vector<2x8x128xf32> to vector<2x1x128xf32>
    %499 = vector.shape_cast %498 : vector<2x1x128xf32> to vector<2x128xf32>
    %cst_122 = arith.constant dense<0.000000e+00> : vector<2x128xf32>
    %500 = tpu.matmul %471, %400, %cst_122 {dimension_numbers = #tpu.dot_dimension_numbers<[1], [0], [0], [1], [0, 0, 1, 1], [], []>} : vector<2x32xf32>, vector<32x128xf32>, vector<2x128xf32> -> vector<2x128xf32>
    %501 = arith.addf %499, %500 : vector<2x128xf32>
    %502 = arith.negf %501 : vector<2x128xf32>
    %503 = math.exp %502 : vector<2x128xf32>
    %cst_123 = arith.constant 1.000000e+00 : f32
    %504 = vector.broadcast %cst_123 : f32 to vector<2x128xf32>
    %505 = arith.addf %504, %503 : vector<2x128xf32>
    %506 = arith.divf %504, %505 : vector<2x128xf32>
    %507 = math.tanh %501 : vector<2x128xf32>
    %508 = arith.select %5, %507, %506 : vector<2x128xi1>, vector<2x128xf32>
    %509 = vector.extract_strided_slice %508 {offsets = [0, 0], sizes = [2, 32], strides = [1, 1]} : vector<2x128xf32> to vector<2x32xf32>
    %510 = vector.extract_strided_slice %508 {offsets = [0, 32], sizes = [2, 32], strides = [1, 1]} : vector<2x128xf32> to vector<2x32xf32>
    %511 = vector.extract_strided_slice %508 {offsets = [0, 64], sizes = [2, 32], strides = [1, 1]} : vector<2x128xf32> to vector<2x32xf32>
    %512 = vector.extract_strided_slice %508 {offsets = [0, 96], sizes = [2, 32], strides = [1, 1]} : vector<2x128xf32> to vector<2x32xf32>
    %513 = arith.mulf %510, %469 : vector<2x32xf32>
    %514 = arith.mulf %509, %511 : vector<2x32xf32>
    %515 = arith.addf %513, %514 : vector<2x32xf32>
    %516 = math.tanh %515 : vector<2x32xf32>
    %517 = arith.mulf %512, %516 : vector<2x32xf32>
    %518 = vector.extract_strided_slice %399 {offsets = [0, 5, 0], sizes = [2, 1, 128], strides = [1, 1, 1]} : vector<2x8x128xf32> to vector<2x1x128xf32>
    %519 = vector.shape_cast %518 : vector<2x1x128xf32> to vector<2x128xf32>
    %cst_124 = arith.constant dense<0.000000e+00> : vector<2x128xf32>
    %520 = tpu.matmul %491, %401, %cst_124 {dimension_numbers = #tpu.dot_dimension_numbers<[1], [0], [0], [1], [0, 0, 1, 1], [], []>} : vector<2x32xf32>, vector<32x128xf32>, vector<2x128xf32> -> vector<2x128xf32>
    %521 = arith.addf %519, %520 : vector<2x128xf32>
    %522 = arith.negf %521 : vector<2x128xf32>
    %523 = math.exp %522 : vector<2x128xf32>
    %cst_125 = arith.constant 1.000000e+00 : f32
    %524 = vector.broadcast %cst_125 : f32 to vector<2x128xf32>
    %525 = arith.addf %524, %523 : vector<2x128xf32>
    %526 = arith.divf %524, %525 : vector<2x128xf32>
    %527 = math.tanh %521 : vector<2x128xf32>
    %528 = arith.select %5, %527, %526 : vector<2x128xi1>, vector<2x128xf32>
    %529 = vector.extract_strided_slice %528 {offsets = [0, 0], sizes = [2, 32], strides = [1, 1]} : vector<2x128xf32> to vector<2x32xf32>
    %530 = vector.extract_strided_slice %528 {offsets = [0, 32], sizes = [2, 32], strides = [1, 1]} : vector<2x128xf32> to vector<2x32xf32>
    %531 = vector.extract_strided_slice %528 {offsets = [0, 64], sizes = [2, 32], strides = [1, 1]} : vector<2x128xf32> to vector<2x32xf32>
    %532 = vector.extract_strided_slice %528 {offsets = [0, 96], sizes = [2, 32], strides = [1, 1]} : vector<2x128xf32> to vector<2x32xf32>
    %533 = arith.mulf %530, %489 : vector<2x32xf32>
    %534 = arith.mulf %529, %531 : vector<2x32xf32>
    %535 = arith.addf %533, %534 : vector<2x32xf32>
    %536 = math.tanh %535 : vector<2x32xf32>
    %537 = arith.mulf %532, %536 : vector<2x32xf32>
    %c0_126 = arith.constant 0 : index
    %c2_127 = arith.constant 2 : index
    %c0_128 = arith.constant 0 : index
    %538 = vector.load %arg21[%c0_126, %c2_127, %c0_128] : memref<2x8x64xf32, #tpu.memory_space<vmem>>, vector<2x1x32xf32>
    %539 = vector.shape_cast %538 : vector<2x1x32xf32> to vector<2x32xf32>
    %540 = vector.shape_cast %517 : vector<2x32xf32> to vector<2x1x32xf32>
    tpu.vector_store %arg21[%c0_126, %c2_127, %c0_128], %540 {strides = array<i32>} : memref<2x8x64xf32, #tpu.memory_space<vmem>>, vector<2x1x32xf32>,
    %c0_129 = arith.constant 0 : index
    %c5_130 = arith.constant 5 : index
    %c32_131 = arith.constant 32 : index
    %541 = vector.load %arg21[%c0_129, %c5_130, %c32_131] : memref<2x8x64xf32, #tpu.memory_space<vmem>>, vector<2x1x32xf32>
    %542 = vector.shape_cast %541 : vector<2x1x32xf32> to vector<2x32xf32>
    %543 = vector.shape_cast %537 : vector<2x32xf32> to vector<2x1x32xf32>
    tpu.vector_store %arg21[%c0_129, %c5_130, %c32_131], %543 {strides = array<i32>} : memref<2x8x64xf32, #tpu.memory_space<vmem>>, vector<2x1x32xf32>,
    %544 = vector.extract_strided_slice %398 {offsets = [0, 3, 0], sizes = [2, 1, 128], strides = [1, 1, 1]} : vector<2x8x128xf32> to vector<2x1x128xf32>
    %545 = vector.shape_cast %544 : vector<2x1x128xf32> to vector<2x128xf32>
    %cst_132 = arith.constant dense<0.000000e+00> : vector<2x128xf32>
    %546 = tpu.matmul %517, %400, %cst_132 {dimension_numbers = #tpu.dot_dimension_numbers<[1], [0], [0], [1], [0, 0, 1, 1], [], []>} : vector<2x32xf32>, vector<32x128xf32>, vector<2x128xf32> -> vector<2x128xf32>
    %547 = arith.addf %545, %546 : vector<2x128xf32>
    %548 = arith.negf %547 : vector<2x128xf32>
    %549 = math.exp %548 : vector<2x128xf32>
    %cst_133 = arith.constant 1.000000e+00 : f32
    %550 = vector.broadcast %cst_133 : f32 to vector<2x128xf32>
    %551 = arith.addf %550, %549 : vector<2x128xf32>
    %552 = arith.divf %550, %551 : vector<2x128xf32>
    %553 = math.tanh %547 : vector<2x128xf32>
    %554 = arith.select %5, %553, %552 : vector<2x128xi1>, vector<2x128xf32>
    %555 = vector.extract_strided_slice %554 {offsets = [0, 0], sizes = [2, 32], strides = [1, 1]} : vector<2x128xf32> to vector<2x32xf32>
    %556 = vector.extract_strided_slice %554 {offsets = [0, 32], sizes = [2, 32], strides = [1, 1]} : vector<2x128xf32> to vector<2x32xf32>
    %557 = vector.extract_strided_slice %554 {offsets = [0, 64], sizes = [2, 32], strides = [1, 1]} : vector<2x128xf32> to vector<2x32xf32>
    %558 = vector.extract_strided_slice %554 {offsets = [0, 96], sizes = [2, 32], strides = [1, 1]} : vector<2x128xf32> to vector<2x32xf32>
    %559 = arith.mulf %556, %515 : vector<2x32xf32>
    %560 = arith.mulf %555, %557 : vector<2x32xf32>
    %561 = arith.addf %559, %560 : vector<2x32xf32>
    %562 = math.tanh %561 : vector<2x32xf32>
    %563 = arith.mulf %558, %562 : vector<2x32xf32>
    %564 = vector.extract_strided_slice %399 {offsets = [0, 4, 0], sizes = [2, 1, 128], strides = [1, 1, 1]} : vector<2x8x128xf32> to vector<2x1x128xf32>
    %565 = vector.shape_cast %564 : vector<2x1x128xf32> to vector<2x128xf32>
    %cst_134 = arith.constant dense<0.000000e+00> : vector<2x128xf32>
    %566 = tpu.matmul %537, %401, %cst_134 {dimension_numbers = #tpu.dot_dimension_numbers<[1], [0], [0], [1], [0, 0, 1, 1], [], []>} : vector<2x32xf32>, vector<32x128xf32>, vector<2x128xf32> -> vector<2x128xf32>
    %567 = arith.addf %565, %566 : vector<2x128xf32>
    %568 = arith.negf %567 : vector<2x128xf32>
    %569 = math.exp %568 : vector<2x128xf32>
    %cst_135 = arith.constant 1.000000e+00 : f32
    %570 = vector.broadcast %cst_135 : f32 to vector<2x128xf32>
    %571 = arith.addf %570, %569 : vector<2x128xf32>
    %572 = arith.divf %570, %571 : vector<2x128xf32>
    %573 = math.tanh %567 : vector<2x128xf32>
    %574 = arith.select %5, %573, %572 : vector<2x128xi1>, vector<2x128xf32>
    %575 = vector.extract_strided_slice %574 {offsets = [0, 0], sizes = [2, 32], strides = [1, 1]} : vector<2x128xf32> to vector<2x32xf32>
    %576 = vector.extract_strided_slice %574 {offsets = [0, 32], sizes = [2, 32], strides = [1, 1]} : vector<2x128xf32> to vector<2x32xf32>
    %577 = vector.extract_strided_slice %574 {offsets = [0, 64], sizes = [2, 32], strides = [1, 1]} : vector<2x128xf32> to vector<2x32xf32>
    %578 = vector.extract_strided_slice %574 {offsets = [0, 96], sizes = [2, 32], strides = [1, 1]} : vector<2x128xf32> to vector<2x32xf32>
    %579 = arith.mulf %576, %535 : vector<2x32xf32>
    %580 = arith.mulf %575, %577 : vector<2x32xf32>
    %581 = arith.addf %579, %580 : vector<2x32xf32>
    %582 = math.tanh %581 : vector<2x32xf32>
    %583 = arith.mulf %578, %582 : vector<2x32xf32>
    %c0_136 = arith.constant 0 : index
    %c3_137 = arith.constant 3 : index
    %c0_138 = arith.constant 0 : index
    %584 = vector.load %arg21[%c0_136, %c3_137, %c0_138] : memref<2x8x64xf32, #tpu.memory_space<vmem>>, vector<2x1x32xf32>
    %585 = vector.shape_cast %584 : vector<2x1x32xf32> to vector<2x32xf32>
    %586 = vector.shape_cast %563 : vector<2x32xf32> to vector<2x1x32xf32>
    tpu.vector_store %arg21[%c0_136, %c3_137, %c0_138], %586 {strides = array<i32>} : memref<2x8x64xf32, #tpu.memory_space<vmem>>, vector<2x1x32xf32>,
    %c0_139 = arith.constant 0 : index
    %c4_140 = arith.constant 4 : index
    %c32_141 = arith.constant 32 : index
    %587 = vector.load %arg21[%c0_139, %c4_140, %c32_141] : memref<2x8x64xf32, #tpu.memory_space<vmem>>, vector<2x1x32xf32>
    %588 = vector.shape_cast %587 : vector<2x1x32xf32> to vector<2x32xf32>
    %589 = vector.shape_cast %583 : vector<2x32xf32> to vector<2x1x32xf32>
    tpu.vector_store %arg21[%c0_139, %c4_140, %c32_141], %589 {strides = array<i32>} : memref<2x8x64xf32, #tpu.memory_space<vmem>>, vector<2x1x32xf32>,
    %590 = vector.extract_strided_slice %398 {offsets = [0, 4, 0], sizes = [2, 1, 128], strides = [1, 1, 1]} : vector<2x8x128xf32> to vector<2x1x128xf32>
    %591 = vector.shape_cast %590 : vector<2x1x128xf32> to vector<2x128xf32>
    %cst_142 = arith.constant dense<0.000000e+00> : vector<2x128xf32>
    %592 = tpu.matmul %563, %400, %cst_142 {dimension_numbers = #tpu.dot_dimension_numbers<[1], [0], [0], [1], [0, 0, 1, 1], [], []>} : vector<2x32xf32>, vector<32x128xf32>, vector<2x128xf32> -> vector<2x128xf32>
    %593 = arith.addf %591, %592 : vector<2x128xf32>
    %594 = arith.negf %593 : vector<2x128xf32>
    %595 = math.exp %594 : vector<2x128xf32>
    %cst_143 = arith.constant 1.000000e+00 : f32
    %596 = vector.broadcast %cst_143 : f32 to vector<2x128xf32>
    %597 = arith.addf %596, %595 : vector<2x128xf32>
    %598 = arith.divf %596, %597 : vector<2x128xf32>
    %599 = math.tanh %593 : vector<2x128xf32>
    %600 = arith.select %5, %599, %598 : vector<2x128xi1>, vector<2x128xf32>
    %601 = vector.extract_strided_slice %600 {offsets = [0, 0], sizes = [2, 32], strides = [1, 1]} : vector<2x128xf32> to vector<2x32xf32>
    %602 = vector.extract_strided_slice %600 {offsets = [0, 32], sizes = [2, 32], strides = [1, 1]} : vector<2x128xf32> to vector<2x32xf32>
    %603 = vector.extract_strided_slice %600 {offsets = [0, 64], sizes = [2, 32], strides = [1, 1]} : vector<2x128xf32> to vector<2x32xf32>
    %604 = vector.extract_strided_slice %600 {offsets = [0, 96], sizes = [2, 32], strides = [1, 1]} : vector<2x128xf32> to vector<2x32xf32>
    %605 = arith.mulf %602, %561 : vector<2x32xf32>
    %606 = arith.mulf %601, %603 : vector<2x32xf32>
    %607 = arith.addf %605, %606 : vector<2x32xf32>
    %608 = math.tanh %607 : vector<2x32xf32>
    %609 = arith.mulf %604, %608 : vector<2x32xf32>
    %610 = vector.extract_strided_slice %399 {offsets = [0, 3, 0], sizes = [2, 1, 128], strides = [1, 1, 1]} : vector<2x8x128xf32> to vector<2x1x128xf32>
    %611 = vector.shape_cast %610 : vector<2x1x128xf32> to vector<2x128xf32>
    %cst_144 = arith.constant dense<0.000000e+00> : vector<2x128xf32>
    %612 = tpu.matmul %583, %401, %cst_144 {dimension_numbers = #tpu.dot_dimension_numbers<[1], [0], [0], [1], [0, 0, 1, 1], [], []>} : vector<2x32xf32>, vector<32x128xf32>, vector<2x128xf32> -> vector<2x128xf32>
    %613 = arith.addf %611, %612 : vector<2x128xf32>
    %614 = arith.negf %613 : vector<2x128xf32>
    %615 = math.exp %614 : vector<2x128xf32>
    %cst_145 = arith.constant 1.000000e+00 : f32
    %616 = vector.broadcast %cst_145 : f32 to vector<2x128xf32>
    %617 = arith.addf %616, %615 : vector<2x128xf32>
    %618 = arith.divf %616, %617 : vector<2x128xf32>
    %619 = math.tanh %613 : vector<2x128xf32>
    %620 = arith.select %5, %619, %618 : vector<2x128xi1>, vector<2x128xf32>
    %621 = vector.extract_strided_slice %620 {offsets = [0, 0], sizes = [2, 32], strides = [1, 1]} : vector<2x128xf32> to vector<2x32xf32>
    %622 = vector.extract_strided_slice %620 {offsets = [0, 32], sizes = [2, 32], strides = [1, 1]} : vector<2x128xf32> to vector<2x32xf32>
    %623 = vector.extract_strided_slice %620 {offsets = [0, 64], sizes = [2, 32], strides = [1, 1]} : vector<2x128xf32> to vector<2x32xf32>
    %624 = vector.extract_strided_slice %620 {offsets = [0, 96], sizes = [2, 32], strides = [1, 1]} : vector<2x128xf32> to vector<2x32xf32>
    %625 = arith.mulf %622, %581 : vector<2x32xf32>
    %626 = arith.mulf %621, %623 : vector<2x32xf32>
    %627 = arith.addf %625, %626 : vector<2x32xf32>
    %628 = math.tanh %627 : vector<2x32xf32>
    %629 = arith.mulf %624, %628 : vector<2x32xf32>
    %c0_146 = arith.constant 0 : index
    %c4_147 = arith.constant 4 : index
    %c0_148 = arith.constant 0 : index
    %630 = vector.load %arg21[%c0_146, %c4_147, %c0_148] : memref<2x8x64xf32, #tpu.memory_space<vmem>>, vector<2x1x32xf32>
    %631 = vector.shape_cast %630 : vector<2x1x32xf32> to vector<2x32xf32>
    %632 = vector.shape_cast %609 : vector<2x32xf32> to vector<2x1x32xf32>
    tpu.vector_store %arg21[%c0_146, %c4_147, %c0_148], %632 {strides = array<i32>} : memref<2x8x64xf32, #tpu.memory_space<vmem>>, vector<2x1x32xf32>,
    %c0_149 = arith.constant 0 : index
    %c3_150 = arith.constant 3 : index
    %c32_151 = arith.constant 32 : index
    %633 = vector.load %arg21[%c0_149, %c3_150, %c32_151] : memref<2x8x64xf32, #tpu.memory_space<vmem>>, vector<2x1x32xf32>
    %634 = vector.shape_cast %633 : vector<2x1x32xf32> to vector<2x32xf32>
    %635 = vector.shape_cast %629 : vector<2x32xf32> to vector<2x1x32xf32>
    tpu.vector_store %arg21[%c0_149, %c3_150, %c32_151], %635 {strides = array<i32>} : memref<2x8x64xf32, #tpu.memory_space<vmem>>, vector<2x1x32xf32>,
    %636 = vector.extract_strided_slice %398 {offsets = [0, 5, 0], sizes = [2, 1, 128], strides = [1, 1, 1]} : vector<2x8x128xf32> to vector<2x1x128xf32>
    %637 = vector.shape_cast %636 : vector<2x1x128xf32> to vector<2x128xf32>
    %cst_152 = arith.constant dense<0.000000e+00> : vector<2x128xf32>
    %638 = tpu.matmul %609, %400, %cst_152 {dimension_numbers = #tpu.dot_dimension_numbers<[1], [0], [0], [1], [0, 0, 1, 1], [], []>} : vector<2x32xf32>, vector<32x128xf32>, vector<2x128xf32> -> vector<2x128xf32>
    %639 = arith.addf %637, %638 : vector<2x128xf32>
    %640 = arith.negf %639 : vector<2x128xf32>
    %641 = math.exp %640 : vector<2x128xf32>
    %cst_153 = arith.constant 1.000000e+00 : f32
    %642 = vector.broadcast %cst_153 : f32 to vector<2x128xf32>
    %643 = arith.addf %642, %641 : vector<2x128xf32>
    %644 = arith.divf %642, %643 : vector<2x128xf32>
    %645 = math.tanh %639 : vector<2x128xf32>
    %646 = arith.select %5, %645, %644 : vector<2x128xi1>, vector<2x128xf32>
    %647 = vector.extract_strided_slice %646 {offsets = [0, 0], sizes = [2, 32], strides = [1, 1]} : vector<2x128xf32> to vector<2x32xf32>
    %648 = vector.extract_strided_slice %646 {offsets = [0, 32], sizes = [2, 32], strides = [1, 1]} : vector<2x128xf32> to vector<2x32xf32>
    %649 = vector.extract_strided_slice %646 {offsets = [0, 64], sizes = [2, 32], strides = [1, 1]} : vector<2x128xf32> to vector<2x32xf32>
    %650 = vector.extract_strided_slice %646 {offsets = [0, 96], sizes = [2, 32], strides = [1, 1]} : vector<2x128xf32> to vector<2x32xf32>
    %651 = arith.mulf %648, %607 : vector<2x32xf32>
    %652 = arith.mulf %647, %649 : vector<2x32xf32>
    %653 = arith.addf %651, %652 : vector<2x32xf32>
    %654 = math.tanh %653 : vector<2x32xf32>
    %655 = arith.mulf %650, %654 : vector<2x32xf32>
    %656 = vector.extract_strided_slice %399 {offsets = [0, 2, 0], sizes = [2, 1, 128], strides = [1, 1, 1]} : vector<2x8x128xf32> to vector<2x1x128xf32>
    %657 = vector.shape_cast %656 : vector<2x1x128xf32> to vector<2x128xf32>
    %cst_154 = arith.constant dense<0.000000e+00> : vector<2x128xf32>
    %658 = tpu.matmul %629, %401, %cst_154 {dimension_numbers = #tpu.dot_dimension_numbers<[1], [0], [0], [1], [0, 0, 1, 1], [], []>} : vector<2x32xf32>, vector<32x128xf32>, vector<2x128xf32> -> vector<2x128xf32>
    %659 = arith.addf %657, %658 : vector<2x128xf32>
    %660 = arith.negf %659 : vector<2x128xf32>
    %661 = math.exp %660 : vector<2x128xf32>
    %cst_155 = arith.constant 1.000000e+00 : f32
    %662 = vector.broadcast %cst_155 : f32 to vector<2x128xf32>
    %663 = arith.addf %662, %661 : vector<2x128xf32>
    %664 = arith.divf %662, %663 : vector<2x128xf32>
    %665 = math.tanh %659 : vector<2x128xf32>
    %666 = arith.select %5, %665, %664 : vector<2x128xi1>, vector<2x128xf32>
    %667 = vector.extract_strided_slice %666 {offsets = [0, 0], sizes = [2, 32], strides = [1, 1]} : vector<2x128xf32> to vector<2x32xf32>
    %668 = vector.extract_strided_slice %666 {offsets = [0, 32], sizes = [2, 32], strides = [1, 1]} : vector<2x128xf32> to vector<2x32xf32>
    %669 = vector.extract_strided_slice %666 {offsets = [0, 64], sizes = [2, 32], strides = [1, 1]} : vector<2x128xf32> to vector<2x32xf32>
    %670 = vector.extract_strided_slice %666 {offsets = [0, 96], sizes = [2, 32], strides = [1, 1]} : vector<2x128xf32> to vector<2x32xf32>
    %671 = arith.mulf %668, %627 : vector<2x32xf32>
    %672 = arith.mulf %667, %669 : vector<2x32xf32>
    %673 = arith.addf %671, %672 : vector<2x32xf32>
    %674 = math.tanh %673 : vector<2x32xf32>
    %675 = arith.mulf %670, %674 : vector<2x32xf32>
    %c0_156 = arith.constant 0 : index
    %c5_157 = arith.constant 5 : index
    %c0_158 = arith.constant 0 : index
    %676 = vector.load %arg21[%c0_156, %c5_157, %c0_158] : memref<2x8x64xf32, #tpu.memory_space<vmem>>, vector<2x1x32xf32>
    %677 = vector.shape_cast %676 : vector<2x1x32xf32> to vector<2x32xf32>
    %678 = vector.shape_cast %655 : vector<2x32xf32> to vector<2x1x32xf32>
    tpu.vector_store %arg21[%c0_156, %c5_157, %c0_158], %678 {strides = array<i32>} : memref<2x8x64xf32, #tpu.memory_space<vmem>>, vector<2x1x32xf32>,
    %c0_159 = arith.constant 0 : index
    %c2_160 = arith.constant 2 : index
    %c32_161 = arith.constant 32 : index
    %679 = vector.load %arg21[%c0_159, %c2_160, %c32_161] : memref<2x8x64xf32, #tpu.memory_space<vmem>>, vector<2x1x32xf32>
    %680 = vector.shape_cast %679 : vector<2x1x32xf32> to vector<2x32xf32>
    %681 = vector.shape_cast %675 : vector<2x32xf32> to vector<2x1x32xf32>
    tpu.vector_store %arg21[%c0_159, %c2_160, %c32_161], %681 {strides = array<i32>} : memref<2x8x64xf32, #tpu.memory_space<vmem>>, vector<2x1x32xf32>,
    %682 = vector.extract_strided_slice %398 {offsets = [0, 6, 0], sizes = [2, 1, 128], strides = [1, 1, 1]} : vector<2x8x128xf32> to vector<2x1x128xf32>
    %683 = vector.shape_cast %682 : vector<2x1x128xf32> to vector<2x128xf32>
    %cst_162 = arith.constant dense<0.000000e+00> : vector<2x128xf32>
    %684 = tpu.matmul %655, %400, %cst_162 {dimension_numbers = #tpu.dot_dimension_numbers<[1], [0], [0], [1], [0, 0, 1, 1], [], []>} : vector<2x32xf32>, vector<32x128xf32>, vector<2x128xf32> -> vector<2x128xf32>
    %685 = arith.addf %683, %684 : vector<2x128xf32>
    %686 = arith.negf %685 : vector<2x128xf32>
    %687 = math.exp %686 : vector<2x128xf32>
    %cst_163 = arith.constant 1.000000e+00 : f32
    %688 = vector.broadcast %cst_163 : f32 to vector<2x128xf32>
    %689 = arith.addf %688, %687 : vector<2x128xf32>
    %690 = arith.divf %688, %689 : vector<2x128xf32>
    %691 = math.tanh %685 : vector<2x128xf32>
    %692 = arith.select %5, %691, %690 : vector<2x128xi1>, vector<2x128xf32>
    %693 = vector.extract_strided_slice %692 {offsets = [0, 0], sizes = [2, 32], strides = [1, 1]} : vector<2x128xf32> to vector<2x32xf32>
    %694 = vector.extract_strided_slice %692 {offsets = [0, 32], sizes = [2, 32], strides = [1, 1]} : vector<2x128xf32> to vector<2x32xf32>
    %695 = vector.extract_strided_slice %692 {offsets = [0, 64], sizes = [2, 32], strides = [1, 1]} : vector<2x128xf32> to vector<2x32xf32>
    %696 = vector.extract_strided_slice %692 {offsets = [0, 96], sizes = [2, 32], strides = [1, 1]} : vector<2x128xf32> to vector<2x32xf32>
    %697 = arith.mulf %694, %653 : vector<2x32xf32>
    %698 = arith.mulf %693, %695 : vector<2x32xf32>
    %699 = arith.addf %697, %698 : vector<2x32xf32>
    %700 = math.tanh %699 : vector<2x32xf32>
    %701 = arith.mulf %696, %700 : vector<2x32xf32>
    %702 = vector.extract_strided_slice %399 {offsets = [0, 1, 0], sizes = [2, 1, 128], strides = [1, 1, 1]} : vector<2x8x128xf32> to vector<2x1x128xf32>
    %703 = vector.shape_cast %702 : vector<2x1x128xf32> to vector<2x128xf32>
    %cst_164 = arith.constant dense<0.000000e+00> : vector<2x128xf32>
    %704 = tpu.matmul %675, %401, %cst_164 {dimension_numbers = #tpu.dot_dimension_numbers<[1], [0], [0], [1], [0, 0, 1, 1], [], []>} : vector<2x32xf32>, vector<32x128xf32>, vector<2x128xf32> -> vector<2x128xf32>
    %705 = arith.addf %703, %704 : vector<2x128xf32>
    %706 = arith.negf %705 : vector<2x128xf32>
    %707 = math.exp %706 : vector<2x128xf32>
    %cst_165 = arith.constant 1.000000e+00 : f32
    %708 = vector.broadcast %cst_165 : f32 to vector<2x128xf32>
    %709 = arith.addf %708, %707 : vector<2x128xf32>
    %710 = arith.divf %708, %709 : vector<2x128xf32>
    %711 = math.tanh %705 : vector<2x128xf32>
    %712 = arith.select %5, %711, %710 : vector<2x128xi1>, vector<2x128xf32>
    %713 = vector.extract_strided_slice %712 {offsets = [0, 0], sizes = [2, 32], strides = [1, 1]} : vector<2x128xf32> to vector<2x32xf32>
    %714 = vector.extract_strided_slice %712 {offsets = [0, 32], sizes = [2, 32], strides = [1, 1]} : vector<2x128xf32> to vector<2x32xf32>
    %715 = vector.extract_strided_slice %712 {offsets = [0, 64], sizes = [2, 32], strides = [1, 1]} : vector<2x128xf32> to vector<2x32xf32>
    %716 = vector.extract_strided_slice %712 {offsets = [0, 96], sizes = [2, 32], strides = [1, 1]} : vector<2x128xf32> to vector<2x32xf32>
    %717 = arith.mulf %714, %673 : vector<2x32xf32>
    %718 = arith.mulf %713, %715 : vector<2x32xf32>
    %719 = arith.addf %717, %718 : vector<2x32xf32>
    %720 = math.tanh %719 : vector<2x32xf32>
    %721 = arith.mulf %716, %720 : vector<2x32xf32>
    %c0_166 = arith.constant 0 : index
    %c6_167 = arith.constant 6 : index
    %c0_168 = arith.constant 0 : index
    %722 = vector.load %arg21[%c0_166, %c6_167, %c0_168] : memref<2x8x64xf32, #tpu.memory_space<vmem>>, vector<2x1x32xf32>
    %723 = vector.shape_cast %722 : vector<2x1x32xf32> to vector<2x32xf32>
    %724 = vector.shape_cast %701 : vector<2x32xf32> to vector<2x1x32xf32>
    tpu.vector_store %arg21[%c0_166, %c6_167, %c0_168], %724 {strides = array<i32>} : memref<2x8x64xf32, #tpu.memory_space<vmem>>, vector<2x1x32xf32>,
    %c0_169 = arith.constant 0 : index
    %c1_170 = arith.constant 1 : index
    %c32_171 = arith.constant 32 : index
    %725 = vector.load %arg21[%c0_169, %c1_170, %c32_171] : memref<2x8x64xf32, #tpu.memory_space<vmem>>, vector<2x1x32xf32>
    %726 = vector.shape_cast %725 : vector<2x1x32xf32> to vector<2x32xf32>
    %727 = vector.shape_cast %721 : vector<2x32xf32> to vector<2x1x32xf32>
    tpu.vector_store %arg21[%c0_169, %c1_170, %c32_171], %727 {strides = array<i32>} : memref<2x8x64xf32, #tpu.memory_space<vmem>>, vector<2x1x32xf32>,
    %728 = vector.extract_strided_slice %398 {offsets = [0, 7, 0], sizes = [2, 1, 128], strides = [1, 1, 1]} : vector<2x8x128xf32> to vector<2x1x128xf32>
    %729 = vector.shape_cast %728 : vector<2x1x128xf32> to vector<2x128xf32>
    %cst_172 = arith.constant dense<0.000000e+00> : vector<2x128xf32>
    %730 = tpu.matmul %701, %400, %cst_172 {dimension_numbers = #tpu.dot_dimension_numbers<[1], [0], [0], [1], [0, 0, 1, 1], [], []>} : vector<2x32xf32>, vector<32x128xf32>, vector<2x128xf32> -> vector<2x128xf32>
    %731 = arith.addf %729, %730 : vector<2x128xf32>
    %732 = arith.negf %731 : vector<2x128xf32>
    %733 = math.exp %732 : vector<2x128xf32>
    %cst_173 = arith.constant 1.000000e+00 : f32
    %734 = vector.broadcast %cst_173 : f32 to vector<2x128xf32>
    %735 = arith.addf %734, %733 : vector<2x128xf32>
    %736 = arith.divf %734, %735 : vector<2x128xf32>
    %737 = math.tanh %731 : vector<2x128xf32>
    %738 = arith.select %5, %737, %736 : vector<2x128xi1>, vector<2x128xf32>
    %739 = vector.extract_strided_slice %738 {offsets = [0, 0], sizes = [2, 32], strides = [1, 1]} : vector<2x128xf32> to vector<2x32xf32>
    %740 = vector.extract_strided_slice %738 {offsets = [0, 32], sizes = [2, 32], strides = [1, 1]} : vector<2x128xf32> to vector<2x32xf32>
    %741 = vector.extract_strided_slice %738 {offsets = [0, 64], sizes = [2, 32], strides = [1, 1]} : vector<2x128xf32> to vector<2x32xf32>
    %742 = vector.extract_strided_slice %738 {offsets = [0, 96], sizes = [2, 32], strides = [1, 1]} : vector<2x128xf32> to vector<2x32xf32>
    %743 = arith.mulf %740, %699 : vector<2x32xf32>
    %744 = arith.mulf %739, %741 : vector<2x32xf32>
    %745 = arith.addf %743, %744 : vector<2x32xf32>
    %746 = math.tanh %745 : vector<2x32xf32>
    %747 = arith.mulf %742, %746 : vector<2x32xf32>
    %748 = vector.extract_strided_slice %399 {offsets = [0, 0, 0], sizes = [2, 1, 128], strides = [1, 1, 1]} : vector<2x8x128xf32> to vector<2x1x128xf32>
    %749 = vector.shape_cast %748 : vector<2x1x128xf32> to vector<2x128xf32>
    %cst_174 = arith.constant dense<0.000000e+00> : vector<2x128xf32>
    %750 = tpu.matmul %721, %401, %cst_174 {dimension_numbers = #tpu.dot_dimension_numbers<[1], [0], [0], [1], [0, 0, 1, 1], [], []>} : vector<2x32xf32>, vector<32x128xf32>, vector<2x128xf32> -> vector<2x128xf32>
    %751 = arith.addf %749, %750 : vector<2x128xf32>
    %752 = arith.negf %751 : vector<2x128xf32>
    %753 = math.exp %752 : vector<2x128xf32>
    %cst_175 = arith.constant 1.000000e+00 : f32
    %754 = vector.broadcast %cst_175 : f32 to vector<2x128xf32>
    %755 = arith.addf %754, %753 : vector<2x128xf32>
    %756 = arith.divf %754, %755 : vector<2x128xf32>
    %757 = math.tanh %751 : vector<2x128xf32>
    %758 = arith.select %5, %757, %756 : vector<2x128xi1>, vector<2x128xf32>
    %759 = vector.extract_strided_slice %758 {offsets = [0, 0], sizes = [2, 32], strides = [1, 1]} : vector<2x128xf32> to vector<2x32xf32>
    %760 = vector.extract_strided_slice %758 {offsets = [0, 32], sizes = [2, 32], strides = [1, 1]} : vector<2x128xf32> to vector<2x32xf32>
    %761 = vector.extract_strided_slice %758 {offsets = [0, 64], sizes = [2, 32], strides = [1, 1]} : vector<2x128xf32> to vector<2x32xf32>
    %762 = vector.extract_strided_slice %758 {offsets = [0, 96], sizes = [2, 32], strides = [1, 1]} : vector<2x128xf32> to vector<2x32xf32>
    %763 = arith.mulf %760, %719 : vector<2x32xf32>
    %764 = arith.mulf %759, %761 : vector<2x32xf32>
    %765 = arith.addf %763, %764 : vector<2x32xf32>
    %766 = math.tanh %765 : vector<2x32xf32>
    %767 = arith.mulf %762, %766 : vector<2x32xf32>
    %c0_176 = arith.constant 0 : index
    %c7_177 = arith.constant 7 : index
    %c0_178 = arith.constant 0 : index
    %768 = vector.load %arg21[%c0_176, %c7_177, %c0_178] : memref<2x8x64xf32, #tpu.memory_space<vmem>>, vector<2x1x32xf32>
    %769 = vector.shape_cast %768 : vector<2x1x32xf32> to vector<2x32xf32>
    %770 = vector.shape_cast %747 : vector<2x32xf32> to vector<2x1x32xf32>
    tpu.vector_store %arg21[%c0_176, %c7_177, %c0_178], %770 {strides = array<i32>} : memref<2x8x64xf32, #tpu.memory_space<vmem>>, vector<2x1x32xf32>,
    %c0_179 = arith.constant 0 : index
    %c0_180 = arith.constant 0 : index
    %c32_181 = arith.constant 32 : index
    %771 = vector.load %arg21[%c0_179, %c0_180, %c32_181] : memref<2x8x64xf32, #tpu.memory_space<vmem>>, vector<2x1x32xf32>
    %772 = vector.shape_cast %771 : vector<2x1x32xf32> to vector<2x32xf32>
    %773 = vector.shape_cast %767 : vector<2x32xf32> to vector<2x1x32xf32>
    tpu.vector_store %arg21[%c0_179, %c0_180, %c32_181], %773 {strides = array<i32>} : memref<2x8x64xf32, #tpu.memory_space<vmem>>, vector<2x1x32xf32>,
    %c0_182 = arith.constant 0 : index
    %c0_183 = arith.constant 0 : index
    %c0_184 = arith.constant 0 : index
    %774 = vector.load %arg21[%c0_182, %c0_183, %c0_184] : memref<2x8x64xf32, #tpu.memory_space<vmem>>, vector<2x8x64xf32>
    %cst_185 = arith.constant 0.000000e+00 : f32
    %775 = vector.broadcast %cst_185 : f32 to vector<2x8x64xf32>
    %776 = arith.maximumf %774, %775 : vector<2x8x64xf32>
    %c0_186 = arith.constant 0 : index
    %c0_187 = arith.constant 0 : index
    %777 = vector.load %arg9[%c0_186, %c0_187] : memref<1x64xf32, #tpu.memory_space<vmem>>, vector<1x64xf32>
    %778 = vector.shape_cast %777 : vector<1x64xf32> to vector<1x1x64xf32>
    %779 = vector.broadcast %778 : vector<1x1x64xf32> to vector<2x8x64xf32>
    %780 = arith.mulf %776, %779 : vector<2x8x64xf32>
    %cst_188 = arith.constant dense<0.000000e+00> : vector<2x8xf32>
    %781 = vector.multi_reduction <add>, %780, %cst_188 [2] : vector<2x8x64xf32> to vector<2x8xf32>
    %782 = vector.shape_cast %781 : vector<2x8xf32> to vector<2x8x1xf32>
    %c0_189 = arith.constant 0 : index
    %c0_190 = arith.constant 0 : index
    %783 = vector.load %arg10[%c0_189, %c0_190] : memref<1x1xf32, #tpu.memory_space<vmem>>, vector<1x1xf32>
    %784 = vector.shape_cast %783 : vector<1x1xf32> to vector<1x1x1xf32>
    %785 = vector.broadcast %784 : vector<1x1x1xf32> to vector<2x8x1xf32>
    %786 = arith.addf %782, %785 : vector<2x8x1xf32>
    %cst_191 = arith.constant dense<0xFF800000> : vector<2x1xf32>
    %787 = vector.multi_reduction <maximumf>, %786, %cst_191 [1] : vector<2x8x1xf32> to vector<2x1xf32>
    %788 = vector.shape_cast %787 : vector<2x1xf32> to vector<2x1x1xf32>
    %789 = vector.broadcast %788 : vector<2x1x1xf32> to vector<2x8x1xf32>
    %790 = arith.subf %786, %789 : vector<2x8x1xf32>
    %791 = math.exp %790 : vector<2x8x1xf32>
    %cst_192 = arith.constant dense<0.000000e+00> : vector<2x1xf32>
    %792 = vector.multi_reduction <add>, %791, %cst_192 [1] : vector<2x8x1xf32> to vector<2x1xf32>
    %793 = vector.shape_cast %792 : vector<2x1xf32> to vector<2x1x1xf32>
    %794 = vector.broadcast %793 : vector<2x1x1xf32> to vector<2x8x1xf32>
    %795 = arith.divf %791, %794 : vector<2x8x1xf32>
    %796 = vector.broadcast %795 : vector<2x8x1xf32> to vector<2x8x64xf32>
    %797 = arith.mulf %776, %796 : vector<2x8x64xf32>
    %cst_193 = arith.constant dense<0.000000e+00> : vector<2x64xf32>
    %798 = vector.multi_reduction <add>, %797, %cst_193 [1] : vector<2x8x64xf32> to vector<2x64xf32>
    %c0_194 = arith.constant 0 : index
    %c0_195 = arith.constant 0 : index
    %799 = vector.load %arg11[%c0_194, %c0_195] : memref<1x64xf32, #tpu.memory_space<vmem>>, vector<1x64xf32>
    %800 = vector.broadcast %799 : vector<1x64xf32> to vector<2x64xf32>
    %801 = arith.mulf %798, %800 : vector<2x64xf32>
    %c0_196 = arith.constant 0 : index
    %c0_197 = arith.constant 0 : index
    %802 = vector.load %arg12[%c0_196, %c0_197] : memref<1x64xf32, #tpu.memory_space<vmem>>, vector<1x64xf32>
    %803 = vector.broadcast %802 : vector<1x64xf32> to vector<2x64xf32>
    %804 = arith.addf %801, %803 : vector<2x64xf32>
    %c0_198 = arith.constant 0 : index
    %c0_199 = arith.constant 0 : index
    %805 = vector.load %arg13[%c0_198, %c0_199] : memref<64x32xf32, #tpu.memory_space<vmem>>, vector<64x32xf32>
    %cst_200 = arith.constant dense<0.000000e+00> : vector<2x32xf32>
    %806 = tpu.matmul %804, %805, %cst_200 {dimension_numbers = #tpu.dot_dimension_numbers<[1], [0], [0], [1], [0, 0, 1, 1], [], []>} : vector<2x64xf32>, vector<64x32xf32>, vector<2x32xf32> -> vector<2x32xf32>
    %c0_201 = arith.constant 0 : index
    %c0_202 = arith.constant 0 : index
    %807 = vector.load %arg14[%c0_201, %c0_202] : memref<1x32xf32, #tpu.memory_space<vmem>>, vector<1x32xf32>
    %808 = vector.broadcast %807 : vector<1x32xf32> to vector<2x32xf32>
    %809 = arith.addf %806, %808 : vector<2x32xf32>
    %cst_203 = arith.constant 0.000000e+00 : f32
    %810 = vector.broadcast %cst_203 : f32 to vector<2x32xf32>
    %811 = arith.maximumf %809, %810 : vector<2x32xf32>
    %c0_204 = arith.constant 0 : index
    %c0_205 = arith.constant 0 : index
    %812 = vector.load %arg15[%c0_204, %c0_205] : memref<1x32xf32, #tpu.memory_space<vmem>>, vector<1x32xf32>
    %813 = vector.broadcast %812 : vector<1x32xf32> to vector<2x32xf32>
    %814 = arith.mulf %811, %813 : vector<2x32xf32>
    %c0_206 = arith.constant 0 : index
    %c0_207 = arith.constant 0 : index
    %815 = vector.load %arg16[%c0_206, %c0_207] : memref<1x32xf32, #tpu.memory_space<vmem>>, vector<1x32xf32>
    %816 = vector.broadcast %815 : vector<1x32xf32> to vector<2x32xf32>
    %817 = arith.addf %814, %816 : vector<2x32xf32>
    %c0_208 = arith.constant 0 : index
    %c0_209 = arith.constant 0 : index
    %818 = vector.load %arg17[%c0_208, %c0_209] : memref<32x10xf32, #tpu.memory_space<vmem>>, vector<32x10xf32>
    %cst_210 = arith.constant dense<0.000000e+00> : vector<2x10xf32>
    %819 = tpu.matmul %817, %818, %cst_210 {dimension_numbers = #tpu.dot_dimension_numbers<[1], [0], [0], [1], [0, 0, 1, 1], [], []>} : vector<2x32xf32>, vector<32x10xf32>, vector<2x10xf32> -> vector<2x10xf32>
    %c0_211 = arith.constant 0 : index
    %c0_212 = arith.constant 0 : index
    %820 = vector.load %arg18[%c0_211, %c0_212] : memref<1x10xf32, #tpu.memory_space<vmem>>, vector<1x10xf32>
    %821 = vector.broadcast %820 : vector<1x10xf32> to vector<2x10xf32>
    %822 = arith.addf %819, %821 : vector<2x10xf32>
    %c0_213 = arith.constant 0 : index
    %c0_214 = arith.constant 0 : index
    %823 = vector.load %arg19[%c0_213, %c0_214] : memref<2x10xf32, #tpu.memory_space<vmem>>, vector<2x10xf32>
    tpu.vector_store %arg19[%c0_213, %c0_214], %822 {strides = array<i32>} : memref<2x10xf32, #tpu.memory_space<vmem>>, vector<2x10xf32>,
    return
  }
}

</mosaic_0001>

<bundles_post_ra>
// kernel: bilstm_attention_forward.1
= control target key start
LH: loop header
LB: loop body
LE: loop exit
PB: predicated region body
PF: predicated region fallthrough
CT: control target
= control target key end

     0   :  { %s9054_s0 = inlined_call_operand.vmem [shape: f32[2,8,16], index: 0, kind: input, shape index: {}]   ;;  %s9055_s1 = inlined_call_operand.vmem [shape: f32[16,256], index: 1, kind: input, shape index: {}]   ;;  %s9056_s2 = inlined_call_operand.hbm [shape: f32[1,256], index: 2, kind: input, shape index: {}]   ;;  %s9057_s3 = inlined_call_operand.vmem [shape: f32[32,128], index: 3, kind: input, shape index: {}]   ;;  %s9058_s4 = inlined_call_operand.vmem [shape: f32[32,128], index: 4, kind: input, shape index: {}]   ;;  %s9059_s5 = inlined_call_operand.vmem [shape: f32[64,256], index: 5, kind: input, shape index: {}]   ;;  %s9060_s6 = inlined_call_operand.hbm [shape: f32[1,256], index: 6, kind: input, shape index: {}]   ;;  %s9061_s7 = inlined_call_operand.vmem [shape: f32[32,128], index: 7, kind: input, shape index: {}]   ;;  %s9062_s8 = inlined_call_operand.hbm [shape: f32[32,128], index: 8, kind: input, shape index: {}]   ;;  %s9063_s9 = inlined_call_operand.vmem [shape: f32[1,64], index: 9, kind: input, shape index: {}]   ;;  %s9064_s10 = inlined_call_operand.<no memory space> [shape: f32[1,1], index: 10, kind: input, shape index: {}]   ;;  %s9065_s11 = inlined_call_operand.hbm [shape: f32[1,64], index: 11, kind: input, shape index: {}]   ;;  %s9066_s12 = inlined_call_operand.hbm [shape: f32[1,64], index: 12, kind: input, shape index: {}]   ;;  %s9067_s13 = inlined_call_operand.vmem [shape: f32[64,32], index: 13, kind: input, shape index: {}]   ;;  %s9068_s14 = inlined_call_operand.vmem [shape: f32[1,32], index: 14, kind: input, shape index: {}]   ;;  %s9069_s15 = inlined_call_operand.vmem [shape: f32[1,32], index: 15, kind: input, shape index: {}]   ;;  %s9070_s16 = inlined_call_operand.vmem [shape: f32[1,32], index: 16, kind: input, shape index: {}]   ;;  %s9071_s17 = inlined_call_operand.vmem [shape: f32[32,10], index: 17, kind: input, shape index: {}]   ;;  %s9072_s18 = inlined_call_operand.vmem [shape: f32[1,10], index: 18, kind: input, shape index: {}]   ;;  %s9073_s19 = inlined_call_operand.hbm [shape: f32[2,10], index: 19, kind: output, shape index: {}]  }
   0x1   :  { %9078 = sst [smem:[#allocation19_spill]] %s9054_s0  ;;  %v24_v0 = vstv %s9064_s10 }
   0x2   :  { %9079 = sst [smem:[#allocation20_spill]] %s9055_s1  ;;  %25 = vst [vmem:[#allocation4] sm:$0x1] %v24_v0 }
   0x3   :  { %9080 = sst [smem:[#allocation21_spill]] %s9056_s2 }
   0x4   :  { %9081 = sst [smem:[#allocation22_spill]] %s9057_s3 }
   0x5   :  { %26 = vsyncpa [#allocation6], 0 }
   0x6   :  { %27 = vsyncpa [#allocation9], 0 }
   0x7   :  { %28 = vsyncpa [#allocation12], 0 }
   0x8   :  { %29 = vsyncpa [#allocation7], 0  ;;  %s7404_s20 = smov [#allocation8]   ;;  %s7405_s1 = smov [#allocation11]  }
   0x9   :  { %s56_s21 = sshll.u32 %s7404_s20, 4  ;;  %s84_s22 = sshll.u32 %s7405_s1, 4  ;;  %s57_s21 = int_to_ptr.vmem [resolvable:$true] %s56_s21  ;;  %s85_s22 = int_to_ptr.vmem [resolvable:$true] %s84_s22 }
   0xa   :  { %s7264_s24 = scalar_lea.hbm %s9060_s6, 32 }
   0xb   :  { %p7265_p0 = scmp.ne.s32.totalorder %s9060_s6, %s7264_s24  ;;  %p7268_p1 = scmp.lt.u32.totalorder %s7264_s24, %s9060_s6 }
   0xd   :  { %p7270_p2 = pnand %p7268_p1, %p7265_p0 }
   0xf   :  { %7273 = shalt.err (!%p7270_p2)
}
  0x10   :  { %s7274_s27 = scalar_lea.vmem %s57_s21, 32  ;;  %p7279_p4 = scmp.lt.s32.totalorder %s57_s21, %s57_s21 }
  0x11   :  { %p7275_p3 = scmp.ne.s32.totalorder %s57_s21, %s7274_s27  ;;  %p7280_p5 = scmp.lt.s32.totalorder %s7274_s27, %s7274_s27 }
  0x13   :  { %p7281_p6 = por %p7280_p5, %p7279_p4 }
  0x15   :  { %p7282_p7 = pnand %p7281_p6, %p7275_p3 }
  0x17   :  { %7285 = shalt.err (!%p7282_p7)
}
  0x18   :  { %59 = dma.hbm_to_vmem [thread:$0]  %s9060_s6, 32, %s57_s21, [#allocation9]  }
  0x19   :  { %s7286_s20 = scalar_lea.hbm %s9065_s11, 16 }
  0x1a   :  { %p7287_p8 = scmp.ne.s32.totalorder %s9065_s11, %s7286_s20  ;;  %p7290_p9 = scmp.lt.u32.totalorder %s7286_s20, %s9065_s11 }
  0x1c   :  { %p7292_p10 = pnand %p7290_p9, %p7287_p8 }
  0x1e   :  { %7295 = shalt.err (!%p7292_p10)
}
  0x1f   :  { %s7296_s25 = scalar_lea.vmem %s85_s22, 16  ;;  %s7300_s3 = scalar_lea.vmem %s85_s22, 32 }
  0x20   :  { %p7297_p11 = scmp.ne.s32.totalorder %s85_s22, %s7296_s25  ;;  %p7301_p12 = scmp.lt.s32.totalorder %s85_s22, %s85_s22 }
  0x21   :  { %p7302_p13 = scmp.lt.s32.totalorder %s7300_s3, %s7296_s25 }
  0x23   :  { %p7303_p0 = por %p7302_p13, %p7301_p12 }
  0x25   :  { %p7304_p1 = pnand %p7303_p0, %p7297_p11 }
  0x27   :  { %7307 = shalt.err (!%p7304_p1)
}
  0x28   :  { %87 = dma.hbm_to_vmem [thread:$0]  %s9065_s11, 16, %s85_s22, [#allocation12]  }
  0x29   :  { %s7406_s10 = smov [#allocation5]   ;;  %s7407_s27 = smov [#allocation10]  }
  0x2a   :  { %s40_s26 = sshll.u32 %s7406_s10, 4  ;;  %s67_s28 = sshll.u32 %s7407_s27, 4  ;;  %s41_s26 = int_to_ptr.vmem [resolvable:$true] %s40_s26  ;;  %s7546_s28 = int_to_ptr.vmem [resolvable:$true] %s67_s28 }
  0x2b   :  { %s9082_s30 = sld [smem:[#allocation21_spill]] }
  0x31   :  { %s7308_s20 = scalar_lea.hbm %s9082_s30, 32 }
  0x32   :  { %p7309_p2 = scmp.ne.s32.totalorder %s9082_s30, %s7308_s20  ;;  %p7312_p3 = scmp.lt.u32.totalorder %s7308_s20, %s9082_s30 }
  0x34   :  { %p7314_p4 = pnand %p7312_p3, %p7309_p2 }
  0x36   :  { %7317 = shalt.err (!%p7314_p4)
}
  0x37   :  { %s7318_s11 = scalar_lea.vmem %s41_s26, 32  ;;  %p7323_p6 = scmp.lt.s32.totalorder %s41_s26, %s41_s26 }
  0x38   :  { %p7319_p5 = scmp.ne.s32.totalorder %s41_s26, %s7318_s11  ;;  %p7324_p7 = scmp.lt.s32.totalorder %s7318_s11, %s7318_s11 }
  0x3a   :  { %p7325_p8 = por %p7324_p7, %p7323_p6 }
  0x3c   :  { %p7326_p9 = pnand %p7325_p8, %p7319_p5 }
  0x3e   :  { %7329 = shalt.err (!%p7326_p9)
}
  0x3f   :  { %43 = dma.hbm_to_vmem [thread:$0]  %s9082_s30, 32, %s41_s26, [#allocation6]  }
  0x40   :  { %s7330_s21 = scalar_lea.hbm %s9062_s8, 512 }
  0x41   :  { %p7331_p10 = scmp.ne.s32.totalorder %s9062_s8, %s7330_s21  ;;  %p7334_p11 = scmp.lt.u32.totalorder %s7330_s21, %s9062_s8 }
  0x43   :  { %p7336_p12 = pnand %p7334_p11, %p7331_p10 }
  0x45   :  { %7339 = shalt.err (!%p7336_p12)
}
  0x46   :  { %s7340_s20 = scalar_lea.vmem %s7546_s28, 512  ;;  %p7345_p0 = scmp.lt.s32.totalorder %s7546_s28, %s7546_s28 }
  0x47   :  { %p7341_p13 = scmp.ne.s32.totalorder %s7546_s28, %s7340_s20  ;;  %p7346_p1 = scmp.lt.s32.totalorder %s7340_s20, %s7340_s20 }
  0x49   :  { %p7347_p2 = por %p7346_p1, %p7345_p0 }
  0x4b   :  { %p7348_p3 = pnand %p7347_p2, %p7341_p13 }
  0x4d   :  { %7351 = shalt.err (!%p7348_p3)
}
  0x4e   :  { %s7408_s26 = smov 128   ;;  %s7409_s30 = smov 8  }
  0x4f   :  { %73 = dma.hbm_to_vmem [thread:$0]  %s9062_s8, 512, %s7546_s28, [#allocation9], %s7408_s26, %s7408_s26, %s7409_s30  }
  0x50   :  { %s7410_s23 = smov [#allocation13]   ;;  %s7352_s25 = scalar_lea.hbm %s9066_s12, 16 }
  0x51   :  { %s94_s24 = sshll.u32 %s7410_s23, 4  ;;  %p7353_p4 = scmp.ne.s32.totalorder %s9066_s12, %s7352_s25  ;;  %s95_s24 = int_to_ptr.vmem [resolvable:$true] %s94_s24 }
  0x52   :  { %p7356_p5 = scmp.lt.u32.totalorder %s7352_s25, %s9066_s12 }
  0x54   :  { %p7358_p6 = pnand %p7356_p5, %p7353_p4 }
  0x56   :  { %7361 = shalt.err (!%p7358_p6)
}
  0x57   :  { %s7362_s27 = scalar_lea.vmem %s95_s24, 16  ;;  %s7366_s8 = scalar_lea.vmem %s95_s24, 32 }
  0x58   :  { %p7363_p7 = scmp.ne.s32.totalorder %s95_s24, %s7362_s27  ;;  %p7367_p8 = scmp.lt.s32.totalorder %s95_s24, %s95_s24 }
  0x59   :  { %p7368_p9 = scmp.lt.s32.totalorder %s7366_s8, %s7362_s27 }
  0x5b   :  { %p7369_p10 = por %p7368_p9, %p7367_p8 }
  0x5d   :  { %p7370_p11 = pnand %p7369_p10, %p7363_p7 }
  0x5f   :  { %7373 = shalt.err (!%p7370_p11)
}
  0x60   :  { %97 = dma.hbm_to_vmem [thread:$0]  %s9066_s12, 16, %s95_s24, [#allocation12]  }
  0x61   :  { %7396 = dma.done.wait [#allocation6], 32  }
  0x62   :  { %7397 = vsyncadd [#allocation6], 4294967264 }
  0x63   :  { %7398 = dma.done.wait [#allocation9], 544  }
  0x64   :  { %7399 = vsyncadd [#allocation9], 4294966752 }
  0x65   :  { %7400 = dma.done.wait [#allocation12], 32  }
  0x66   :  { %7401 = vsyncadd [#allocation12], 4294967264  ;;  %v7411_v1 = vmov 0.0|0.0   ;;  %v7412_v2 = vmov 0.0   ;;  %vm7413_vm0 = vmmov 0   ;;  %s9083_s26 = sld [smem:[#allocation20_spill]]  ;;  %v125_v23 = vlaneseq }
  0x67   :  { %6565 = vmatprep.subr.bf16.mxu1 %v7411_v1  ;;  %219 = vmatprep.mubr.f32.mxu0 %v7412_v2  ;;  %s9084_s23 = sld [smem:[#allocation22_spill]]  ;;  %v236_v14 = vld [vmem:[%s9058_s4] sm:$0xff]  ;;  %v237_v15 = vld [vmem:[%s9058_s4 + $0x8] sm:$0xff]  ;;  %s9085_s30 = sld [smem:[#allocation19_spill]]  ;;  %vm148_vm1 = vcmask 130048   ;;  %v238_v19 = vld [vmem:[%s9058_s4 + $0x10] sm:$0xff] }
  0x68   :  { %6187 = vmatprep.mubr.msk.f32.mxu1 %vm7413_vm0, %v7412_v2  ;;  %v7631_v18 = vpack.c.bf16 %v237_v15, %v236_v14  ;;  %v239_v20 = vld [vmem:[%s9058_s4 + $0x18] sm:$0xff]  ;;  %v7671_v24 = vshrl.u32 %v125_v23, 7  ;;  %v136_v26 = vld [vmem:[#allocation5] sm:$0x3]  ;;  %v126_v61 = vand.u32 127, %v125_v23  ;;  %vm337_vm4 = vcmask 1041409  }
  0x69   :  { %v7647_v22 = vpack.c.bf16 %v239_v20, %v238_v19  ;;  %s7414_s4 = smov 64   ;;  %s7415_s25 = smov 32   ;;  %vm240_vm6 = vcmask 261120   ;;  %vm521_vm7 = vcmask 253952   ;;  %vm561_vm8 = vcmask 516352  }
  0x6a   :  { %v7674_v25 = vsub.s32 0, %v7671_v24  ;;  %v144_v29 = vsub.s32 1, %v7671_v24  ;;  %vm127_vm2 = vcmp.ge.s32.totalorder %v126_v61, 64  ;;  %vm128_vm3 = vcmp.lt.s32.totalorder %v126_v61, 96 }
  0x6b   :  { %vm7692_vm5 = vmand %vm127_vm2, %vm128_vm3  ;;  %vm2881_vm9 = vcmask 523264   ;;  %vm5605_vm10 = vcmask 7168   ;;  %vm5880_vm11 = vcmask 74752  }
  0x6c   :  { %v133_v3 = vld [vmem:[%s9083_s26 + $0x8] sm:$0xff]  ;;  %v135_v4 = vld [vmem:[%s9083_s26 + $0x18] sm:$0xff]  ;;  %v132_v8 = vld [vmem:[%s9083_s26] sm:$0xff]  ;;  %v141_v27 = vrot.slane %v136_v26, %v7674_v25  ;;  %v145_v32 = vrot.slane %v136_v26, %v144_v29 }
  0x6d   :  { %v232_v5 = vld [vmem:[%s9084_s23] sm:$0xff]  ;;  %v6561_v6 = vpack.c.bf16 %v135_v4, %v133_v3  ;;  %v233_v7 = vld [vmem:[%s9084_s23 + $0x8] sm:$0xff]  ;;  %v134_v9 = vld [vmem:[%s9083_s26 + $0x10] sm:$0xff] }
  0x6e   :  { %v7611_v10 = vpack.c.bf16 %v233_v7, %v232_v5  ;;  %v6563_v11 = vpack.c.bf16 %v134_v9, %v132_v8  ;;  %v234_v12 = vld [vmem:[%s9084_s23 + $0x10] sm:$0xff]  ;;  %v235_v13 = vld [vmem:[%s9084_s23 + $0x18] sm:$0xff]  ;;  %v130_v16 = vld [vmem:[%s9085_s30] sm:$0xff] }
  0x6f   :  { %6562 = vmatprep.subr.bf16.mxu0 %v6561_v6  ;;  %v7629_v17 = vpack.c.bf16 %v235_v13, %v234_v12  ;;  %v131_v21 = vld [vmem:[%s9085_s30 + $0x8] sm:$0xff] }
  0x70   :  { %6567 = vmatpush3.bf16.msra.mxu1 %v7611_v10  ;;  %6564 = vmatpush1.bf16.msra.mxu0 %v6563_v11 }
  0x71   :  { %6568 = vmatprep.subr.bf16.mxu1 %v7411_v1  ;;  %6571 = vmatprep.subr.bf16.mxu0 %v7411_v1 }
  0x73   :  { %5899 = vmatmul.mubr.msk.f32.vlgmr.msra.gmra.mrb[0].mxu0 %vm148_vm1, %v130_v16 }
  0x74   :  { %6570 = vmatpush3.bf16.msra.mxu1 %v7629_v17  ;;  %6573 = vmatpush3.bf16.msra.mxu0 %v7631_v18 }
  0x75   :  { %225 = vmatprep.mubr.f32.mxu0 %v7412_v2  ;;  %6574 = vmatprep.subr.bf16.mxu0 %v7411_v1 }
  0x76   :  { %6577 = vmatprep.subr.bf16.mxu1 %v7411_v1 }
  0x77   :  { %6188 = vmatmul.mubr.f32.vlgmr.msra.gmra.mrb[0].mxu1 %v7412_v2  ;;  %5900 = vmatmul.mubr.msk.f32.gmra.mrb[2].mxu0 %vm148_vm1, %v131_v21 }
  0x78   :  { %6576 = vmatpush3.bf16.msra.mxu0 %v7647_v22  ;;  %6198 = vmatprep.mubr.msk.f32.mxu0 %vm7413_vm0, %v7412_v2 }
  0x79   :  { %6579 = vmatpush3.bf16.msra.mxu1 %v7611_v10  ;;  %6583 = vmatprep.subr.bf16.mxu0 %v7411_v1 }
  0x7a   :  { %6580 = vmatprep.subr.bf16.mxu1 %v7411_v1  ;;  %6209 = vmatprep.mubr.msk.f32.mxu1 %vm7413_vm0, %v7412_v2 }
  0x7b   :  { %6199 = vmatmul.mubr.f32.vlgmr.msra.gmra.mrb[4].mxu0 %v7412_v2 }
  0x7c   :  { %6585 = vmatpush3.bf16.msra.mxu0 %v7631_v18  ;;  %6220 = vmatprep.mubr.msk.f32.mxu0 %vm7413_vm0, %v7412_v2 }
  0x7d   :  { %6582 = vmatpush3.bf16.msra.mxu1 %v7629_v17  ;;  %6586 = vmatprep.subr.bf16.mxu0 %v7411_v1 }
  0x7e   :  { %6589 = vmatprep.subr.bf16.mxu1 %v7411_v1 }
  0x80   :  { %6588 = vmatpush3.bf16.msra.mxu0 %v7647_v22 }
  0x81   :  { %6595 = vmatprep.subr.bf16.mxu0 %v7411_v1 }
 0x146   :  { %v221_v28 = vpop.f32.mrb[0].mxu0 }
 0x147   :  { %v7678_v30 = vadd.f32 %v221_v28, %v141_v27  ;;  %v223_v31 = vpop.f32.mrb[1].mxu0 }
 0x148   :  { %v7686_v42 = vadd.f32 %v223_v31, %v145_v32 }
 0x14a   :  { %v310_v33 = vpop.f32.mrb[0].mxu1  ;;  %v227_v34 = vpop.f32.mrb[2].mxu0 }
 0x14b   :  { %v315_v35 = vrot.slane %v310_v33, 1  ;;  %v318_v36 = vadd.f32 %v310_v33, %v7678_v30  ;;  %v7683_v37 = vadd.f32 %v227_v34, %v141_v27  ;;  %v229_v38 = vpop.f32.mrb[3].mxu0  ;;  %v6189_v39 = vpop.f32.mrb[1].mxu1 }
 0x14c   :  { %v7688_v43 = vadd.f32 %v229_v38, %v145_v32 }
 0x14d   :  { %v5901_v40 = vmul.f32 -1.442695, %v318_v36  ;;  %v319_v41 = vadd.f32 %v315_v35, %v7683_v37 }
 0x14e   :  { %v429_v44 = vpop.f32.mrb[4].mxu0 }
 0x14f   :  { %6808 = vpow2.f32 %v5901_v40  ;;  %v434_v45 = vrot.slane %v429_v44, 1  ;;  %v435_v46 = vrot.slane %v429_v44, 2  ;;  %v6200_v47 = vpop.f32.mrb[5].mxu0  ;;  %v5902_v48 = vmul.f32 -1.442695, %v319_v41 }
 0x151   :  { %v438_v49 = vadd.f32 %v434_v45, %v7686_v42  ;;  %v439_v50 = vadd.f32 %v435_v46, %v7688_v43  ;;  %6810 = vpow2.f32 %v5902_v48 }
 0x153   :  { %v5903_v51 = vmul.f32 -1.442695, %v438_v49  ;;  %v5904_v52 = vmul.f32 -1.442695, %v439_v50 }
 0x155   :  { %6812 = vpow2.f32 %v5903_v51 }
 0x156   :  { %6814 = vpow2.f32 %v5904_v52 }
 0x157   :  { %6816 = vtanh.f32 %v319_v41 }
 0x158   :  { %6818 = vtanh.f32 %v318_v36 }
 0x159   :  { %v6809_v53 = vpop.eup %6808  ;;  %6820 = vtanh.f32 %v438_v49 }
 0x15a   :  { %v326_v55 = vadd.f32 1.0, %v6809_v53 }
 0x15b   :  { %v6811_v54 = vpop.eup %6810 }
 0x15c   :  { %v327_v56 = vadd.f32 1.0, %v6811_v54 }
 0x15e   :  { %6822 = vrcp.f32 %v327_v56 }
 0x15f   :  { %v6813_v57 = vpop.eup %6812  ;;  %6824 = vtanh.f32 %v439_v50 }
 0x160   :  { %v6815_v58 = vpop.eup %6814  ;;  %6826 = vrcp.f32 %v326_v55  ;;  %v446_v59 = vadd.f32 1.0, %v6813_v57 }
 0x161   :  { %v447_v60 = vadd.f32 1.0, %v6815_v58  ;;  %v6817_v62 = vpop.eup %6816 }
 0x162   :  { %6828 = vrcp.f32 %v446_v59  ;;  %v6819_v63 = vpop.eup %6818  ;;  %v336_v3 = vrot.slane %v6817_v62, 7 }
 0x163   :  { %6830 = vrcp.f32 %v447_v60  ;;  %v6821_v0 = vpop.eup %6820 }
 0x164   :  { %v338_v9 = vsel %vm337_vm4, %v336_v3, %v6819_v63  ;;  %v456_v13 = vrot.slane %v6821_v0, 7 }
 0x168   :  { %v6823_v4 = vpop.eup %6822 }
 0x169   :  { %v6825_v5 = vpop.eup %6824  ;;  %v342_v7 = vrot.slane %v6823_v4, 7 }
 0x16a   :  { %v6827_v8 = vpop.eup %6826  ;;  %v457_v14 = vrot.slane %v6825_v5, 6 }
 0x16b   :  { %v343_v11 = vsel %vm337_vm4, %v342_v7, %v6827_v8 }
 0x16c   :  { %v6829_v12 = vpop.eup %6828  ;;  %v345_v15 = vsel %vm7692_vm5, %v338_v9, %v343_v11  ;;  %v458_v21 = vsel %vm337_vm4, %v457_v14, %v456_v13 }
 0x16d   :  { %v6831_v16 = vpop.eup %6830  ;;  %348 = vrot.lane.b32.xlu0 %v345_v15, %s7414_s4  ;;  %v462_v19 = vrot.slane %v6829_v12, 7  ;;  %v346_v33 = vmul.f32 0.0, %v345_v15 }
 0x16e   :  { %v463_v20 = vrot.slane %v6831_v16, 6 }
 0x170   :  { %v464_v23 = vsel %vm337_vm4, %v463_v20, %v462_v19 }
 0x171   :  { %v466_v26 = vsel %vm7692_vm5, %v458_v21, %v464_v23 }
 0x172   :  { %469 = vrot.lane.b32.xlu0 %v466_v26, %s7414_s4  ;;  %v467_v36 = vmul.f32 0.0, %v466_v26 }
 0x1df   :  { %v349_v27 = vpop.permute.xlu0 %348 }
 0x1e0   :  { %v351_v28 = vmul.f32 %v349_v27, %v345_v15 }
 0x1e2   :  { %353 = vrot.lane.b32.xlu1 %v351_v28, %s7415_s25 }
 0x1e4   :  { %v470_v31 = vpop.permute.xlu0 %469 }
 0x1e5   :  { %v472_v32 = vmul.f32 %v470_v31, %v466_v26 }
 0x1e7   :  { %474 = vrot.lane.b32.xlu1 %v472_v32, %s7415_s25 }
 0x254   :  { %v354_v34 = vpop.permute.xlu1 %353 }
 0x255   :  { %v7708_v35 = vadd.f32 %v354_v34, %v346_v33 }
 0x257   :  { %6832 = vtanh.f32 %v7708_v35 }
 0x259   :  { %v475_v38 = vpop.permute.xlu1 %474 }
 0x25a   :  { %v7711_v39 = vadd.f32 %v475_v38, %v467_v36 }
 0x25c   :  { %6834 = vtanh.f32 %v7711_v39 }
 0x261   :  { %v6833_v40 = vpop.eup %6832 }
 0x262   :  { %359 = vrot.lane.b32.xlu0 %v6833_v40, %s7414_s4 }
 0x266   :  { %v6835_v41 = vpop.eup %6834 }
 0x267   :  { %480 = vrot.lane.b32.xlu1 %v6835_v41, %s7414_s4 }
 0x2d4   :  { %v360_v44 = vpop.permute.xlu0 %359 }
 0x2d5   :  { %v7716_v45 = vmul.f32 %v360_v44, %v345_v15 }
 0x2d7   :  { %564 = vrot.lane.b32.xlu0 %v7716_v45, %s7415_s25 }
 0x2d9   :  { %v481_v46 = vpop.permute.xlu1 %480 }
 0x2da   :  { %v7720_v47 = vmul.f32 %v481_v46, %v466_v26 }
 0x2dc   :  { %686 = vrot.lane.b32.xlu1 %v7720_v47, %s7415_s25 }
 0x349   :  { %v565_v48 = vpop.permute.xlu0 %564 }
 0x34a   :  { %6210 = vmatmul.mubr.msk.f32.vlgmr.msra.gmra.mrb[2].mxu1 %vm240_vm6, %v565_v48 }
 0x34b   :  { %6591 = vmatpush3.bf16.msra.mxu1 %v7611_v10  ;;  %6231 = vmatprep.mubr.msk.f32.mxu1 %vm7413_vm0, %v7412_v2 }
 0x34c   :  { %6592 = vmatprep.subr.bf16.mxu1 %v7411_v1 }
 0x34e   :  { %v687_v49 = vpop.permute.xlu1 %686 }
 0x34f   :  { %6221 = vmatmul.mubr.msk.f32.vlgmr.msra.gmra.mrb[6].mxu0 %vm240_vm6, %v687_v49  ;;  %6594 = vmatpush3.bf16.msra.mxu1 %v7629_v17 }
 0x350   :  { %6597 = vmatpush3.bf16.msra.mxu0 %v7631_v18  ;;  %6242 = vmatprep.mubr.msk.f32.mxu0 %vm7413_vm0, %v7412_v2 }
 0x351   :  { %6598 = vmatprep.subr.bf16.mxu0 %v7411_v1  ;;  %6601 = vmatprep.subr.bf16.mxu1 %v7411_v1 }
 0x354   :  { %6600 = vmatpush3.bf16.msra.mxu0 %v7647_v22 }
 0x355   :  { %6607 = vmatprep.subr.bf16.mxu0 %v7411_v1 }
 0x41d   :  { %v634_v50 = vpop.f32.mrb[2].mxu1 }
 0x41e   :  { %v639_v51 = vrot.slane %v634_v50, 7  ;;  %v643_v52 = vadd.f32 %v634_v50, %v7683_v37  ;;  %v6211_v53 = vpop.f32.mrb[3].mxu1 }
 0x420   :  { %v642_v54 = vadd.f32 %v639_v51, %v7678_v30  ;;  %v5907_v55 = vmul.f32 -1.442695, %v643_v52 }
 0x422   :  { %v5906_v56 = vmul.f32 -1.442695, %v642_v54  ;;  %6836 = vpow2.f32 %v5907_v55  ;;  %v756_v57 = vpop.f32.mrb[6].mxu0 }
 0x423   :  { %v761_v58 = vrot.slane %v756_v57, 2  ;;  %v762_v59 = vrot.slane %v756_v57, 3  ;;  %v6222_v60 = vpop.f32.mrb[7].mxu0 }
 0x424   :  { %6838 = vpow2.f32 %v5906_v56 }
 0x425   :  { %v765_v61 = vadd.f32 %v761_v58, %v7686_v42  ;;  %v766_v62 = vadd.f32 %v762_v59, %v7688_v43 }
 0x427   :  { %v5909_v63 = vmul.f32 -1.442695, %v765_v61  ;;  %v5910_v0 = vmul.f32 -1.442695, %v766_v62 }
 0x429   :  { %6840 = vpow2.f32 %v5909_v63 }
 0x42a   :  { %6842 = vpow2.f32 %v5910_v0 }
 0x42b   :  { %6844 = vtanh.f32 %v642_v54 }
 0x42c   :  { %v6837_v3 = vpop.eup %6836  ;;  %6846 = vtanh.f32 %v643_v52 }
 0x42d   :  { %v651_v7 = vadd.f32 1.0, %v6837_v3  ;;  %6848 = vtanh.f32 %v765_v61 }
 0x42e   :  { %v6839_v4 = vpop.eup %6838 }
 0x42f   :  { %v650_v5 = vadd.f32 1.0, %v6839_v4 }
 0x431   :  { %6850 = vrcp.f32 %v650_v5 }
 0x432   :  { %6852 = vtanh.f32 %v766_v62 }
 0x433   :  { %v6841_v8 = vpop.eup %6840  ;;  %6854 = vrcp.f32 %v651_v7 }
 0x434   :  { %v6843_v9 = vpop.eup %6842  ;;  %v773_v11 = vadd.f32 1.0, %v6841_v8 }
 0x435   :  { %v774_v12 = vadd.f32 1.0, %v6843_v9  ;;  %v6845_v13 = vpop.eup %6844 }
 0x436   :  { %6856 = vrcp.f32 %v773_v11  ;;  %v6847_v14 = vpop.eup %6846  ;;  %v660_v16 = vrot.slane %v6845_v13, 1 }
 0x437   :  { %6858 = vrcp.f32 %v774_v12  ;;  %v6849_v15 = vpop.eup %6848 }
 0x438   :  { %v661_v26 = vsel %vm337_vm4, %v6847_v14, %v660_v16  ;;  %v783_v32 = vrot.slane %v6849_v15, 6 }
 0x43b   :  { %v6851_v19 = vpop.eup %6850 }
 0x43c   :  { %v6853_v20 = vpop.eup %6852  ;;  %v665_v21 = vrot.slane %v6851_v19, 1 }
 0x43d   :  { %v6855_v23 = vpop.eup %6854  ;;  %v784_v33 = vrot.slane %v6853_v20, 5 }
 0x43e   :  { %v666_v27 = vsel %vm337_vm4, %v6855_v23, %v665_v21 }
 0x43f   :  { %v668_v28 = vsel %vm7692_vm5, %v661_v26, %v666_v27  ;;  %v785_v40 = vsel %vm337_vm4, %v784_v33, %v783_v32 }
 0x440   :  { %v6857_v31 = vpop.eup %6856  ;;  %671 = vrot.lane.b32.xlu0 %v668_v28, %s7414_s4  ;;  %v669_v51 = vmul.f32 %v668_v28, %v7708_v35 }
 0x441   :  { %v6859_v34 = vpop.eup %6858  ;;  %v789_v36 = vrot.slane %v6857_v31, 6 }
 0x442   :  { %v790_v38 = vrot.slane %v6859_v34, 5 }
 0x444   :  { %v791_v41 = vsel %vm337_vm4, %v790_v38, %v789_v36 }
 0x445   :  { %v793_v44 = vsel %vm7692_vm5, %v785_v40, %v791_v41 }
 0x446   :  { %796 = vrot.lane.b32.xlu1 %v793_v44, %s7414_s4  ;;  %v794_v54 = vmul.f32 %v793_v44, %v7711_v39 }
 0x4b2   :  { %v672_v46 = vpop.permute.xlu0 %671 }
 0x4b3   :  { %v674_v48 = vmul.f32 %v672_v46, %v668_v28 }
 0x4b5   :  { %676 = vrot.lane.b32.xlu0 %v674_v48, %s7415_s25 }
 0x4b8   :  { %v797_v49 = vpop.permute.xlu1 %796 }
 0x4b9   :  { %v799_v50 = vmul.f32 %v797_v49, %v793_v44 }
 0x4bb   :  { %801 = vrot.lane.b32.xlu1 %v799_v50, %s7415_s25 }
 0x527   :  { %v677_v52 = vpop.permute.xlu0 %676 }
 0x528   :  { %v7755_v53 = vadd.f32 %v677_v52, %v669_v51 }
 0x52a   :  { %6860 = vtanh.f32 %v7755_v53 }
 0x52d   :  { %v802_v55 = vpop.permute.xlu1 %801 }
 0x52e   :  { %v7759_v56 = vadd.f32 %v802_v55, %v794_v54 }
 0x530   :  { %6862 = vtanh.f32 %v7759_v56 }
 0x534   :  { %v6861_v57 = vpop.eup %6860 }
 0x535   :  { %682 = vrot.lane.b32.xlu0 %v6861_v57, %s7414_s4 }
 0x53a   :  { %v6863_v58 = vpop.eup %6862 }
 0x53b   :  { %807 = vrot.lane.b32.xlu1 %v6863_v58, %s7414_s4 }
 0x5a7   :  { %v683_v59 = vpop.permute.xlu0 %682 }
 0x5a8   :  { %v7764_v35 = vmul.f32 %v683_v59, %v668_v28 }
 0x5aa   :  { %889 = vrot.lane.b32.xlu0 %v7764_v35, %s7415_s25 }
 0x5ad   :  { %v808_v60 = vpop.permute.xlu1 %807 }
 0x5ae   :  { %v7768_v61 = vmul.f32 %v808_v60, %v793_v44 }
 0x5b0   :  { %1014 = vrot.lane.b32.xlu1 %v7768_v61, %s7415_s25 }
 0x61c   :  { %v890_v39 = vpop.permute.xlu0 %889 }
 0x61d   :  { %6232 = vmatmul.mubr.msk.f32.vlgmr.msra.gmra.mrb[4].mxu1 %vm240_vm6, %v890_v39 }
 0x61e   :  { %6603 = vmatpush3.bf16.msra.mxu1 %v7611_v10  ;;  %6253 = vmatprep.mubr.msk.f32.mxu1 %vm7413_vm0, %v7412_v2 }
 0x61f   :  { %6604 = vmatprep.subr.bf16.mxu1 %v7411_v1 }
 0x622   :  { %v1015_v62 = vpop.permute.xlu1 %1014  ;;  %6606 = vmatpush3.bf16.msra.mxu1 %v7629_v17 }
 0x623   :  { %6243 = vmatmul.mubr.msk.f32.vlgmr.msra.gmra.mrb[8].mxu0 %vm240_vm6, %v1015_v62  ;;  %6613 = vmatprep.subr.bf16.mxu1 %v7411_v1 }
 0x624   :  { %6609 = vmatpush3.bf16.msra.mxu0 %v7631_v18  ;;  %6264 = vmatprep.mubr.msk.f32.mxu0 %vm7413_vm0, %v7412_v2 }
 0x625   :  { %6610 = vmatprep.subr.bf16.mxu0 %v7411_v1 }
 0x628   :  { %6612 = vmatpush3.bf16.msra.mxu0 %v7647_v22 }
 0x629   :  { %6619 = vmatprep.subr.bf16.mxu0 %v7411_v1 }
 0x6f0   :  { %v959_v63 = vpop.f32.mrb[4].mxu1 }
 0x6f1   :  { %v964_v0 = vrot.slane %v959_v63, 6  ;;  %v965_v3 = vrot.slane %v959_v63, 7  ;;  %v6233_v4 = vpop.f32.mrb[5].mxu1 }
 0x6f3   :  { %v968_v5 = vadd.f32 %v964_v0, %v7678_v30  ;;  %v969_v7 = vadd.f32 %v965_v3, %v7683_v37 }
 0x6f5   :  { %v5912_v8 = vmul.f32 -1.442695, %v968_v5  ;;  %v5913_v9 = vmul.f32 -1.442695, %v969_v7 }
 0x6f6   :  { %v1084_v11 = vpop.f32.mrb[8].mxu0 }
 0x6f7   :  { %6864 = vpow2.f32 %v5912_v8  ;;  %v1089_v12 = vrot.slane %v1084_v11, 3  ;;  %v1090_v13 = vrot.slane %v1084_v11, 4  ;;  %v6244_v14 = vpop.f32.mrb[9].mxu0 }
 0x6f8   :  { %6866 = vpow2.f32 %v5913_v9 }
 0x6f9   :  { %v1093_v15 = vadd.f32 %v1089_v12, %v7686_v42  ;;  %v1094_v16 = vadd.f32 %v1090_v13, %v7688_v43 }
 0x6fb   :  { %v5915_v19 = vmul.f32 -1.442695, %v1093_v15  ;;  %v5916_v20 = vmul.f32 -1.442695, %v1094_v16 }
 0x6fd   :  { %6868 = vpow2.f32 %v5915_v19 }
 0x6fe   :  { %6870 = vpow2.f32 %v5916_v20 }
 0x6ff   :  { %6872 = vtanh.f32 %v968_v5 }
 0x700   :  { %6874 = vtanh.f32 %v969_v7 }
 0x701   :  { %v6865_v21 = vpop.eup %6864 }
 0x702   :  { %v6867_v23 = vpop.eup %6866  ;;  %v976_v26 = vadd.f32 1.0, %v6865_v21 }
 0x703   :  { %v977_v27 = vadd.f32 1.0, %v6867_v23 }
 0x704   :  { %6876 = vrcp.f32 %v976_v26 }
 0x705   :  { %6878 = vrcp.f32 %v977_v27 }
 0x706   :  { %6880 = vtanh.f32 %v1093_v15 }
 0x707   :  { %v6869_v28 = vpop.eup %6868  ;;  %6882 = vtanh.f32 %v1094_v16 }
 0x708   :  { %v6871_v31 = vpop.eup %6870  ;;  %v1101_v32 = vadd.f32 1.0, %v6869_v28 }
 0x709   :  { %v1102_v33 = vadd.f32 1.0, %v6871_v31  ;;  %v6873_v34 = vpop.eup %6872 }
 0x70a   :  { %6884 = vrcp.f32 %v1101_v32  ;;  %v6875_v36 = vpop.eup %6874  ;;  %v986_v40 = vrot.slane %v6873_v34, 2 }
 0x70b   :  { %6886 = vrcp.f32 %v1102_v33  ;;  %v987_v41 = vrot.slane %v6875_v36, 1 }
 0x70d   :  { %v988_v51 = vsel %vm337_vm4, %v987_v41, %v986_v40 }
 0x70e   :  { %v6877_v38 = vpop.eup %6876 }
 0x70f   :  { %v6879_v44 = vpop.eup %6878  ;;  %v992_v46 = vrot.slane %v6877_v38, 2 }
 0x710   :  { %v6881_v48 = vpop.eup %6880  ;;  %v993_v49 = vrot.slane %v6879_v44, 1 }
 0x711   :  { %v6883_v50 = vpop.eup %6882  ;;  %v1111_v57 = vrot.slane %v6881_v48, 5 }
 0x712   :  { %v994_v52 = vsel %vm337_vm4, %v993_v49, %v992_v46  ;;  %v1112_v58 = vrot.slane %v6883_v50, 4 }
 0x713   :  { %v996_v54 = vsel %vm7692_vm5, %v988_v51, %v994_v52 }
 0x714   :  { %v6885_v55 = vpop.eup %6884  ;;  %999 = vrot.lane.b32.xlu0 %v996_v54, %s7414_s4  ;;  %v1113_v62 = vsel %vm337_vm4, %v1112_v58, %v1111_v57  ;;  %v997_v8 = vmul.f32 %v996_v54, %v7755_v53 }
 0x715   :  { %v6887_v59 = vpop.eup %6886  ;;  %v1117_v60 = vrot.slane %v6885_v55, 5 }
 0x716   :  { %v1118_v39 = vrot.slane %v6887_v59, 4 }
 0x718   :  { %v1119_v63 = vsel %vm337_vm4, %v1118_v39, %v1117_v60 }
 0x719   :  { %v1121_v0 = vsel %vm7692_vm5, %v1113_v62, %v1119_v63 }
 0x71a   :  { %1124 = vrot.lane.b32.xlu1 %v1121_v0, %s7414_s4  ;;  %v1122_v12 = vmul.f32 %v1121_v0, %v7759_v56 }
 0x786   :  { %v1000_v3 = vpop.permute.xlu0 %999 }
 0x787   :  { %v1002_v4 = vmul.f32 %v1000_v3, %v996_v54 }
 0x789   :  { %1004 = vrot.lane.b32.xlu0 %v1002_v4, %s7415_s25 }
 0x78c   :  { %v1125_v5 = vpop.permute.xlu1 %1124 }
 0x78d   :  { %v1127_v7 = vmul.f32 %v1125_v5, %v1121_v0 }
 0x78f   :  { %1129 = vrot.lane.b32.xlu1 %v1127_v7, %s7415_s25 }
 0x7fb   :  { %v1005_v9 = vpop.permute.xlu0 %1004 }
 0x7fc   :  { %v7803_v11 = vadd.f32 %v1005_v9, %v997_v8 }
 0x7fe   :  { %6888 = vtanh.f32 %v7803_v11 }
 0x801   :  { %v1130_v13 = vpop.permute.xlu1 %1129 }
 0x802   :  { %v7807_v14 = vadd.f32 %v1130_v13, %v1122_v12 }
 0x804   :  { %6890 = vtanh.f32 %v7807_v14 }
 0x808   :  { %v6889_v15 = vpop.eup %6888 }
 0x809   :  { %1010 = vrot.lane.b32.xlu0 %v6889_v15, %s7414_s4 }
 0x80e   :  { %v6891_v16 = vpop.eup %6890 }
 0x80f   :  { %1135 = vrot.lane.b32.xlu1 %v6891_v16, %s7414_s4 }
 0x87b   :  { %v1011_v19 = vpop.permute.xlu0 %1010 }
 0x87c   :  { %v7812_v53 = vmul.f32 %v1011_v19, %v996_v54 }
 0x87e   :  { %1217 = vrot.lane.b32.xlu0 %v7812_v53, %s7415_s25 }
 0x881   :  { %v1136_v20 = vpop.permute.xlu1 %1135 }
 0x882   :  { %v7816_v21 = vmul.f32 %v1136_v20, %v1121_v0 }
 0x884   :  { %1342 = vrot.lane.b32.xlu1 %v7816_v21, %s7415_s25 }
 0x8f0   :  { %v1218_v56 = vpop.permute.xlu0 %1217 }
 0x8f1   :  { %6254 = vmatmul.mubr.msk.f32.vlgmr.msra.gmra.mrb[6].mxu1 %vm240_vm6, %v1218_v56 }
 0x8f2   :  { %6615 = vmatpush3.bf16.msra.mxu1 %v7611_v10  ;;  %6275 = vmatprep.mubr.msk.f32.mxu1 %vm7413_vm0, %v7412_v2 }
 0x8f3   :  { %6616 = vmatprep.subr.bf16.mxu1 %v7411_v1 }
 0x8f6   :  { %v1343_v23 = vpop.permute.xlu1 %1342  ;;  %6618 = vmatpush3.bf16.msra.mxu1 %v7629_v17 }
 0x8f7   :  { %6265 = vmatmul.mubr.msk.f32.vlgmr.msra.gmra.mrb[10].mxu0 %vm240_vm6, %v1343_v23  ;;  %6625 = vmatprep.subr.bf16.mxu1 %v7411_v1 }
 0x8f8   :  { %6621 = vmatpush3.bf16.msra.mxu0 %v7631_v18  ;;  %6286 = vmatprep.mubr.msk.f32.mxu0 %vm7413_vm0, %v7412_v2 }
 0x8f9   :  { %6622 = vmatprep.subr.bf16.mxu0 %v7411_v1 }
 0x8fc   :  { %6624 = vmatpush3.bf16.msra.mxu0 %v7647_v22 }
 0x8fd   :  { %6631 = vmatprep.subr.bf16.mxu0 %v7411_v1 }
 0x9c4   :  { %v1287_v26 = vpop.f32.mrb[6].mxu1 }
 0x9c5   :  { %v1292_v27 = vrot.slane %v1287_v26, 5  ;;  %v1293_v28 = vrot.slane %v1287_v26, 6  ;;  %v6255_v31 = vpop.f32.mrb[7].mxu1 }
 0x9c7   :  { %v1296_v32 = vadd.f32 %v1292_v27, %v7678_v30  ;;  %v1297_v33 = vadd.f32 %v1293_v28, %v7683_v37 }
 0x9c9   :  { %v5918_v34 = vmul.f32 -1.442695, %v1296_v32  ;;  %v5919_v36 = vmul.f32 -1.442695, %v1297_v33 }
 0x9ca   :  { %v1412_v38 = vpop.f32.mrb[10].mxu0 }
 0x9cb   :  { %6892 = vpow2.f32 %v5918_v34  ;;  %v1417_v40 = vrot.slane %v1412_v38, 4  ;;  %v1418_v41 = vrot.slane %v1412_v38, 5  ;;  %v6266_v44 = vpop.f32.mrb[11].mxu0 }
 0x9cc   :  { %6894 = vpow2.f32 %v5919_v36 }
 0x9cd   :  { %v1421_v46 = vadd.f32 %v1417_v40, %v7686_v42  ;;  %v1422_v48 = vadd.f32 %v1418_v41, %v7688_v43 }
 0x9cf   :  { %v5921_v49 = vmul.f32 -1.442695, %v1421_v46  ;;  %v5922_v50 = vmul.f32 -1.442695, %v1422_v48 }
 0x9d1   :  { %6896 = vpow2.f32 %v5921_v49 }
 0x9d2   :  { %6898 = vpow2.f32 %v5922_v50 }
 0x9d3   :  { %6900 = vtanh.f32 %v1296_v32 }
 0x9d4   :  { %6902 = vtanh.f32 %v1297_v33 }
 0x9d5   :  { %v6893_v51 = vpop.eup %6892 }
 0x9d6   :  { %v6895_v52 = vpop.eup %6894  ;;  %v1304_v54 = vadd.f32 1.0, %v6893_v51 }
 0x9d7   :  { %v1305_v55 = vadd.f32 1.0, %v6895_v52 }
 0x9d8   :  { %6904 = vrcp.f32 %v1304_v54 }
 0x9d9   :  { %6906 = vrcp.f32 %v1305_v55 }
 0x9da   :  { %6908 = vtanh.f32 %v1421_v46 }
 0x9db   :  { %v6897_v57 = vpop.eup %6896  ;;  %6910 = vtanh.f32 %v1422_v48 }
 0x9dc   :  { %v6899_v58 = vpop.eup %6898  ;;  %v1429_v59 = vadd.f32 1.0, %v6897_v57 }
 0x9dd   :  { %v1430_v60 = vadd.f32 1.0, %v6899_v58  ;;  %v6901_v39 = vpop.eup %6900 }
 0x9de   :  { %6912 = vrcp.f32 %v1429_v59  ;;  %v6903_v62 = vpop.eup %6902  ;;  %v1314_v0 = vrot.slane %v6901_v39, 3 }
 0x9df   :  { %6914 = vrcp.f32 %v1430_v60  ;;  %v1315_v3 = vrot.slane %v6903_v62, 2 }
 0x9e1   :  { %v1316_v12 = vsel %vm337_vm4, %v1315_v3, %v1314_v0 }
 0x9e2   :  { %v6905_v63 = vpop.eup %6904 }
 0x9e3   :  { %v6907_v4 = vpop.eup %6906  ;;  %v1320_v5 = vrot.slane %v6905_v63, 3 }
 0x9e4   :  { %v6909_v7 = vpop.eup %6908  ;;  %v1321_v8 = vrot.slane %v6907_v4, 2 }
 0x9e5   :  { %v6911_v9 = vpop.eup %6910  ;;  %v1439_v19 = vrot.slane %v6909_v7, 4 }
 0x9e6   :  { %v1322_v13 = vsel %vm337_vm4, %v1321_v8, %v1320_v5  ;;  %v1440_v20 = vrot.slane %v6911_v9, 3 }
 0x9e7   :  { %v1324_v15 = vsel %vm7692_vm5, %v1316_v12, %v1322_v13 }
 0x9e8   :  { %v6913_v16 = vpop.eup %6912  ;;  %1327 = vrot.lane.b32.xlu0 %v1324_v15, %s7414_s4  ;;  %v1441_v27 = vsel %vm337_vm4, %v1440_v20, %v1439_v19  ;;  %v1325_v38 = vmul.f32 %v1324_v15, %v7803_v11 }
 0x9e9   :  { %v6915_v56 = vpop.eup %6914  ;;  %v1445_v23 = vrot.slane %v6913_v16, 4 }
 0x9ea   :  { %v1446_v26 = vrot.slane %v6915_v56, 3 }
 0x9ec   :  { %v1447_v28 = vsel %vm337_vm4, %v1446_v26, %v1445_v23 }
 0x9ed   :  { %v1449_v31 = vsel %vm7692_vm5, %v1441_v27, %v1447_v28 }
 0x9ee   :  { %1452 = vrot.lane.b32.xlu1 %v1449_v31, %s7414_s4  ;;  %v1450_v44 = vmul.f32 %v1449_v31, %v7807_v14 }
 0xa5a   :  { %v1328_v32 = vpop.permute.xlu0 %1327 }
 0xa5b   :  { %v1330_v33 = vmul.f32 %v1328_v32, %v1324_v15 }
 0xa5d   :  { %1332 = vrot.lane.b32.xlu0 %v1330_v33, %s7415_s25 }
 0xa60   :  { %v1453_v34 = vpop.permute.xlu1 %1452 }
 0xa61   :  { %v1455_v36 = vmul.f32 %v1453_v34, %v1449_v31 }
 0xa63   :  { %1457 = vrot.lane.b32.xlu1 %v1455_v36, %s7415_s25 }
 0xacf   :  { %v1333_v40 = vpop.permute.xlu0 %1332 }
 0xad0   :  { %v7851_v41 = vadd.f32 %v1333_v40, %v1325_v38 }
 0xad2   :  { %6916 = vtanh.f32 %v7851_v41 }
 0xad5   :  { %v1458_v46 = vpop.permute.xlu1 %1457 }
 0xad6   :  { %v7855_v48 = vadd.f32 %v1458_v46, %v1450_v44 }
 0xad8   :  { %6918 = vtanh.f32 %v7855_v48 }
 0xadc   :  { %v6917_v49 = vpop.eup %6916 }
 0xadd   :  { %1338 = vrot.lane.b32.xlu0 %v6917_v49, %s7414_s4 }
 0xae2   :  { %v6919_v50 = vpop.eup %6918 }
 0xae3   :  { %1463 = vrot.lane.b32.xlu1 %v6919_v50, %s7414_s4 }
 0xb4f   :  { %v1339_v51 = vpop.permute.xlu0 %1338 }
 0xb50   :  { %v7860_v11 = vmul.f32 %v1339_v51, %v1324_v15 }
 0xb52   :  { %1545 = vrot.lane.b32.xlu0 %v7860_v11, %s7415_s25 }
 0xb55   :  { %v1464_v52 = vpop.permute.xlu1 %1463 }
 0xb56   :  { %v7864_v54 = vmul.f32 %v1464_v52, %v1449_v31 }
 0xb58   :  { %1670 = vrot.lane.b32.xlu1 %v7864_v54, %s7415_s25 }
 0xbc4   :  { %v1546_v14 = vpop.permute.xlu0 %1545 }
 0xbc5   :  { %6276 = vmatmul.mubr.msk.f32.vlgmr.msra.gmra.mrb[8].mxu1 %vm240_vm6, %v1546_v14 }
 0xbc6   :  { %6627 = vmatpush3.bf16.msra.mxu1 %v7611_v10  ;;  %6297 = vmatprep.mubr.msk.f32.mxu1 %vm7413_vm0, %v7412_v2 }
 0xbc7   :  { %6628 = vmatprep.subr.bf16.mxu1 %v7411_v1 }
 0xbca   :  { %v1671_v55 = vpop.permute.xlu1 %1670  ;;  %6630 = vmatpush3.bf16.msra.mxu1 %v7629_v17 }
 0xbcb   :  { %6287 = vmatmul.mubr.msk.f32.vlgmr.msra.gmra.mrb[12].mxu0 %vm240_vm6, %v1671_v55  ;;  %6637 = vmatprep.subr.bf16.mxu1 %v7411_v1 }
 0xbcc   :  { %6633 = vmatpush3.bf16.msra.mxu0 %v7631_v18  ;;  %6308 = vmatprep.mubr.msk.f32.mxu0 %vm7413_vm0, %v7412_v2 }
 0xbcd   :  { %6634 = vmatprep.subr.bf16.mxu0 %v7411_v1 }
 0xbd0   :  { %6636 = vmatpush3.bf16.msra.mxu0 %v7647_v22 }
 0xbd1   :  { %6643 = vmatprep.subr.bf16.mxu0 %v7411_v1 }
 0xc98   :  { %v1615_v57 = vpop.f32.mrb[8].mxu1 }
 0xc99   :  { %v1620_v58 = vrot.slane %v1615_v57, 4  ;;  %v1621_v59 = vrot.slane %v1615_v57, 5  ;;  %v6277_v60 = vpop.f32.mrb[9].mxu1 }
 0xc9b   :  { %v1624_v39 = vadd.f32 %v1620_v58, %v7678_v30  ;;  %v1625_v62 = vadd.f32 %v1621_v59, %v7683_v37 }
 0xc9d   :  { %v5924_v63 = vmul.f32 -1.442695, %v1624_v39  ;;  %v5925_v0 = vmul.f32 -1.442695, %v1625_v62 }
 0xc9e   :  { %v1740_v3 = vpop.f32.mrb[12].mxu0 }
 0xc9f   :  { %6920 = vpow2.f32 %v5924_v63  ;;  %v1745_v4 = vrot.slane %v1740_v3, 5  ;;  %v1746_v5 = vrot.slane %v1740_v3, 6  ;;  %v6288_v7 = vpop.f32.mrb[13].mxu0 }
 0xca0   :  { %6922 = vpow2.f32 %v5925_v0 }
 0xca1   :  { %v1749_v8 = vadd.f32 %v1745_v4, %v7686_v42  ;;  %v1750_v9 = vadd.f32 %v1746_v5, %v7688_v43 }
 0xca3   :  { %v5927_v12 = vmul.f32 -1.442695, %v1749_v8  ;;  %v5928_v13 = vmul.f32 -1.442695, %v1750_v9 }
 0xca5   :  { %6924 = vpow2.f32 %v5927_v12 }
 0xca6   :  { %6926 = vpow2.f32 %v5928_v13 }
 0xca7   :  { %6928 = vtanh.f32 %v1624_v39 }
 0xca8   :  { %6930 = vtanh.f32 %v1625_v62 }
 0xca9   :  { %v6921_v15 = vpop.eup %6920 }
 0xcaa   :  { %v6923_v16 = vpop.eup %6922  ;;  %v1632_v19 = vadd.f32 1.0, %v6921_v15 }
 0xcab   :  { %v1633_v20 = vadd.f32 1.0, %v6923_v16 }
 0xcac   :  { %6932 = vrcp.f32 %v1632_v19 }
 0xcad   :  { %6934 = vrcp.f32 %v1633_v20 }
 0xcae   :  { %6936 = vtanh.f32 %v1749_v8 }
 0xcaf   :  { %v6925_v56 = vpop.eup %6924  ;;  %6938 = vtanh.f32 %v1750_v9 }
 0xcb0   :  { %v6927_v23 = vpop.eup %6926  ;;  %v1757_v26 = vadd.f32 1.0, %v6925_v56 }
 0xcb1   :  { %v1758_v27 = vadd.f32 1.0, %v6927_v23  ;;  %v6929_v28 = vpop.eup %6928 }
 0xcb2   :  { %6940 = vrcp.f32 %v1757_v26  ;;  %v6931_v31 = vpop.eup %6930  ;;  %v1642_v33 = vrot.slane %v6929_v28, 4 }
 0xcb3   :  { %6942 = vrcp.f32 %v1758_v27  ;;  %v1643_v34 = vrot.slane %v6931_v31, 3 }
 0xcb5   :  { %v1644_v49 = vsel %vm337_vm4, %v1643_v34, %v1642_v33 }
 0xcb6   :  { %v6933_v32 = vpop.eup %6932 }
 0xcb7   :  { %v6935_v36 = vpop.eup %6934  ;;  %v1648_v38 = vrot.slane %v6933_v32, 4 }
 0xcb8   :  { %v6937_v40 = vpop.eup %6936  ;;  %v1649_v44 = vrot.slane %v6935_v36, 3 }
 0xcb9   :  { %v6939_v46 = vpop.eup %6938  ;;  %v1767_v14 = vrot.slane %v6937_v40, 3 }
 0xcba   :  { %v1650_v50 = vsel %vm337_vm4, %v1649_v44, %v1648_v38  ;;  %v1768_v55 = vrot.slane %v6939_v46, 2 }
 0xcbb   :  { %v1652_v51 = vsel %vm7692_vm5, %v1644_v49, %v1650_v50 }
 0xcbc   :  { %v6941_v52 = vpop.eup %6940  ;;  %1655 = vrot.lane.b32.xlu0 %v1652_v51, %s7414_s4  ;;  %v1769_v60 = vsel %vm337_vm4, %v1768_v55, %v1767_v14  ;;  %v1653_v5 = vmul.f32 %v1652_v51, %v7851_v41 }
 0xcbd   :  { %v6943_v57 = vpop.eup %6942  ;;  %v1773_v58 = vrot.slane %v6941_v52, 3 }
 0xcbe   :  { %v1774_v59 = vrot.slane %v6943_v57, 2 }
 0xcc0   :  { %v1775_v39 = vsel %vm337_vm4, %v1774_v59, %v1773_v58 }
 0xcc1   :  { %v1777_v62 = vsel %vm7692_vm5, %v1769_v60, %v1775_v39 }
 0xcc2   :  { %1780 = vrot.lane.b32.xlu1 %v1777_v62, %s7414_s4  ;;  %v1778_v9 = vmul.f32 %v1777_v62, %v7855_v48 }
 0xd2e   :  { %v1656_v63 = vpop.permute.xlu0 %1655 }
 0xd2f   :  { %v1658_v0 = vmul.f32 %v1656_v63, %v1652_v51 }
 0xd31   :  { %1660 = vrot.lane.b32.xlu0 %v1658_v0, %s7415_s25 }
 0xd34   :  { %v1781_v3 = vpop.permute.xlu1 %1780 }
 0xd35   :  { %v1783_v4 = vmul.f32 %v1781_v3, %v1777_v62 }
 0xd37   :  { %1785 = vrot.lane.b32.xlu1 %v1783_v4, %s7415_s25 }
 0xda3   :  { %v1661_v7 = vpop.permute.xlu0 %1660 }
 0xda4   :  { %v7899_v8 = vadd.f32 %v1661_v7, %v1653_v5 }
 0xda6   :  { %6944 = vtanh.f32 %v7899_v8 }
 0xda9   :  { %v1786_v12 = vpop.permute.xlu1 %1785 }
 0xdaa   :  { %v7903_v13 = vadd.f32 %v1786_v12, %v1778_v9 }
 0xdac   :  { %6946 = vtanh.f32 %v7903_v13 }
 0xdb0   :  { %v6945_v15 = vpop.eup %6944 }
 0xdb1   :  { %1666 = vrot.lane.b32.xlu0 %v6945_v15, %s7414_s4 }
 0xdb6   :  { %v6947_v16 = vpop.eup %6946 }
 0xdb7   :  { %1791 = vrot.lane.b32.xlu1 %v6947_v16, %s7414_s4 }
 0xe23   :  { %v1667_v19 = vpop.permute.xlu0 %1666 }
 0xe24   :  { %v7908_v41 = vmul.f32 %v1667_v19, %v1652_v51 }
 0xe26   :  { %1873 = vrot.lane.b32.xlu0 %v7908_v41, %s7415_s25 }
 0xe29   :  { %v1792_v20 = vpop.permute.xlu1 %1791 }
 0xe2a   :  { %v7912_v56 = vmul.f32 %v1792_v20, %v1777_v62 }
 0xe2c   :  { %1998 = vrot.lane.b32.xlu1 %v7912_v56, %s7415_s25 }
 0xe98   :  { %v1874_v48 = vpop.permute.xlu0 %1873 }
 0xe99   :  { %6298 = vmatmul.mubr.msk.f32.vlgmr.msra.gmra.mrb[10].mxu1 %vm240_vm6, %v1874_v48 }
 0xe9a   :  { %6639 = vmatpush3.bf16.msra.mxu1 %v7611_v10  ;;  %6319 = vmatprep.mubr.msk.f32.mxu1 %vm7413_vm0, %v7412_v2 }
 0xe9b   :  { %6640 = vmatprep.subr.bf16.mxu1 %v7411_v1 }
 0xe9e   :  { %v1999_v23 = vpop.permute.xlu1 %1998  ;;  %6642 = vmatpush3.bf16.msra.mxu1 %v7629_v17 }
 0xe9f   :  { %6309 = vmatmul.mubr.msk.f32.vlgmr.msra.gmra.mrb[14].mxu0 %vm240_vm6, %v1999_v23  ;;  %6649 = vmatprep.subr.bf16.mxu1 %v7411_v1 }
 0xea0   :  { %6645 = vmatpush3.bf16.msra.mxu0 %v7631_v18  ;;  %6330 = vmatprep.mubr.msk.f32.mxu0 %vm7413_vm0, %v7412_v2 }
 0xea1   :  { %6646 = vmatprep.subr.bf16.mxu0 %v7411_v1 }
 0xea4   :  { %6648 = vmatpush3.bf16.msra.mxu0 %v7647_v22 }
 0xea5   :  { %6655 = vmatprep.subr.bf16.mxu0 %v7411_v1 }
 0xf6c   :  { %v1943_v26 = vpop.f32.mrb[10].mxu1 }
 0xf6d   :  { %v1948_v27 = vrot.slane %v1943_v26, 3  ;;  %v1949_v28 = vrot.slane %v1943_v26, 4  ;;  %v6299_v31 = vpop.f32.mrb[11].mxu1 }
 0xf6f   :  { %v1952_v32 = vadd.f32 %v1948_v27, %v7678_v30  ;;  %v1953_v33 = vadd.f32 %v1949_v28, %v7683_v37 }
 0xf71   :  { %v5930_v34 = vmul.f32 -1.442695, %v1952_v32  ;;  %v5931_v36 = vmul.f32 -1.442695, %v1953_v33 }
 0xf72   :  { %v2068_v38 = vpop.f32.mrb[14].mxu0 }
 0xf73   :  { %6948 = vpow2.f32 %v5930_v34  ;;  %v2073_v40 = vrot.slane %v2068_v38, 6  ;;  %v2074_v44 = vrot.slane %v2068_v38, 7  ;;  %v6310_v46 = vpop.f32.mrb[15].mxu0 }
 0xf74   :  { %6950 = vpow2.f32 %v5931_v36 }
 0xf75   :  { %v2077_v49 = vadd.f32 %v2073_v40, %v7686_v42  ;;  %v2078_v50 = vadd.f32 %v2074_v44, %v7688_v43 }
 0xf77   :  { %v5933_v51 = vmul.f32 -1.442695, %v2077_v49  ;;  %v5934_v52 = vmul.f32 -1.442695, %v2078_v50 }
 0xf79   :  { %6952 = vpow2.f32 %v5933_v51 }
 0xf7a   :  { %6954 = vpow2.f32 %v5934_v52 }
 0xf7b   :  { %6956 = vtanh.f32 %v1952_v32 }
 0xf7c   :  { %6958 = vtanh.f32 %v1953_v33 }
 0xf7d   :  { %v6949_v14 = vpop.eup %6948 }
 0xf7e   :  { %v6951_v55 = vpop.eup %6950  ;;  %v1960_v57 = vadd.f32 1.0, %v6949_v14 }
 0xf7f   :  { %v1961_v58 = vadd.f32 1.0, %v6951_v55 }
 0xf80   :  { %6960 = vrcp.f32 %v1960_v57 }
 0xf81   :  { %6962 = vrcp.f32 %v1961_v58 }
 0xf82   :  { %6964 = vtanh.f32 %v2077_v49 }
 0xf83   :  { %v6953_v59 = vpop.eup %6952  ;;  %6966 = vtanh.f32 %v2078_v50 }
 0xf84   :  { %v6955_v60 = vpop.eup %6954  ;;  %v2085_v39 = vadd.f32 1.0, %v6953_v59 }
 0xf85   :  { %v2086_v62 = vadd.f32 1.0, %v6955_v60  ;;  %v6957_v63 = vpop.eup %6956 }
 0xf86   :  { %6968 = vrcp.f32 %v2085_v39  ;;  %v6959_v0 = vpop.eup %6958  ;;  %v1970_v4 = vrot.slane %v6957_v63, 5 }
 0xf87   :  { %6970 = vrcp.f32 %v2086_v62  ;;  %v1971_v5 = vrot.slane %v6959_v0, 4 }
 0xf89   :  { %v1972_v19 = vsel %vm337_vm4, %v1971_v5, %v1970_v4 }
 0xf8a   :  { %v6961_v3 = vpop.eup %6960 }
 0xf8b   :  { %v6963_v7 = vpop.eup %6962  ;;  %v1976_v9 = vrot.slane %v6961_v3, 5 }
 0xf8c   :  { %v6965_v12 = vpop.eup %6964  ;;  %v1977_v15 = vrot.slane %v6963_v7, 4 }
 0xf8d   :  { %v6967_v16 = vpop.eup %6966  ;;  %v2095_v26 = vrot.slane %v6965_v12, 2 }
 0xf8e   :  { %v1978_v20 = vsel %vm337_vm4, %v1977_v15, %v1976_v9  ;;  %v2096_v27 = vrot.slane %v6967_v16, 1 }
 0xf8f   :  { %v1980_v48 = vsel %vm7692_vm5, %v1972_v19, %v1978_v20 }
 0xf90   :  { %v6969_v23 = vpop.eup %6968  ;;  %1983 = vrot.lane.b32.xlu0 %v1980_v48, %s7414_s4  ;;  %v2097_v33 = vsel %vm337_vm4, %v2096_v27, %v2095_v26  ;;  %v1981_v49 = vmul.f32 %v1980_v48, %v7899_v8 }
 0xf91   :  { %v6971_v28 = vpop.eup %6970  ;;  %v2101_v31 = vrot.slane %v6969_v23, 2 }
 0xf92   :  { %v2102_v32 = vrot.slane %v6971_v28, 1 }
 0xf94   :  { %v2103_v34 = vsel %vm337_vm4, %v2102_v32, %v2101_v31 }
 0xf95   :  { %v2105_v36 = vsel %vm7692_vm5, %v2097_v33, %v2103_v34 }
 0xf96   :  { %2108 = vrot.lane.b32.xlu1 %v2105_v36, %s7414_s4  ;;  %v2106_v52 = vmul.f32 %v2105_v36, %v7903_v13 }
0x1002   :  { %v1984_v38 = vpop.permute.xlu0 %1983 }
0x1003   :  { %v1986_v40 = vmul.f32 %v1984_v38, %v1980_v48 }
0x1005   :  { %1988 = vrot.lane.b32.xlu0 %v1986_v40, %s7415_s25 }
0x1008   :  { %v2109_v44 = vpop.permute.xlu1 %2108 }
0x1009   :  { %v2111_v46 = vmul.f32 %v2109_v44, %v2105_v36 }
0x100b   :  { %2113 = vrot.lane.b32.xlu1 %v2111_v46, %s7415_s25 }
0x1077   :  { %v1989_v50 = vpop.permute.xlu0 %1988 }
0x1078   :  { %v7947_v51 = vadd.f32 %v1989_v50, %v1981_v49 }
0x107a   :  { %6972 = vtanh.f32 %v7947_v51 }
0x107d   :  { %v2114_v14 = vpop.permute.xlu1 %2113 }
0x107e   :  { %v7951_v55 = vadd.f32 %v2114_v14, %v2106_v52 }
0x1080   :  { %6974 = vtanh.f32 %v7951_v55 }
0x1084   :  { %v6973_v57 = vpop.eup %6972 }
0x1085   :  { %1994 = vrot.lane.b32.xlu0 %v6973_v57, %s7414_s4 }
0x108a   :  { %v6975_v58 = vpop.eup %6974 }
0x108b   :  { %2119 = vrot.lane.b32.xlu1 %v6975_v58, %s7414_s4 }
0x10f7   :  { %v1995_v59 = vpop.permute.xlu0 %1994 }
0x10f8   :  { %v7956_v8 = vmul.f32 %v1995_v59, %v1980_v48 }
0x10fa   :  { %2201 = vrot.lane.b32.xlu0 %v7956_v8, %s7415_s25 }
0x10fd   :  { %v2120_v60 = vpop.permute.xlu1 %2119 }
0x10fe   :  { %v7960_v39 = vmul.f32 %v2120_v60, %v2105_v36 }
0x1100   :  { %2326 = vrot.lane.b32.xlu1 %v7960_v39, %s7415_s25 }
0x116c   :  { %v2202_v13 = vpop.permute.xlu0 %2201 }
0x116d   :  { %6320 = vmatmul.mubr.msk.f32.vlgmr.msra.gmra.mrb[12].mxu1 %vm240_vm6, %v2202_v13 }
0x116e   :  { %6651 = vmatpush3.bf16.msra.mxu1 %v7611_v10  ;;  %6341 = vmatprep.mubr.msk.f32.mxu1 %vm7413_vm0, %v7412_v2 }
0x116f   :  { %6652 = vmatprep.subr.bf16.mxu1 %v7411_v1 }
0x1172   :  { %v2327_v62 = vpop.permute.xlu1 %2326  ;;  %6654 = vmatpush3.bf16.msra.mxu1 %v7629_v17 }
0x1173   :  { %6331 = vmatmul.mubr.msk.f32.vlgmr.msra.gmra.mrb[16].mxu0 %vm240_vm6, %v2327_v62 }
0x1174   :  { %6657 = vmatpush3.bf16.msra.mxu0 %v7631_v18  ;;  %6352 = vmatprep.mubr.msk.f32.mxu0 %vm7413_vm0, %v7412_v2 }
0x1175   :  { %6658 = vmatprep.subr.bf16.mxu0 %v7411_v1 }
0x1178   :  { %6660 = vmatpush3.bf16.msra.mxu0 %v7647_v22 }
0x1179   :  { %6677 = vmatprep.subr.bf16.mxu0 %v7411_v1 }
0x1240   :  { %v2271_v10 = vpop.f32.mrb[12].mxu1 }
0x1241   :  { %v2276_v63 = vrot.slane %v2271_v10, 2  ;;  %v2277_v0 = vrot.slane %v2271_v10, 3  ;;  %v6321_v3 = vpop.f32.mrb[13].mxu1 }
0x1243   :  { %v2280_v4 = vadd.f32 %v2276_v63, %v7678_v30  ;;  %v2281_v17 = vadd.f32 %v2277_v0, %v7683_v37 }
0x1245   :  { %v5936_v5 = vmul.f32 -1.442695, %v2280_v4  ;;  %v5937_v7 = vmul.f32 -1.442695, %v2281_v17 }
0x1246   :  { %v2396_v18 = vpop.f32.mrb[16].mxu0 }
0x1247   :  { %6976 = vpow2.f32 %v5936_v5  ;;  %v2401_v9 = vrot.slane %v2396_v18, 7  ;;  %v2405_v12 = vadd.f32 %v2396_v18, %v7688_v43  ;;  %v6332_v15 = vpop.f32.mrb[17].mxu0 }
0x1248   :  { %6978 = vpow2.f32 %v5937_v7 }
0x1249   :  { %v2404_v22 = vadd.f32 %v2401_v9, %v7686_v42  ;;  %v5940_v16 = vmul.f32 -1.442695, %v2405_v12 }
0x124b   :  { %v5939_v19 = vmul.f32 -1.442695, %v2404_v22  ;;  %6980 = vpow2.f32 %v5940_v16 }
0x124d   :  { %6982 = vpow2.f32 %v5939_v19 }
0x124e   :  { %6984 = vtanh.f32 %v2280_v4 }
0x124f   :  { %6986 = vtanh.f32 %v2281_v17 }
0x1251   :  { %v6977_v20 = vpop.eup %6976 }
0x1252   :  { %v6979_v48 = vpop.eup %6978  ;;  %v2288_v23 = vadd.f32 1.0, %v6977_v20 }
0x1253   :  { %v2289_v26 = vadd.f32 1.0, %v6979_v48 }
0x1254   :  { %6988 = vrcp.f32 %v2288_v23 }
0x1255   :  { %v6981_v27 = vpop.eup %6980  ;;  %6990 = vrcp.f32 %v2289_v26 }
0x1256   :  { %6992 = vtanh.f32 %v2404_v22  ;;  %v2413_v32 = vadd.f32 1.0, %v6981_v27 }
0x1257   :  { %v6983_v28 = vpop.eup %6982 }
0x1258   :  { %v2412_v31 = vadd.f32 1.0, %v6983_v28  ;;  %v6985_v33 = vpop.eup %6984 }
0x1259   :  { %v6987_v34 = vpop.eup %6986  ;;  %v2298_v38 = vrot.slane %v6985_v33, 6 }
0x125a   :  { %6994 = vrcp.f32 %v2412_v31  ;;  %v2299_v40 = vrot.slane %v6987_v34, 5 }
0x125b   :  { %6996 = vtanh.f32 %v2405_v12 }
0x125c   :  { %6998 = vrcp.f32 %v2413_v32  ;;  %v2300_v52 = vsel %vm337_vm4, %v2299_v40, %v2298_v38 }
0x125e   :  { %v6989_v36 = vpop.eup %6988 }
0x125f   :  { %v6991_v44 = vpop.eup %6990  ;;  %v2304_v46 = vrot.slane %v6989_v36, 6 }
0x1260   :  { %v6993_v49 = vpop.eup %6992  ;;  %v2305_v50 = vrot.slane %v6991_v44, 5 }
0x1261   :  { %v2422_v57 = vrot.slane %v6993_v49, 1 }
0x1262   :  { %v2306_v14 = vsel %vm337_vm4, %v2305_v50, %v2304_v46 }
0x1263   :  { %v2308_v58 = vsel %vm7692_vm5, %v2300_v52, %v2306_v14 }
0x1264   :  { %v6995_v59 = vpop.eup %6994  ;;  %2311 = vrot.lane.b32.xlu0 %v2308_v58, %s7414_s4  ;;  %v2309_v7 = vmul.f32 %v2308_v58, %v7947_v51 }
0x1265   :  { %v6997_v60 = vpop.eup %6996  ;;  %v2427_v13 = vrot.slane %v6995_v59, 1 }
0x1266   :  { %v6999_v62 = vpop.eup %6998  ;;  %v2423_v10 = vsel %vm337_vm4, %v6997_v60, %v2422_v57 }
0x1267   :  { %v2428_v63 = vsel %vm337_vm4, %v6999_v62, %v2427_v13 }
0x1268   :  { %v2430_v0 = vsel %vm7692_vm5, %v2423_v10, %v2428_v63 }
0x1269   :  { %2433 = vrot.lane.b32.xlu1 %v2430_v0, %s7414_s4  ;;  %v2431_v12 = vmul.f32 %v2430_v0, %v7951_v55 }
0x12d6   :  { %v2312_v3 = vpop.permute.xlu0 %2311 }
0x12d7   :  { %v2314_v4 = vmul.f32 %v2312_v3, %v2308_v58 }
0x12d9   :  { %2316 = vrot.lane.b32.xlu0 %v2314_v4, %s7415_s25 }
0x12db   :  { %v2434_v17 = vpop.permute.xlu1 %2433 }
0x12dc   :  { %v2436_v5 = vmul.f32 %v2434_v17, %v2430_v0 }
0x12de   :  { %2438 = vrot.lane.b32.xlu1 %v2436_v5, %s7415_s25 }
0x134b   :  { %v2317_v18 = vpop.permute.xlu0 %2316 }
0x134c   :  { %v7994_v9 = vadd.f32 %v2317_v18, %v2309_v7 }
0x134e   :  { %7000 = vtanh.f32 %v7994_v9 }
0x1350   :  { %v2439_v15 = vpop.permute.xlu1 %2438 }
0x1351   :  { %v7998_v22 = vadd.f32 %v2439_v15, %v2431_v12 }
0x1353   :  { %7002 = vtanh.f32 %v7998_v22 }
0x1358   :  { %v7001_v16 = vpop.eup %7000 }
0x1359   :  { %2322 = vrot.lane.b32.xlu0 %v7001_v16, %s7414_s4 }
0x135d   :  { %v7003_v19 = vpop.eup %7002 }
0x135e   :  { %2444 = vrot.lane.b32.xlu1 %v7003_v19, %s7414_s4 }
0x13cb   :  { %v2323_v20 = vpop.permute.xlu0 %2322 }
0x13cc   :  { %v8003_v51 = vmul.f32 %v2323_v20, %v2308_v58 }
0x13ce   :  { %2526 = vrot.lane.b32.xlu0 %v8003_v51, %s7415_s25 }
0x13d0   :  { %v2445_v48 = vpop.permute.xlu1 %2444 }
0x13d1   :  { %v8007_v23 = vmul.f32 %v2445_v48, %v2430_v0 }
0x13d3   :  { %2651 = vrot.lane.b32.xlu1 %v8007_v23, %s7415_s25 }
0x1440   :  { %v2527_v55 = vpop.permute.xlu0 %2526 }
0x1441   :  { %6342 = vmatmul.mubr.msk.f32.vlgmr.msra.gmra.mrb[14].mxu1 %vm240_vm6, %v2527_v55 }
0x1442   :  { %2952 = vmatprep.mubr.f32.mxu1 %v7412_v2 }
0x1445   :  { %v2652_v26 = vpop.permute.xlu1 %2651 }
0x1446   :  { %6353 = vmatmul.mubr.msk.f32.vlgmr.msra.gmra.mrb[18].mxu0 %vm240_vm6, %v2652_v26 }
0x1447   :  { %6363 = vmatprep.mubr.msk.f32.mxu0 %vm7413_vm0, %v7412_v2 }
0x1514   :  { %v2596_v27 = vpop.f32.mrb[14].mxu1 }
0x1515   :  { %v2601_v28 = vrot.slane %v2596_v27, 1  ;;  %v2602_v31 = vrot.slane %v2596_v27, 2  ;;  %v6343_v32 = vpop.f32.mrb[15].mxu1 }
0x1517   :  { %v2605_v33 = vadd.f32 %v2601_v28, %v7678_v30  ;;  %v2606_v34 = vadd.f32 %v2602_v31, %v7683_v37 }
0x1519   :  { %v5942_v36 = vmul.f32 -1.442695, %v2605_v33  ;;  %v5943_v38 = vmul.f32 -1.442695, %v2606_v34  ;;  %v2721_v40 = vpop.f32.mrb[18].mxu0 }
0x151a   :  { %v2726_v44 = vrot.slane %v2721_v40, 1  ;;  %v2729_v46 = vadd.f32 %v2721_v40, %v7686_v42  ;;  %v6354_v49 = vpop.f32.mrb[19].mxu0 }
0x151b   :  { %7004 = vpow2.f32 %v5942_v36 }
0x151c   :  { %7006 = vpow2.f32 %v5943_v38  ;;  %v2730_v50 = vadd.f32 %v2726_v44, %v7688_v43  ;;  %v5945_v52 = vmul.f32 -1.442695, %v2729_v46 }
0x151e   :  { %7008 = vpow2.f32 %v5945_v52  ;;  %v5946_v14 = vmul.f32 -1.442695, %v2730_v50 }
0x1520   :  { %7010 = vpow2.f32 %v5946_v14 }
0x1521   :  { %7012 = vtanh.f32 %v2605_v33 }
0x1522   :  { %7014 = vtanh.f32 %v2606_v34  ;;  %v7416_v34 = vmov 1966171168  }
0x1523   :  { %7016 = vtanh.f32 %v2730_v50  ;;  %v486_v36 = vunpack.c.l.s4 %v7416_v34 }
0x1525   :  { %v7005_v57 = vpop.eup %7004  ;;  %v487_v40 = vunpack.c.0.s8 %v486_v36 }
0x1526   :  { %v7007_v30 = vpop.eup %7006  ;;  %v2613_v37 = vadd.f32 1.0, %v7005_v57 }
0x1527   :  { %v2614_v58 = vadd.f32 1.0, %v7007_v30  ;;  %v8045_v50 = vsub.s32 %v487_v40, %v7671_v24 }
0x1528   :  { %v7009_v59 = vpop.eup %7008  ;;  %7018 = vrcp.f32 %v2613_v37 }
0x1529   :  { %7020 = vrcp.f32 %v2614_v58  ;;  %v2737_v60 = vadd.f32 1.0, %v7009_v59  ;;  %v491_v57 = vrot.slane %v7716_v45, %v8045_v50  ;;  %v8051_v30 = vrot.slane %v7720_v47, %v8045_v50 }
0x152a   :  { %v7011_v42 = vpop.eup %7010  ;;  %v8056_v37 = vrot.slane %v7764_v35, %v8045_v50  ;;  %v8063_v59 = vrot.slane %v7768_v61, %v8045_v50  ;;  %v8069_v47 = vrot.slane %v7812_v53, %v8045_v50  ;;  %v8085_v53 = vrot.slane %v7860_v11, %v8045_v50 }
0x152b   :  { %v2738_v13 = vadd.f32 1.0, %v7011_v42  ;;  %v7013_v62 = vpop.eup %7012  ;;  %v539_v58 = vrot.slane %v8051_v30, %v8045_v50  ;;  %v8101_v11 = vrot.slane %v7908_v41, %v8045_v50  ;;  %v8116_v41 = vrot.slane %v7956_v8, %v8045_v50 }
0x152c   :  { %v7015_v43 = vpop.eup %7014  ;;  %v2623_v0 = vrot.slane %v7013_v62, 7  ;;  %v826_v45 = vrot.slane %v8056_v37, %v8045_v50  ;;  %v8081_v62 = vrot.slane %v7816_v21, %v8045_v50  ;;  %v8129_v8 = vrot.slane %v7960_v39, %v8045_v50 }
0x152d   :  { %7022 = vrcp.f32 %v2738_v13  ;;  %v7017_v10 = vpop.eup %7016  ;;  %v2624_v3 = vrot.slane %v7015_v43, 6  ;;  %v550_v61 = vrot.slane %v539_v58, %v7674_v25  ;;  %v1154_v13 = vrot.slane %v8069_v47, %v8045_v50 }
0x152e   :  { %7024 = vtanh.f32 %v2729_v46  ;;  %v2747_v7 = vrot.slane %v7017_v10, 7  ;;  %v837_v43 = vrot.slane %v826_v45, %v7674_v25  ;;  %v8092_v10 = vrot.slane %v7864_v54, %v8045_v50 }
0x152f   :  { %7026 = vrcp.f32 %v2737_v60  ;;  %v2625_v18 = vsel %vm337_vm4, %v2624_v3, %v2623_v0  ;;  %v865_v60 = vrot.slane %v8063_v59, %v8045_v50  ;;  %v1193_v21 = vrot.slane %v8081_v62, %v8045_v50 }
0x1530   :  { %v1482_v0 = vrot.slane %v8085_v53, %v8045_v50  ;;  %v1165_v3 = vrot.slane %v1154_v13, %v7674_v25  ;;  %v1521_v54 = vrot.slane %v8092_v10, %v8045_v50  ;;  %v858_v36 = vcombine.high %v8063_v59, %v8063_v59 }
0x1531   :  { %v1514_v59 = vcombine.high %v8092_v10, %v8092_v10  ;;  %v1803_v45 = vcombine.high %v8101_v11, %v8101_v11 }
0x1532   :  { %v7019_v63 = vpop.eup %7018 }
0x1533   :  { %v7021_v4 = vpop.eup %7020  ;;  %v2629_v17 = vrot.slane %v7019_v63, 7  ;;  %v876_v63 = vrot.slane %v865_v60, %v7674_v25  ;;  %v2131_v60 = vcombine.high %v8116_v41, %v8116_v41 }
0x1534   :  { %v2630_v5 = vrot.slane %v7021_v4, 6  ;;  %v8110_v4 = vrot.slane %v7912_v56, %v8045_v50  ;;  %v1532_v56 = vrot.slane %v1521_v54, %v7674_v25  ;;  %v2856_v54 = vld [vmem:[%s9059_s5 + $0x18] sm:$0xff] }
0x1535   :  { %v2145_v10 = vrot.slane %v2131_v60, %v8045_v50 }
0x1536   :  { %v2631_v12 = vsel %vm337_vm4, %v2630_v5, %v2629_v17  ;;  %v1810_v17 = vrot.slane %v8101_v11, %v8045_v50  ;;  %v1204_v5 = vrot.slane %v1193_v21, %v7674_v25 }
0x1537   :  { %v7023_v15 = vpop.eup %7022  ;;  %v8024_v16 = vsel %vm7692_vm5, %v2625_v18, %v2631_v12  ;;  %v1849_v18 = vrot.slane %v8110_v4, %v8045_v50  ;;  %v2138_v12 = vrot.slane %v8116_v41, %v8045_v50  ;;  %v2855_v41 = vld [vmem:[%s9059_s5 + $0x10] sm:$0xff] }
0x1538   :  { %v7025_v19 = vpop.eup %7024  ;;  %2636 = vrot.lane.b32.xlu0 %v8024_v16, %s7414_s4  ;;  %v2752_v20 = vrot.slane %v7023_v15, 7  ;;  %v2634_v38 = vmul.f32 %v8024_v16, %v7994_v9  ;;  %v499_v9 = vrot.slane %v491_v57, %v8045_v50  ;;  %v8133_v15 = vrot.slane %v8003_v51, %v8045_v50 }
0x1539   :  { %v7027_v48 = vpop.eup %7026  ;;  %v2748_v55 = vsel %vm337_vm4, %v2747_v7, %v7025_v19  ;;  %v1493_v7 = vrot.slane %v1482_v0, %v7674_v25  ;;  %v1821_v19 = vrot.slane %v1810_v17, %v7674_v25  ;;  %v2149_v51 = vrot.slane %v2138_v12, %v7674_v25  ;;  %v2966_v12 = vld [vmem:[%s9061_s7 + $0x8] sm:$0xff] }
0x153a   :  { %v2753_v26 = vsel %vm337_vm4, %v2752_v20, %v7027_v48  ;;  %v510_v35 = vrot.slane %v499_v9, %v7674_v25  ;;  %v492_v20 = vcombine.high %v491_v57, %v491_v57  ;;  %v1860_v48 = vrot.slane %v1849_v18, %v7674_v25 }
0x153b   :  { %v8032_v27 = vsel %vm7692_vm5, %v2748_v55, %v2753_v26  ;;  %v2177_v55 = vrot.slane %v8129_v8, %v8045_v50  ;;  %v2463_v39 = vrot.slane %v8133_v15, %v8045_v50  ;;  %v8145_v26 = vrot.slane %v8007_v23, %v8045_v50 }
0x153c   :  { %2758 = vrot.lane.b32.xlu1 %v8032_v27, %s7414_s4  ;;  %v2756_v49 = vmul.f32 %v8032_v27, %v7998_v22  ;;  %v1186_v57 = vcombine.high %v8081_v62, %v8081_v62  ;;  %v1528_v62 = vrot.slane %v1514_v59, %v8045_v50  ;;  %v2456_v21 = vcombine.high %v8133_v15, %v8133_v15  ;;  %v2868_v59 = vld [vmem:[%s9059_s5 + $0x78] sm:$0xff] }
0x153d   :  { %v2188_v23 = vrot.slane %v2177_v55, %v7674_v25  ;;  %v2474_v34 = vrot.slane %v2463_v39, %v7674_v25  ;;  %v2153_v18 = vrot.slane %v2145_v10, %v7674_v25 }
0x153e   :  { %v1536_v0 = vrot.slane %v1528_v62, %v7674_v25  ;;  %v2972_v62 = vld [vmem:[#allocation10 + $0x18] sm:$0xff] }
0x15aa   :  { %v2637_v28 = vpop.permute.xlu0 %2636 }
0x15ab   :  { %v2639_v31 = vmul.f32 %v2637_v28, %v8024_v16  ;;  %v532_v28 = vcombine.high %v8051_v30, %v8051_v30  ;;  %v1475_v30 = vcombine.high %v8085_v53, %v8085_v53  ;;  %v1817_v53 = vrot.slane %v1803_v45, %v8045_v50 }
0x15ad   :  { %2641 = vrot.lane.b32.xlu0 %v2639_v31, %s7415_s25  ;;  %v506_v31 = vrot.slane %v492_v20, %v8045_v50  ;;  %v1825_v11 = vrot.slane %v1817_v53, %v7674_v25 }
0x15ae   :  { %v2759_v32 = vpop.permute.xlu1 %2758 }
0x15af   :  { %v2761_v33 = vmul.f32 %v2759_v32, %v8032_v27  ;;  %v819_v32 = vcombine.high %v8056_v37, %v8056_v37 }
0x15b1   :  { %2763 = vrot.lane.b32.xlu1 %v2761_v33, %s7415_s25  ;;  %v2502_v33 = vrot.slane %v8145_v26, %v8045_v50 }
0x15b3   :  { %v2513_v40 = vrot.slane %v2502_v33, %v7674_v25  ;;  %v2859_v33 = vld [vmem:[%s9059_s5 + $0x30] sm:$0xff] }
0x161f   :  { %v2642_v44 = vpop.permute.xlu0 %2641 }
0x1620   :  { %v2644_v46 = vadd.f32 %v2642_v44, %v2634_v38  ;;  %v1147_v38 = vcombine.high %v8069_v47, %v8069_v47  ;;  %v514_v44 = vrot.slane %v506_v31, %v7674_v25  ;;  %v1200_v47 = vrot.slane %v1186_v57, %v8045_v50 }
0x1622   :  { %7028 = vtanh.f32 %v2644_v46  ;;  %v546_v46 = vrot.slane %v532_v28, %v8045_v50  ;;  %v2860_v28 = vld [vmem:[%s9059_s5 + $0x38] sm:$0xff] }
0x1623   :  { %v2764_v52 = vpop.permute.xlu1 %2763 }
0x1624   :  { %v2766_v14 = vadd.f32 %v2764_v52, %v2756_v49  ;;  %v833_v49 = vrot.slane %v819_v32, %v8045_v50  ;;  %v872_v52 = vrot.slane %v858_v36, %v8045_v50  ;;  %v554_v9 = vrot.slane %v546_v46, %v7674_v25  ;;  %v2857_v32 = vld [vmem:[%s9059_s5 + $0x20] sm:$0xff]  ;;  %v2968_v36 = vld [vmem:[%s9061_s7 + $0x18] sm:$0xff] }
0x1626   :  { %7030 = vtanh.f32 %v2766_v14  ;;  %v1161_v14 = vrot.slane %v1147_v38, %v8045_v50  ;;  %v841_v37 = vrot.slane %v833_v49, %v7674_v25  ;;  %v2861_v49 = vld [vmem:[%s9059_s5 + $0x40] sm:$0xff] }
0x1628   :  { %v1169_v58 = vrot.slane %v1161_v14, %v7674_v25 }
0x162c   :  { %v7029_v22 = vpop.eup %7028 }
0x162d   :  { %2647 = vrot.lane.b32.xlu0 %v7029_v22, %s7414_s4  ;;  %v880_v22 = vrot.slane %v872_v52, %v7674_v25  ;;  %v2863_v52 = vld [vmem:[%s9059_s5 + $0x50] sm:$0xff] }
0x162e   :  { %v6671_v57 = vpack.c.bf16 %v2863_v52, %v2861_v49 }
0x1630   :  { %v7031_v42 = vpop.eup %7030 }
0x1631   :  { %2769 = vrot.lane.b32.xlu1 %v7031_v42, %s7414_s4  ;;  %515 = vrot.lane.b32.xlu0 %v510_v35, %s7415_s25  ;;  %v1489_v35 = vrot.slane %v1475_v30, %v8045_v50  ;;  %v1842_v42 = vcombine.high %v8110_v4, %v8110_v4  ;;  %v2853_v4 = vld [vmem:[%s9059_s5] sm:$0xff] }
0x1632   :  { %v2969_v30 = vld [vmem:[#allocation10] sm:$0xff] }
0x1633   :  { %v1497_v13 = vrot.slane %v1489_v35, %v7674_v25  ;;  %v2867_v35 = vld [vmem:[%s9059_s5 + $0x70] sm:$0xff] }
0x1635   :  { %555 = vrot.lane.b32.xlu1 %v550_v61, %s7414_s4  ;;  %842 = vrot.lane.b32.xlu0 %v837_v43, %s7415_s25  ;;  %v1208_v61 = vrot.slane %v1200_v47, %v7674_v25  ;;  %v1856_v43 = vrot.slane %v1842_v42, %v8045_v50  ;;  %v2865_v47 = vld [vmem:[%s9059_s5 + $0x60] sm:$0xff] }
0x1639   :  { %881 = vrot.lane.b32.xlu1 %v876_v63, %s7414_s4  ;;  %1170 = vrot.lane.b32.xlu0 %v1165_v3, %s7415_s25  ;;  %v2170_v63 = vcombine.high %v8129_v8, %v8129_v8  ;;  %v2854_v3 = vld [vmem:[%s9059_s5 + $0x8] sm:$0xff]  ;;  %v2495_v8 = vcombine.high %v8145_v26, %v8145_v26 }
0x163a   :  { %v6661_v17 = vpack.c.bf16 %v2856_v54, %v2854_v3 }
0x163b   :  { %v2184_v15 = vrot.slane %v2170_v63, %v8045_v50  ;;  %v2509_v39 = vrot.slane %v2495_v8, %v8045_v50 }
0x163c   :  { %6662 = vmatprep.subr.bf16.mxu1 %v6661_v17 }
0x163d   :  { %1209 = vrot.lane.b32.xlu1 %v1204_v5, %s7414_s4  ;;  %1498 = vrot.lane.b32.xlu0 %v1493_v7, %s7415_s25  ;;  %v2965_v5 = vld [vmem:[%s9061_s7] sm:$0xff]  ;;  %v1864_v7 = vrot.slane %v1856_v43, %v7674_v25  ;;  %v2517_v26 = vrot.slane %v2509_v39, %v7674_v25 }
0x163e   :  { %v8235_v20 = vpack.c.bf16 %v2966_v12, %v2965_v5 }
0x1640   :  { %6679 = vmatpush3.bf16.msra.mxu0 %v8235_v20 }
0x1641   :  { %1537 = vrot.lane.b32.xlu1 %v1532_v56, %s7414_s4  ;;  %1826 = vrot.lane.b32.xlu0 %v1821_v19, %s7415_s25  ;;  %v6663_v56 = vpack.c.bf16 %v2855_v41, %v2853_v4  ;;  %v2470_v19 = vrot.slane %v2456_v21, %v8045_v50 }
0x1642   :  { %6680 = vmatprep.subr.bf16.mxu0 %v7411_v1 }
0x1643   :  { %6664 = vmatpush1.bf16.msra.mxu1 %v6663_v56  ;;  %v2478_v55 = vrot.slane %v2470_v19, %v7674_v25 }
0x1645   :  { %1865 = vrot.lane.b32.xlu1 %v1860_v48, %s7414_s4  ;;  %2154 = vrot.lane.b32.xlu0 %v2149_v51, %s7415_s25  ;;  %v2192_v48 = vrot.slane %v2184_v15, %v7674_v25  ;;  %v2858_v51 = vld [vmem:[%s9059_s5 + $0x28] sm:$0xff] }
0x1646   :  { %v6665_v31 = vpack.c.bf16 %v2860_v28, %v2858_v51 }
0x1648   :  { %6666 = vmatprep.subr.bf16.mxu1 %v6665_v31 }
0x1649   :  { %2193 = vrot.lane.b32.xlu1 %v2188_v23, %s7414_s4  ;;  %2479 = vrot.lane.b32.xlu0 %v2474_v34, %s7415_s25  ;;  %v6667_v23 = vpack.c.bf16 %v2859_v33, %v2857_v32  ;;  %v2967_v34 = vld [vmem:[%s9061_s7 + $0x10] sm:$0xff] }
0x164a   :  { %v8266_v38 = vpack.c.bf16 %v2968_v36, %v2967_v34 }
0x164b   :  { %6668 = vmatpush1.bf16.msra.mxu1 %v6667_v23 }
0x164c   :  { %6682 = vmatpush3.bf16.msra.mxu0 %v8266_v38 }
0x164d   :  { %2518 = vrot.lane.b32.xlu1 %v2513_v40, %s7414_s4  ;;  %517 = vrot.lane.b32.xlu0 %v514_v44, %s7415_s25  ;;  %v2862_v40 = vld [vmem:[%s9059_s5 + $0x48] sm:$0xff]  ;;  %v2864_v44 = vld [vmem:[%s9059_s5 + $0x58] sm:$0xff] }
0x164e   :  { %v6669_v46 = vpack.c.bf16 %v2864_v44, %v2862_v40  ;;  %6683 = vmatprep.subr.bf16.mxu0 %v7411_v1 }
0x164f   :  { %6364 = vmatmul.mubr.f32.vlgmr.msra.gmra.mrb[20].mxu0 %v7412_v2 }
0x1650   :  { %6670 = vmatprep.subr.bf16.mxu1 %v6669_v46  ;;  %6374 = vmatprep.mubr.msk.f32.mxu0 %vm7413_vm0, %v7412_v2 }
0x1651   :  { %557 = vrot.lane.b32.xlu1 %v554_v9, %s7414_s4  ;;  %844 = vrot.lane.b32.xlu0 %v841_v37, %s7415_s25  ;;  %v2970_v9 = vld [vmem:[#allocation10 + $0x8] sm:$0xff] }
0x1652   :  { %6672 = vmatpush1.bf16.msra.mxu1 %v6671_v57 }
0x1655   :  { %883 = vrot.lane.b32.xlu1 %v880_v22, %s7414_s4  ;;  %1172 = vrot.lane.b32.xlu0 %v1169_v58, %s7415_s25  ;;  %v8283_v22 = vpack.c.bf16 %v2970_v9, %v2969_v30  ;;  %v2866_v58 = vld [vmem:[%s9059_s5 + $0x68] sm:$0xff] }
0x1657   :  { %6685 = vmatpush3.bf16.msra.mxu0 %v8283_v22 }
0x1658   :  { %6686 = vmatprep.subr.bf16.mxu0 %v7411_v1 }
0x1659   :  { %1211 = vrot.lane.b32.xlu1 %v1208_v61, %s7414_s4  ;;  %1500 = vrot.lane.b32.xlu0 %v1497_v13, %s7415_s25  ;;  %v6675_v61 = vpack.c.bf16 %v2867_v35, %v2865_v47  ;;  %v2971_v13 = vld [vmem:[#allocation10 + $0x10] sm:$0xff] }
0x165a   :  { %v8306_v63 = vpack.c.bf16 %v2972_v62, %v2971_v13 }
0x165c   :  { %6688 = vmatpush3.bf16.msra.mxu0 %v8306_v63 }
0x165d   :  { %1539 = vrot.lane.b32.xlu1 %v1536_v0, %s7414_s4  ;;  %1828 = vrot.lane.b32.xlu0 %v1825_v11, %s7415_s25 }
0x165e   :  { %6695 = vmatprep.subr.bf16.mxu0 %v7411_v1 }
0x165f   :  { %6375 = vmatmul.mubr.f32.vlgmr.msra.gmra.mrb[22].mxu0 %v7412_v2 }
0x1660   :  { %6697 = vmatpush3.bf16.msra.mxu0 %v8283_v22  ;;  %6396 = vmatprep.mubr.msk.f32.mxu0 %vm7413_vm0, %v7412_v2 }
0x1661   :  { %1867 = vrot.lane.b32.xlu1 %v1864_v7, %s7414_s4  ;;  %2156 = vrot.lane.b32.xlu0 %v2153_v18, %s7415_s25 }
0x1662   :  { %6698 = vmatprep.subr.bf16.mxu0 %v7411_v1 }
0x1664   :  { %6700 = vmatpush3.bf16.msra.mxu0 %v8306_v63 }
0x1665   :  { %2195 = vrot.lane.b32.xlu1 %v2192_v48, %s7414_s4  ;;  %2481 = vrot.lane.b32.xlu0 %v2478_v55, %s7415_s25 }
0x1666   :  { %6707 = vmatprep.subr.bf16.mxu0 %v7411_v1 }
0x1669   :  { %2520 = vrot.lane.b32.xlu1 %v2517_v26, %s7414_s4 }
0x169f   :  { %v2648_v14 = vpop.permute.xlu0 %2647 }
0x16a0   :  { %v2650_v37 = vmul.f32 %v2648_v14, %v8024_v16  ;;  %v6673_v16 = vpack.c.bf16 %v2868_v59, %v2866_v58 }
0x16a2   :  { %v2780_v45 = vrot.slane %v2650_v37, %v8045_v50  ;;  %6674 = vmatprep.subr.bf16.mxu1 %v6673_v16 }
0x16a3   :  { %v2770_v42 = vpop.permute.xlu1 %2769  ;;  %v516_v60 = vpop.permute.xlu0 %515  ;;  %6676 = vmatpush1.bf16.msra.mxu1 %v6675_v61 }
0x16a4   :  { %v2781_v53 = vcombine.high %v2780_v45, %v2780_v45  ;;  %v2788_v43 = vrot.slane %v2780_v45, %v8045_v50  ;;  %v2772_v10 = vmul.f32 %v2770_v42, %v8032_v27  ;;  %522 = vst.msk [vmem:[#allocation2] sm:$0x1] %vm521_vm7, %v516_v60  ;;  %6689 = vmatprep.subr.bf16.mxu1 %v7411_v1  ;;  %v2869_v60 = vld [vmem:[#allocation8] sm:$0x3] }
0x16a5   :  { %v2874_v61 = vrot.slane %v2869_v60, %v7674_v25  ;;  %v2878_v13 = vrot.slane %v2869_v60, %v144_v29 }
0x16a6   :  { %v2819_v21 = vrot.slane %v2772_v10, %v8045_v50  ;;  %v2799_v0 = vrot.slane %v2788_v43, %v7674_v25  ;;  %v2795_v11 = vrot.slane %v2781_v53, %v8045_v50 }
0x16a7   :  { %v556_v3 = vpop.permute.xlu1 %555  ;;  %v843_v54 = vpop.permute.xlu0 %842 }
0x16a8   :  { %v2820_v27 = vcombine.high %v2819_v21, %v2819_v21  ;;  %v2827_v4 = vrot.slane %v2819_v21, %v8045_v50  ;;  %562 = vst.msk [vmem:[#allocation2 + $0x7] sm:$0x1] %vm561_vm8, %v556_v3  ;;  %2804 = vrot.lane.b32.xlu0 %v2799_v0, %s7415_s25  ;;  %v2803_v41 = vrot.slane %v2795_v11, %v7674_v25 }
0x16a9   :  { %848 = vst.msk [vmem:[#allocation2 + $0x1] sm:$0x1] %vm521_vm7, %v843_v54 }
0x16aa   :  { %v2838_v17 = vrot.slane %v2827_v4, %v7674_v25  ;;  %v2834_v5 = vrot.slane %v2820_v27, %v8045_v50 }
0x16ab   :  { %v882_v7 = vpop.permute.xlu1 %881  ;;  %v1171_v18 = vpop.permute.xlu0 %1170 }
0x16ac   :  { %887 = vst.msk [vmem:[#allocation2 + $0x6] sm:$0x1] %vm561_vm8, %v882_v7  ;;  %2843 = vrot.lane.b32.xlu1 %v2838_v17, %s7414_s4  ;;  %2806 = vrot.lane.b32.xlu0 %v2803_v41, %s7415_s25  ;;  %v2842_v56 = vrot.slane %v2834_v5, %v7674_v25 }
0x16ad   :  { %1176 = vst.msk [vmem:[#allocation2 + $0x2] sm:$0x1] %vm521_vm7, %v1171_v18 }
0x16af   :  { %v1210_v12 = vpop.permute.xlu1 %1209  ;;  %v1499_v8 = vpop.permute.xlu0 %1498 }
0x16b0   :  { %1215 = vst.msk [vmem:[#allocation2 + $0x5] sm:$0x1] %vm561_vm8, %v1210_v12  ;;  %2845 = vrot.lane.b32.xlu1 %v2842_v56, %s7414_s4 }
0x16b1   :  { %1504 = vst.msk [vmem:[#allocation2 + $0x3] sm:$0x1] %vm521_vm7, %v1499_v8 }
0x16b3   :  { %v1538_v15 = vpop.permute.xlu1 %1537  ;;  %v1827_v19 = vpop.permute.xlu0 %1826 }
0x16b4   :  { %1543 = vst.msk [vmem:[#allocation2 + $0x4] sm:$0x1] %vm561_vm8, %v1538_v15 }
0x16b5   :  { %1832 = vst.msk [vmem:[#allocation2 + $0x4] sm:$0x1] %vm521_vm7, %v1827_v19 }
0x16b7   :  { %v1866_v48 = vpop.permute.xlu1 %1865  ;;  %v2155_v55 = vpop.permute.xlu0 %2154 }
0x16b8   :  { %1871 = vst.msk [vmem:[#allocation2 + $0x3] sm:$0x1] %vm561_vm8, %v1866_v48 }
0x16b9   :  { %2160 = vst.msk [vmem:[#allocation2 + $0x5] sm:$0x1] %vm521_vm7, %v2155_v55 }
0x16bb   :  { %v2194_v39 = vpop.permute.xlu1 %2193  ;;  %v2480_v26 = vpop.permute.xlu0 %2479 }
0x16bc   :  { %2199 = vst.msk [vmem:[#allocation2 + $0x2] sm:$0x1] %vm561_vm8, %v2194_v39 }
0x16bd   :  { %2485 = vst.msk [vmem:[#allocation2 + $0x6] sm:$0x1] %vm521_vm7, %v2480_v26 }
0x16bf   :  { %v2519_v51 = vpop.permute.xlu1 %2518  ;;  %v518_v28 = vpop.permute.xlu0 %517 }
0x16c0   :  { %2524 = vst.msk [vmem:[#allocation2 + $0x1] sm:$0x1] %vm561_vm8, %v2519_v51 }
0x16c1   :  { %523 = vst.msk [vmem:[#allocation2 + $0x8] sm:$0x1] %vm521_vm7, %v518_v28 }
0x16c3   :  { %v558_v31 = vpop.permute.xlu1 %557  ;;  %v845_v32 = vpop.permute.xlu0 %844 }
0x16c4   :  { %563 = vst.msk [vmem:[#allocation2 + $0xf] sm:$0x1] %vm561_vm8, %v558_v31 }
0x16c5   :  { %849 = vst.msk [vmem:[#allocation2 + $0x9] sm:$0x1] %vm521_vm7, %v845_v32 }
0x16c7   :  { %v884_v33 = vpop.permute.xlu1 %883  ;;  %v1173_v23 = vpop.permute.xlu0 %1172 }
0x16c8   :  { %888 = vst.msk [vmem:[#allocation2 + $0xe] sm:$0x1] %vm561_vm8, %v884_v33 }
0x16c9   :  { %1177 = vst.msk [vmem:[#allocation2 + $0xa] sm:$0x1] %vm521_vm7, %v1173_v23 }
0x16cb   :  { %v1212_v34 = vpop.permute.xlu1 %1211  ;;  %v1501_v36 = vpop.permute.xlu0 %1500 }
0x16cc   :  { %1216 = vst.msk [vmem:[#allocation2 + $0xd] sm:$0x1] %vm561_vm8, %v1212_v34 }
0x16cd   :  { %1505 = vst.msk [vmem:[#allocation2 + $0xb] sm:$0x1] %vm521_vm7, %v1501_v36 }
0x16cf   :  { %v1540_v40 = vpop.permute.xlu1 %1539  ;;  %v1829_v44 = vpop.permute.xlu0 %1828 }
0x16d0   :  { %1544 = vst.msk [vmem:[#allocation2 + $0xc] sm:$0x1] %vm561_vm8, %v1540_v40 }
0x16d1   :  { %1833 = vst.msk [vmem:[#allocation2 + $0xc] sm:$0x1] %vm521_vm7, %v1829_v44 }
0x16d3   :  { %v1868_v46 = vpop.permute.xlu1 %1867  ;;  %v2157_v49 = vpop.permute.xlu0 %2156 }
0x16d4   :  { %1872 = vst.msk [vmem:[#allocation2 + $0xb] sm:$0x1] %vm561_vm8, %v1868_v46 }
0x16d5   :  { %2161 = vst.msk [vmem:[#allocation2 + $0xd] sm:$0x1] %vm521_vm7, %v2157_v49 }
0x16d7   :  { %v2196_v52 = vpop.permute.xlu1 %2195  ;;  %v2482_v14 = vpop.permute.xlu0 %2481 }
0x16d8   :  { %2200 = vst.msk [vmem:[#allocation2 + $0xa] sm:$0x1] %vm561_vm8, %v2196_v52 }
0x16d9   :  { %2486 = vst.msk [vmem:[#allocation2 + $0xe] sm:$0x1] %vm521_vm7, %v2482_v14 }
0x16db   :  { %v2521_v57 = vpop.permute.xlu1 %2520 }
0x16dc   :  { %2525 = vst.msk [vmem:[#allocation2 + $0x9] sm:$0x1] %vm561_vm8, %v2521_v57 }
0x171a   :  { %v2805_v30 = vpop.permute.xlu0 %2804 }
0x171b   :  { %2810 = vst.msk [vmem:[#allocation2 + $0x7] sm:$0x1] %vm521_vm7, %v2805_v30 }
0x171e   :  { %v2844_v9 = vpop.permute.xlu1 %2843  ;;  %v2807_v37 = vpop.permute.xlu0 %2806 }
0x171f   :  { %2849 = vst.msk [vmem:[#allocation2] sm:$0x1] %vm561_vm8, %v2844_v9 }
0x1720   :  { %2811 = vst.msk [vmem:[#allocation2 + $0xf] sm:$0x1] %vm521_vm7, %v2807_v37 }
0x1722   :  { %v2846_v58 = vpop.permute.xlu1 %2845  ;;  %v3039_v16 = vpop.f32.mrb[20].mxu0 }
0x1723   :  { %2850 = vst.msk [vmem:[#allocation2 + $0x8] sm:$0x1] %vm561_vm8, %v2846_v58  ;;  %v6365_v47 = vpop.f32.mrb[21].mxu0  ;;  %v3044_v27 = vrot.slane %v3039_v16, 1 }
0x1726   :  { %v2851_v59 = vld [vmem:[#allocation2] sm:$0xff] }
0x1727   :  { %5947 = vmatmul.mubr.msk.f32.vlgmr.msra.gmra.mrb[16].mxu1 %vm2881_vm9, %v2851_v59 }
0x1728   :  { %2958 = vmatprep.mubr.f32.mxu1 %v7412_v2  ;;  %6691 = vmatpush3.bf16.msra.mxu1 %v8235_v20 }
0x1729   :  { %6692 = vmatprep.subr.bf16.mxu1 %v7411_v1 }
0x172a   :  { %v2852_v45 = vld [vmem:[#allocation2 + $0x8] sm:$0xff] }
0x172b   :  { %5948 = vmatmul.mubr.msk.f32.gmra.mrb[18].mxu1 %vm2881_vm9, %v2852_v45 }
0x172c   :  { %6694 = vmatpush3.bf16.msra.mxu1 %v8266_v38  ;;  %6385 = vmatprep.mubr.msk.f32.mxu1 %vm7413_vm0, %v7412_v2 }
0x172d   :  { %6701 = vmatprep.subr.bf16.mxu1 %v7411_v1 }
0x1732   :  { %v3157_v35 = vpop.f32.mrb[22].mxu0 }
0x1733   :  { %v6376_v42 = vpop.f32.mrb[23].mxu0  ;;  %v3162_v53 = vrot.slane %v3157_v35, 1  ;;  %v3163_v11 = vrot.slane %v3157_v35, 2 }
0x17fa   :  { %v2954_v62 = vpop.f32.mrb[16].mxu1 }
0x17fb   :  { %v8373_v43 = vadd.f32 %v2954_v62, %v2874_v61  ;;  %v2956_v10 = vpop.f32.mrb[17].mxu1 }
0x17fc   :  { %v8375_v21 = vadd.f32 %v2956_v10, %v2878_v13 }
0x17fd   :  { %v3047_v0 = vadd.f32 %v3039_v16, %v8373_v43 }
0x17fe   :  { %v3166_v3 = vadd.f32 %v3162_v53, %v8375_v21  ;;  %v2960_v54 = vpop.f32.mrb[18].mxu1 }
0x17ff   :  { %v8379_v4 = vadd.f32 %v2960_v54, %v2874_v61  ;;  %v2962_v17 = vpop.f32.mrb[19].mxu1  ;;  %v5949_v41 = vmul.f32 -1.442695, %v3047_v0 }
0x1800   :  { %v5951_v24 = vmul.f32 -1.442695, %v3166_v3  ;;  %v8381_v29 = vadd.f32 %v2962_v17, %v2878_v13 }
0x1801   :  { %v3048_v5 = vadd.f32 %v3044_v27, %v8379_v4 }
0x1802   :  { %7032 = vpow2.f32 %v5951_v24  ;;  %v3167_v7 = vadd.f32 %v3163_v11, %v8381_v29 }
0x1803   :  { %7034 = vpow2.f32 %v5949_v41  ;;  %v5950_v18 = vmul.f32 -1.442695, %v3048_v5 }
0x1804   :  { %v5952_v56 = vmul.f32 -1.442695, %v3167_v7 }
0x1805   :  { %7036 = vpow2.f32 %v5950_v18 }
0x1806   :  { %7038 = vpow2.f32 %v5952_v56 }
0x1807   :  { %7040 = vtanh.f32 %v3047_v0 }
0x1808   :  { %7042 = vtanh.f32 %v3048_v5 }
0x1809   :  { %7044 = vtanh.f32 %v3167_v7 }
0x180a   :  { %7046 = vtanh.f32 %v3166_v3 }
0x180c   :  { %v7033_v12 = vpop.eup %7032 }
0x180d   :  { %v7035_v8 = vpop.eup %7034  ;;  %v3174_v15 = vadd.f32 1.0, %v7033_v12 }
0x180e   :  { %v3055_v55 = vadd.f32 1.0, %v7035_v8 }
0x180f   :  { %v7037_v19 = vpop.eup %7036  ;;  %7048 = vrcp.f32 %v3174_v15 }
0x1810   :  { %v7039_v48 = vpop.eup %7038  ;;  %v3056_v39 = vadd.f32 1.0, %v7037_v19 }
0x1811   :  { %v3175_v26 = vadd.f32 1.0, %v7039_v48  ;;  %v7041_v51 = vpop.eup %7040 }
0x1812   :  { %7050 = vrcp.f32 %v3056_v39  ;;  %v7043_v28 = vpop.eup %7042 }
0x1813   :  { %7052 = vrcp.f32 %v3175_v26  ;;  %v7045_v31 = vpop.eup %7044  ;;  %v3065_v23 = vrot.slane %v7043_v28, 7 }
0x1814   :  { %7054 = vrcp.f32 %v3055_v55  ;;  %v7047_v32 = vpop.eup %7046  ;;  %v3185_v36 = vrot.slane %v7045_v31, 6 }
0x1815   :  { %v3184_v49 = vrot.slane %v7047_v32, 7  ;;  %v3066_v57 = vsel %vm337_vm4, %v3065_v23, %v7041_v51 }
0x1817   :  { %v3186_v37 = vsel %vm337_vm4, %v3185_v36, %v3184_v49 }
0x1819   :  { %v7049_v33 = vpop.eup %7048 }
0x181a   :  { %v3190_v52 = vrot.slane %v7049_v33, 7 }
0x181c   :  { %v7051_v34 = vpop.eup %7050 }
0x181d   :  { %v7053_v40 = vpop.eup %7052  ;;  %v3070_v44 = vrot.slane %v7051_v34, 7 }
0x181e   :  { %v7055_v46 = vpop.eup %7054  ;;  %v3191_v14 = vrot.slane %v7053_v40, 6 }
0x181f   :  { %v3071_v30 = vsel %vm337_vm4, %v3070_v44, %v7055_v46 }
0x1820   :  { %v3073_v9 = vsel %vm7692_vm5, %v3066_v57, %v3071_v30  ;;  %v3192_v58 = vsel %vm337_vm4, %v3191_v14, %v3190_v52 }
0x1821   :  { %3076 = vrot.lane.b32.xlu0 %v3073_v9, %s7414_s4  ;;  %v3194_v59 = vsel %vm7692_vm5, %v3186_v37, %v3192_v58  ;;  %v3074_v42 = vmul.f32 0.0, %v3073_v9 }
0x1822   :  { %3197 = vrot.lane.b32.xlu1 %v3194_v59, %s7414_s4  ;;  %v3195_v61 = vmul.f32 0.0, %v3194_v59 }
0x1893   :  { %v3077_v45 = vpop.permute.xlu0 %3076 }
0x1894   :  { %v3079_v16 = vmul.f32 %v3077_v45, %v3073_v9  ;;  %v3198_v47 = vpop.permute.xlu1 %3197 }
0x1895   :  { %v3200_v35 = vmul.f32 %v3198_v47, %v3194_v59 }
0x1896   :  { %3081 = vrot.lane.b32.xlu0 %v3079_v16, %s7415_s25 }
0x1897   :  { %3202 = vrot.lane.b32.xlu1 %v3200_v35, %s7415_s25 }
0x1908   :  { %v3082_v60 = vpop.permute.xlu0 %3081 }
0x1909   :  { %v8397_v13 = vadd.f32 %v3082_v60, %v3074_v42  ;;  %v3203_v62 = vpop.permute.xlu1 %3202 }
0x190a   :  { %v8399_v53 = vadd.f32 %v3203_v62, %v3195_v61 }
0x190b   :  { %7056 = vtanh.f32 %v8397_v13 }
0x190c   :  { %7058 = vtanh.f32 %v8399_v53 }
0x1915   :  { %v7057_v10 = vpop.eup %7056 }
0x1916   :  { %v7059_v0 = vpop.eup %7058  ;;  %3087 = vrot.lane.b32.xlu0 %v7057_v10, %s7414_s4 }
0x1917   :  { %3208 = vrot.lane.b32.xlu1 %v7059_v0, %s7414_s4 }
0x1988   :  { %v3088_v11 = vpop.permute.xlu0 %3087 }
0x1989   :  { %v8405_v3 = vmul.f32 %v3088_v11, %v3073_v9  ;;  %v3209_v54 = vpop.permute.xlu1 %3208 }
0x198a   :  { %v8407_v27 = vmul.f32 %v3209_v54, %v3194_v59 }
0x198b   :  { %3290 = vrot.lane.b32.xlu0 %v8405_v3, %s7415_s25 }
0x198c   :  { %3412 = vrot.lane.b32.xlu1 %v8407_v27, %s7415_s25 }
0x19fd   :  { %v3291_v17 = vpop.permute.xlu0 %3290 }
0x19fe   :  { %v3413_v41 = vpop.permute.xlu1 %3412  ;;  %6386 = vmatmul.mubr.msk.f32.vlgmr.msra.gmra.mrb[20].mxu1 %vm240_vm6, %v3291_v17 }
0x19ff   :  { %6397 = vmatmul.mubr.msk.f32.vlgmr.msra.gmra.mrb[24].mxu0 %vm240_vm6, %v3413_v41  ;;  %6703 = vmatpush3.bf16.msra.mxu1 %v8235_v20 }
0x1a00   :  { %6709 = vmatpush3.bf16.msra.mxu0 %v8283_v22  ;;  %6704 = vmatprep.subr.bf16.mxu1 %v7411_v1 }
0x1a01   :  { %6710 = vmatprep.subr.bf16.mxu0 %v7411_v1  ;;  %6407 = vmatprep.mubr.msk.f32.mxu1 %vm7413_vm0, %v7412_v2 }
0x1a02   :  { %6418 = vmatprep.mubr.msk.f32.mxu0 %vm7413_vm0, %v7412_v2 }
0x1a03   :  { %6706 = vmatpush3.bf16.msra.mxu1 %v8266_v38 }
0x1a04   :  { %6712 = vmatpush3.bf16.msra.mxu0 %v8306_v63  ;;  %6713 = vmatprep.subr.bf16.mxu1 %v7411_v1 }
0x1a05   :  { %6719 = vmatprep.subr.bf16.mxu0 %v7411_v1 }
0x1ad1   :  { %v3360_v24 = vpop.f32.mrb[20].mxu1 }
0x1ad2   :  { %v3365_v5 = vrot.slane %v3360_v24, 7  ;;  %v3369_v7 = vadd.f32 %v3360_v24, %v8379_v4  ;;  %v6387_v18 = vpop.f32.mrb[21].mxu1  ;;  %v3482_v56 = vpop.f32.mrb[24].mxu0 }
0x1ad3   :  { %v3487_v12 = vrot.slane %v3482_v56, 2  ;;  %v3488_v8 = vrot.slane %v3482_v56, 3  ;;  %v6398_v15 = vpop.f32.mrb[25].mxu0 }
0x1ad4   :  { %v3368_v19 = vadd.f32 %v3365_v5, %v8373_v43  ;;  %v5955_v48 = vmul.f32 -1.442695, %v3369_v7 }
0x1ad5   :  { %v3491_v55 = vadd.f32 %v3487_v12, %v8375_v21  ;;  %v3492_v39 = vadd.f32 %v3488_v8, %v8381_v29 }
0x1ad6   :  { %v5954_v26 = vmul.f32 -1.442695, %v3368_v19  ;;  %7060 = vpow2.f32 %v5955_v48 }
0x1ad7   :  { %v5957_v51 = vmul.f32 -1.442695, %v3491_v55  ;;  %v5958_v28 = vmul.f32 -1.442695, %v3492_v39 }
0x1ad8   :  { %7062 = vpow2.f32 %v5954_v26 }
0x1ad9   :  { %7064 = vpow2.f32 %v5957_v51 }
0x1ada   :  { %7066 = vpow2.f32 %v5958_v28 }
0x1adb   :  { %7068 = vtanh.f32 %v3369_v7 }
0x1adc   :  { %7070 = vtanh.f32 %v3368_v19 }
0x1add   :  { %7072 = vtanh.f32 %v3491_v55 }
0x1ade   :  { %7074 = vtanh.f32 %v3492_v39 }
0x1ae0   :  { %v7061_v31 = vpop.eup %7060 }
0x1ae1   :  { %v3377_v32 = vadd.f32 1.0, %v7061_v31 }
0x1ae2   :  { %v7063_v33 = vpop.eup %7062 }
0x1ae3   :  { %v7065_v23 = vpop.eup %7064  ;;  %v3376_v34 = vadd.f32 1.0, %v7063_v33  ;;  %7076 = vrcp.f32 %v3377_v32 }
0x1ae4   :  { %v7067_v36 = vpop.eup %7066  ;;  %v3499_v40 = vadd.f32 1.0, %v7065_v23 }
0x1ae5   :  { %7078 = vrcp.f32 %v3376_v34  ;;  %v3500_v44 = vadd.f32 1.0, %v7067_v36  ;;  %v7069_v46 = vpop.eup %7068 }
0x1ae6   :  { %7080 = vrcp.f32 %v3499_v40  ;;  %v7071_v49 = vpop.eup %7070 }
0x1ae7   :  { %7082 = vrcp.f32 %v3500_v44  ;;  %v7073_v52 = vpop.eup %7072  ;;  %v3386_v30 = vrot.slane %v7071_v49, 1 }
0x1ae8   :  { %v7075_v14 = vpop.eup %7074  ;;  %v3509_v58 = vrot.slane %v7073_v52, 6 }
0x1ae9   :  { %v3510_v59 = vrot.slane %v7075_v14, 5  ;;  %v3387_v35 = vsel %vm337_vm4, %v7069_v46, %v3386_v30 }
0x1aeb   :  { %v3511_v62 = vsel %vm337_vm4, %v3510_v59, %v3509_v58 }
0x1aed   :  { %v7077_v57 = vpop.eup %7076 }
0x1aef   :  { %v7079_v9 = vpop.eup %7078 }
0x1af0   :  { %v7081_v37 = vpop.eup %7080  ;;  %v3391_v45 = vrot.slane %v7079_v9, 1 }
0x1af1   :  { %v7083_v16 = vpop.eup %7082  ;;  %v3515_v47 = vrot.slane %v7081_v37, 6 }
0x1af2   :  { %v3392_v42 = vsel %vm337_vm4, %v7077_v57, %v3391_v45  ;;  %v3516_v60 = vrot.slane %v7083_v16, 5 }
0x1af3   :  { %v3394_v61 = vsel %vm7692_vm5, %v3387_v35, %v3392_v42 }
0x1af4   :  { %3397 = vrot.lane.b32.xlu0 %v3394_v61, %s7414_s4  ;;  %v3517_v10 = vsel %vm337_vm4, %v3516_v60, %v3515_v47  ;;  %v3395_v24 = vmul.f32 %v3394_v61, %v8397_v13 }
0x1af5   :  { %v3519_v0 = vsel %vm7692_vm5, %v3511_v62, %v3517_v10 }
0x1af6   :  { %3522 = vrot.lane.b32.xlu1 %v3519_v0, %s7414_s4  ;;  %v3520_v18 = vmul.f32 %v3519_v0, %v8399_v53 }
0x1b66   :  { %v3398_v11 = vpop.permute.xlu0 %3397 }
0x1b67   :  { %v3400_v54 = vmul.f32 %v3398_v11, %v3394_v61 }
0x1b68   :  { %v3523_v17 = vpop.permute.xlu1 %3522 }
0x1b69   :  { %v3525_v41 = vmul.f32 %v3523_v17, %v3519_v0  ;;  %3402 = vrot.lane.b32.xlu0 %v3400_v54, %s7415_s25 }
0x1b6b   :  { %3527 = vrot.lane.b32.xlu1 %v3525_v41, %s7415_s25 }
0x1bdb   :  { %v3403_v5 = vpop.permute.xlu0 %3402 }
0x1bdc   :  { %v8444_v7 = vadd.f32 %v3403_v5, %v3395_v24 }
0x1bdd   :  { %v3528_v56 = vpop.permute.xlu1 %3527 }
0x1bde   :  { %7084 = vtanh.f32 %v8444_v7  ;;  %v8448_v12 = vadd.f32 %v3528_v56, %v3520_v18 }
0x1be0   :  { %7086 = vtanh.f32 %v8448_v12 }
0x1be8   :  { %v7085_v8 = vpop.eup %7084 }
0x1be9   :  { %3408 = vrot.lane.b32.xlu0 %v7085_v8, %s7414_s4 }
0x1bea   :  { %v7087_v15 = vpop.eup %7086 }
0x1beb   :  { %3533 = vrot.lane.b32.xlu1 %v7087_v15, %s7414_s4 }
0x1c5b   :  { %v3409_v19 = vpop.permute.xlu0 %3408 }
0x1c5c   :  { %v8453_v13 = vmul.f32 %v3409_v19, %v3394_v61 }
0x1c5d   :  { %v3534_v48 = vpop.permute.xlu1 %3533 }
0x1c5e   :  { %v8455_v55 = vmul.f32 %v3534_v48, %v3519_v0  ;;  %3615 = vrot.lane.b32.xlu0 %v8453_v13, %s7415_s25 }
0x1c60   :  { %3740 = vrot.lane.b32.xlu1 %v8455_v55, %s7415_s25 }
0x1cd0   :  { %v3616_v53 = vpop.permute.xlu0 %3615 }
0x1cd1   :  { %6408 = vmatmul.mubr.msk.f32.vlgmr.msra.gmra.mrb[22].mxu1 %vm240_vm6, %v3616_v53 }
0x1cd2   :  { %v3741_v39 = vpop.permute.xlu1 %3740  ;;  %6715 = vmatpush3.bf16.msra.mxu1 %v8235_v20  ;;  %6429 = vmatprep.mubr.msk.f32.mxu1 %vm7413_vm0, %v7412_v2 }
0x1cd3   :  { %6419 = vmatmul.mubr.msk.f32.vlgmr.msra.gmra.mrb[26].mxu0 %vm240_vm6, %v3741_v39  ;;  %6716 = vmatprep.subr.bf16.mxu1 %v7411_v1 }
0x1cd4   :  { %6721 = vmatpush3.bf16.msra.mxu0 %v8283_v22  ;;  %6440 = vmatprep.mubr.msk.f32.mxu0 %vm7413_vm0, %v7412_v2 }
0x1cd5   :  { %6722 = vmatprep.subr.bf16.mxu0 %v7411_v1 }
0x1cd6   :  { %6718 = vmatpush3.bf16.msra.mxu1 %v8266_v38 }
0x1cd7   :  { %6725 = vmatprep.subr.bf16.mxu1 %v7411_v1 }
0x1cd8   :  { %6724 = vmatpush3.bf16.msra.mxu0 %v8306_v63 }
0x1cd9   :  { %6731 = vmatprep.subr.bf16.mxu0 %v7411_v1 }
0x1da4   :  { %v3685_v26 = vpop.f32.mrb[22].mxu1 }
0x1da5   :  { %v3690_v51 = vrot.slane %v3685_v26, 6  ;;  %v3691_v28 = vrot.slane %v3685_v26, 7  ;;  %v6409_v31 = vpop.f32.mrb[23].mxu1 }
0x1da6   :  { %v3810_v32 = vpop.f32.mrb[26].mxu0 }
0x1da7   :  { %v3694_v33 = vadd.f32 %v3690_v51, %v8373_v43  ;;  %v3695_v23 = vadd.f32 %v3691_v28, %v8379_v4  ;;  %v3815_v34 = vrot.slane %v3810_v32, 3  ;;  %v3816_v36 = vrot.slane %v3810_v32, 4  ;;  %v6420_v40 = vpop.f32.mrb[27].mxu0 }
0x1da9   :  { %v5960_v44 = vmul.f32 -1.442695, %v3694_v33  ;;  %v5961_v46 = vmul.f32 -1.442695, %v3695_v23  ;;  %v3819_v49 = vadd.f32 %v3815_v34, %v8375_v21  ;;  %v3820_v52 = vadd.f32 %v3816_v36, %v8381_v29 }
0x1dab   :  { %7088 = vpow2.f32 %v5960_v44  ;;  %v5963_v14 = vmul.f32 -1.442695, %v3819_v49  ;;  %v5964_v57 = vmul.f32 -1.442695, %v3820_v52 }
0x1dac   :  { %7090 = vpow2.f32 %v5961_v46 }
0x1dad   :  { %7092 = vpow2.f32 %v5963_v14 }
0x1dae   :  { %7094 = vpow2.f32 %v5964_v57 }
0x1daf   :  { %7096 = vtanh.f32 %v3694_v33 }
0x1db0   :  { %7098 = vtanh.f32 %v3695_v23 }
0x1db1   :  { %7100 = vtanh.f32 %v3819_v49 }
0x1db2   :  { %7102 = vtanh.f32 %v3820_v52 }
0x1db5   :  { %v7089_v30 = vpop.eup %7088 }
0x1db6   :  { %v7091_v9 = vpop.eup %7090  ;;  %v3702_v37 = vadd.f32 1.0, %v7089_v30 }
0x1db7   :  { %v7093_v58 = vpop.eup %7092  ;;  %v3703_v59 = vadd.f32 1.0, %v7091_v9 }
0x1db8   :  { %v7095_v45 = vpop.eup %7094  ;;  %7104 = vrcp.f32 %v3702_v37  ;;  %v3827_v16 = vadd.f32 1.0, %v7093_v58 }
0x1db9   :  { %7106 = vrcp.f32 %v3703_v59  ;;  %v3828_v47 = vadd.f32 1.0, %v7095_v45  ;;  %v7097_v35 = vpop.eup %7096 }
0x1dba   :  { %7108 = vrcp.f32 %v3827_v16  ;;  %v7099_v42 = vpop.eup %7098  ;;  %v3712_v10 = vrot.slane %v7097_v35, 2 }
0x1dbb   :  { %7110 = vrcp.f32 %v3828_v47  ;;  %v7101_v60 = vpop.eup %7100  ;;  %v3713_v0 = vrot.slane %v7099_v42, 1 }
0x1dbc   :  { %v7103_v61 = vpop.eup %7102  ;;  %v3837_v41 = vrot.slane %v7101_v60, 5 }
0x1dbd   :  { %v3838_v24 = vrot.slane %v7103_v61, 4  ;;  %v3714_v8 = vsel %vm337_vm4, %v3713_v0, %v3712_v10 }
0x1dbf   :  { %v3839_v53 = vsel %vm337_vm4, %v3838_v24, %v3837_v41 }
0x1dc2   :  { %v7105_v62 = vpop.eup %7104 }
0x1dc3   :  { %v7107_v11 = vpop.eup %7106  ;;  %v3718_v54 = vrot.slane %v7105_v62, 2 }
0x1dc4   :  { %v7109_v17 = vpop.eup %7108  ;;  %v3719_v5 = vrot.slane %v7107_v11, 1 }
0x1dc5   :  { %v7111_v18 = vpop.eup %7110  ;;  %v3843_v56 = vrot.slane %v7109_v17, 5 }
0x1dc6   :  { %v3720_v15 = vsel %vm337_vm4, %v3719_v5, %v3718_v54  ;;  %v3844_v19 = vrot.slane %v7111_v18, 4 }
0x1dc7   :  { %v3722_v48 = vsel %vm7692_vm5, %v3714_v8, %v3720_v15 }
0x1dc8   :  { %3725 = vrot.lane.b32.xlu0 %v3722_v48, %s7414_s4  ;;  %v3845_v39 = vsel %vm337_vm4, %v3844_v19, %v3843_v56  ;;  %v3723_v33 = vmul.f32 %v3722_v48, %v8444_v7 }
0x1dc9   :  { %v3847_v26 = vsel %vm7692_vm5, %v3839_v53, %v3845_v39 }
0x1dca   :  { %3850 = vrot.lane.b32.xlu1 %v3847_v26, %s7414_s4  ;;  %v3848_v36 = vmul.f32 %v3847_v26, %v8448_v12 }
0x1e3a   :  { %v3726_v51 = vpop.permute.xlu0 %3725 }
0x1e3b   :  { %v3728_v28 = vmul.f32 %v3726_v51, %v3722_v48 }
0x1e3c   :  { %v3851_v31 = vpop.permute.xlu1 %3850 }
0x1e3d   :  { %v3853_v32 = vmul.f32 %v3851_v31, %v3847_v26  ;;  %3730 = vrot.lane.b32.xlu0 %v3728_v28, %s7415_s25 }
0x1e3f   :  { %3855 = vrot.lane.b32.xlu1 %v3853_v32, %s7415_s25 }
0x1eaf   :  { %v3731_v23 = vpop.permute.xlu0 %3730 }
0x1eb0   :  { %v8492_v34 = vadd.f32 %v3731_v23, %v3723_v33 }
0x1eb1   :  { %v3856_v40 = vpop.permute.xlu1 %3855 }
0x1eb2   :  { %7112 = vtanh.f32 %v8492_v34  ;;  %v8496_v44 = vadd.f32 %v3856_v40, %v3848_v36 }
0x1eb4   :  { %7114 = vtanh.f32 %v8496_v44 }
0x1ebc   :  { %v7113_v46 = vpop.eup %7112 }
0x1ebd   :  { %3736 = vrot.lane.b32.xlu0 %v7113_v46, %s7414_s4 }
0x1ebe   :  { %v7115_v49 = vpop.eup %7114 }
0x1ebf   :  { %3861 = vrot.lane.b32.xlu1 %v7115_v49, %s7414_s4 }
0x1f2f   :  { %v3737_v52 = vpop.permute.xlu0 %3736 }
0x1f30   :  { %v8501_v7 = vmul.f32 %v3737_v52, %v3722_v48 }
0x1f31   :  { %v3862_v14 = vpop.permute.xlu1 %3861 }
0x1f32   :  { %v8503_v57 = vmul.f32 %v3862_v14, %v3847_v26  ;;  %3943 = vrot.lane.b32.xlu0 %v8501_v7, %s7415_s25 }
0x1f34   :  { %4068 = vrot.lane.b32.xlu1 %v8503_v57, %s7415_s25 }
0x1fa4   :  { %v3944_v12 = vpop.permute.xlu0 %3943 }
0x1fa5   :  { %6430 = vmatmul.mubr.msk.f32.vlgmr.msra.gmra.mrb[24].mxu1 %vm240_vm6, %v3944_v12 }
0x1fa6   :  { %v4069_v30 = vpop.permute.xlu1 %4068  ;;  %6727 = vmatpush3.bf16.msra.mxu1 %v8235_v20  ;;  %6451 = vmatprep.mubr.msk.f32.mxu1 %vm7413_vm0, %v7412_v2 }
0x1fa7   :  { %6441 = vmatmul.mubr.msk.f32.vlgmr.msra.gmra.mrb[28].mxu0 %vm240_vm6, %v4069_v30  ;;  %6728 = vmatprep.subr.bf16.mxu1 %v7411_v1 }
0x1fa8   :  { %6733 = vmatpush3.bf16.msra.mxu0 %v8283_v22  ;;  %6462 = vmatprep.mubr.msk.f32.mxu0 %vm7413_vm0, %v7412_v2 }
0x1fa9   :  { %6734 = vmatprep.subr.bf16.mxu0 %v7411_v1 }
0x1faa   :  { %6730 = vmatpush3.bf16.msra.mxu1 %v8266_v38 }
0x1fab   :  { %6737 = vmatprep.subr.bf16.mxu1 %v7411_v1 }
0x1fac   :  { %6736 = vmatpush3.bf16.msra.mxu0 %v8306_v63 }
0x1fad   :  { %6743 = vmatprep.subr.bf16.mxu0 %v7411_v1 }
0x2078   :  { %v4013_v9 = vpop.f32.mrb[24].mxu1 }
0x2079   :  { %v4018_v37 = vrot.slane %v4013_v9, 5  ;;  %v4019_v58 = vrot.slane %v4013_v9, 6  ;;  %v6431_v59 = vpop.f32.mrb[25].mxu1 }
0x207a   :  { %v4138_v45 = vpop.f32.mrb[28].mxu0 }
0x207b   :  { %v4022_v16 = vadd.f32 %v4018_v37, %v8373_v43  ;;  %v4023_v47 = vadd.f32 %v4019_v58, %v8379_v4  ;;  %v4143_v35 = vrot.slane %v4138_v45, 4  ;;  %v4144_v42 = vrot.slane %v4138_v45, 5  ;;  %v6442_v60 = vpop.f32.mrb[29].mxu0 }
0x207d   :  { %v5966_v61 = vmul.f32 -1.442695, %v4022_v16  ;;  %v5967_v62 = vmul.f32 -1.442695, %v4023_v47  ;;  %v4147_v10 = vadd.f32 %v4143_v35, %v8375_v21  ;;  %v4148_v0 = vadd.f32 %v4144_v42, %v8381_v29 }
0x207f   :  { %7116 = vpow2.f32 %v5966_v61  ;;  %v5969_v11 = vmul.f32 -1.442695, %v4147_v10  ;;  %v5970_v54 = vmul.f32 -1.442695, %v4148_v0 }
0x2080   :  { %7118 = vpow2.f32 %v5967_v62 }
0x2081   :  { %7120 = vpow2.f32 %v5969_v11 }
0x2082   :  { %7122 = vpow2.f32 %v5970_v54 }
0x2083   :  { %7124 = vtanh.f32 %v4022_v16 }
0x2084   :  { %7126 = vtanh.f32 %v4023_v47 }
0x2085   :  { %7128 = vtanh.f32 %v4147_v10 }
0x2086   :  { %7130 = vtanh.f32 %v4148_v0 }
0x2089   :  { %v7117_v17 = vpop.eup %7116 }
0x208a   :  { %v7119_v41 = vpop.eup %7118  ;;  %v4030_v24 = vadd.f32 1.0, %v7117_v17 }
0x208b   :  { %v7121_v5 = vpop.eup %7120  ;;  %v4031_v18 = vadd.f32 1.0, %v7119_v41 }
0x208c   :  { %v7123_v56 = vpop.eup %7122  ;;  %7132 = vrcp.f32 %v4030_v24  ;;  %v4155_v8 = vadd.f32 1.0, %v7121_v5 }
0x208d   :  { %7134 = vrcp.f32 %v4031_v18  ;;  %v4156_v15 = vadd.f32 1.0, %v7123_v56  ;;  %v7125_v19 = vpop.eup %7124 }
0x208e   :  { %7136 = vrcp.f32 %v4155_v8  ;;  %v7127_v48 = vpop.eup %7126  ;;  %v4040_v51 = vrot.slane %v7125_v19, 3 }
0x208f   :  { %7138 = vrcp.f32 %v4156_v15  ;;  %v7129_v53 = vpop.eup %7128  ;;  %v4041_v28 = vrot.slane %v7127_v48, 2 }
0x2090   :  { %v7131_v39 = vpop.eup %7130  ;;  %v4165_v23 = vrot.slane %v7129_v53, 4 }
0x2091   :  { %v4166_v36 = vrot.slane %v7131_v39, 3  ;;  %v4042_v52 = vsel %vm337_vm4, %v4041_v28, %v4040_v51 }
0x2093   :  { %v4167_v9 = vsel %vm337_vm4, %v4166_v36, %v4165_v23 }
0x2096   :  { %v7133_v26 = vpop.eup %7132 }
0x2097   :  { %v7135_v31 = vpop.eup %7134  ;;  %v4046_v32 = vrot.slane %v7133_v26, 3 }
0x2098   :  { %v7137_v33 = vpop.eup %7136  ;;  %v4047_v40 = vrot.slane %v7135_v31, 2 }
0x2099   :  { %v7139_v46 = vpop.eup %7138  ;;  %v4171_v49 = vrot.slane %v7137_v33, 4 }
0x209a   :  { %v4048_v14 = vsel %vm337_vm4, %v4047_v40, %v4046_v32  ;;  %v4172_v12 = vrot.slane %v7139_v46, 3 }
0x209b   :  { %v4050_v30 = vsel %vm7692_vm5, %v4042_v52, %v4048_v14 }
0x209c   :  { %4053 = vrot.lane.b32.xlu0 %v4050_v30, %s7414_s4  ;;  %v4173_v37 = vsel %vm337_vm4, %v4172_v12, %v4171_v49  ;;  %v4051_v35 = vmul.f32 %v4050_v30, %v8492_v34 }
0x209d   :  { %v4175_v58 = vsel %vm7692_vm5, %v4167_v9, %v4173_v37 }
0x209e   :  { %4178 = vrot.lane.b32.xlu1 %v4175_v58, %s7414_s4  ;;  %v4176_v61 = vmul.f32 %v4175_v58, %v8496_v44 }
0x210e   :  { %v4054_v59 = vpop.permute.xlu0 %4053 }
0x210f   :  { %v4056_v45 = vmul.f32 %v4054_v59, %v4050_v30 }
0x2110   :  { %v4179_v16 = vpop.permute.xlu1 %4178 }
0x2111   :  { %v4181_v47 = vmul.f32 %v4179_v16, %v4175_v58  ;;  %4058 = vrot.lane.b32.xlu0 %v4056_v45, %s7415_s25 }
0x2113   :  { %4183 = vrot.lane.b32.xlu1 %v4181_v47, %s7415_s25 }
0x2183   :  { %v4059_v42 = vpop.permute.xlu0 %4058 }
0x2184   :  { %v8540_v60 = vadd.f32 %v4059_v42, %v4051_v35 }
0x2185   :  { %v4184_v62 = vpop.permute.xlu1 %4183 }
0x2186   :  { %7140 = vtanh.f32 %v8540_v60  ;;  %v8544_v10 = vadd.f32 %v4184_v62, %v4176_v61 }
0x2188   :  { %7142 = vtanh.f32 %v8544_v10 }
0x2190   :  { %v7141_v0 = vpop.eup %7140 }
0x2191   :  { %4064 = vrot.lane.b32.xlu0 %v7141_v0, %s7414_s4 }
0x2192   :  { %v7143_v11 = vpop.eup %7142 }
0x2193   :  { %4189 = vrot.lane.b32.xlu1 %v7143_v11, %s7414_s4 }
0x2203   :  { %v4065_v54 = vpop.permute.xlu0 %4064 }
0x2204   :  { %v8549_v34 = vmul.f32 %v4065_v54, %v4050_v30 }
0x2205   :  { %v4190_v17 = vpop.permute.xlu1 %4189 }
0x2206   :  { %v8551_v41 = vmul.f32 %v4190_v17, %v4175_v58  ;;  %4271 = vrot.lane.b32.xlu0 %v8549_v34, %s7415_s25 }
0x2208   :  { %4396 = vrot.lane.b32.xlu1 %v8551_v41, %s7415_s25 }
0x2278   :  { %v4272_v44 = vpop.permute.xlu0 %4271 }
0x2279   :  { %6452 = vmatmul.mubr.msk.f32.vlgmr.msra.gmra.mrb[26].mxu1 %vm240_vm6, %v4272_v44 }
0x227a   :  { %v4397_v24 = vpop.permute.xlu1 %4396  ;;  %6739 = vmatpush3.bf16.msra.mxu1 %v8235_v20  ;;  %6473 = vmatprep.mubr.msk.f32.mxu1 %vm7413_vm0, %v7412_v2 }
0x227b   :  { %6463 = vmatmul.mubr.msk.f32.vlgmr.msra.gmra.mrb[30].mxu0 %vm240_vm6, %v4397_v24  ;;  %6740 = vmatprep.subr.bf16.mxu1 %v7411_v1 }
0x227c   :  { %6745 = vmatpush3.bf16.msra.mxu0 %v8283_v22  ;;  %6484 = vmatprep.mubr.msk.f32.mxu0 %vm7413_vm0, %v7412_v2 }
0x227d   :  { %6746 = vmatprep.subr.bf16.mxu0 %v7411_v1 }
0x227e   :  { %6742 = vmatpush3.bf16.msra.mxu1 %v8266_v38 }
0x227f   :  { %6749 = vmatprep.subr.bf16.mxu1 %v7411_v1 }
0x2280   :  { %6748 = vmatpush3.bf16.msra.mxu0 %v8306_v63 }
0x2281   :  { %6755 = vmatprep.subr.bf16.mxu0 %v7411_v1 }
0x234c   :  { %v4341_v5 = vpop.f32.mrb[26].mxu1 }
0x234d   :  { %v4346_v18 = vrot.slane %v4341_v5, 4  ;;  %v4347_v56 = vrot.slane %v4341_v5, 5  ;;  %v6453_v8 = vpop.f32.mrb[27].mxu1 }
0x234e   :  { %v4466_v15 = vpop.f32.mrb[30].mxu0 }
0x234f   :  { %v4350_v19 = vadd.f32 %v4346_v18, %v8373_v43  ;;  %v4351_v48 = vadd.f32 %v4347_v56, %v8379_v4  ;;  %v4471_v53 = vrot.slane %v4466_v15, 5  ;;  %v4472_v39 = vrot.slane %v4466_v15, 6  ;;  %v6464_v26 = vpop.f32.mrb[31].mxu0 }
0x2351   :  { %v5972_v51 = vmul.f32 -1.442695, %v4350_v19  ;;  %v5973_v28 = vmul.f32 -1.442695, %v4351_v48  ;;  %v4475_v31 = vadd.f32 %v4471_v53, %v8375_v21  ;;  %v4476_v32 = vadd.f32 %v4472_v39, %v8381_v29 }
0x2353   :  { %7144 = vpow2.f32 %v5972_v51  ;;  %v5975_v33 = vmul.f32 -1.442695, %v4475_v31  ;;  %v5976_v23 = vmul.f32 -1.442695, %v4476_v32 }
0x2354   :  { %7146 = vpow2.f32 %v5973_v28 }
0x2355   :  { %7148 = vpow2.f32 %v5975_v33 }
0x2356   :  { %7150 = vpow2.f32 %v5976_v23 }
0x2357   :  { %7152 = vtanh.f32 %v4350_v19 }
0x2358   :  { %7154 = vtanh.f32 %v4351_v48 }
0x2359   :  { %7156 = vtanh.f32 %v4475_v31 }
0x235a   :  { %7158 = vtanh.f32 %v4476_v32 }
0x235d   :  { %v7145_v36 = vpop.eup %7144 }
0x235e   :  { %v7147_v40 = vpop.eup %7146  ;;  %v4358_v46 = vadd.f32 1.0, %v7145_v36 }
0x235f   :  { %v7149_v49 = vpop.eup %7148  ;;  %v4359_v52 = vadd.f32 1.0, %v7147_v40 }
0x2360   :  { %v7151_v14 = vpop.eup %7150  ;;  %7160 = vrcp.f32 %v4358_v46  ;;  %v4483_v12 = vadd.f32 1.0, %v7149_v49 }
0x2361   :  { %7162 = vrcp.f32 %v4359_v52  ;;  %v4484_v30 = vadd.f32 1.0, %v7151_v14  ;;  %v7153_v9 = vpop.eup %7152 }
0x2362   :  { %7164 = vrcp.f32 %v4483_v12  ;;  %v7155_v37 = vpop.eup %7154  ;;  %v4368_v16 = vrot.slane %v7153_v9, 4 }
0x2363   :  { %7166 = vrcp.f32 %v4484_v30  ;;  %v7157_v58 = vpop.eup %7156  ;;  %v4369_v47 = vrot.slane %v7155_v37, 3 }
0x2364   :  { %v7159_v59 = vpop.eup %7158  ;;  %v4493_v62 = vrot.slane %v7157_v58, 3 }
0x2365   :  { %v4494_v0 = vrot.slane %v7159_v59, 2  ;;  %v4370_v44 = vsel %vm337_vm4, %v4369_v47, %v4368_v16 }
0x2367   :  { %v4495_v56 = vsel %vm337_vm4, %v4494_v0, %v4493_v62 }
0x236a   :  { %v7161_v45 = vpop.eup %7160 }
0x236b   :  { %v7163_v35 = vpop.eup %7162  ;;  %v4374_v42 = vrot.slane %v7161_v45, 4 }
0x236c   :  { %v7165_v61 = vpop.eup %7164  ;;  %v4375_v11 = vrot.slane %v7163_v35, 3 }
0x236d   :  { %v7167_v54 = vpop.eup %7166  ;;  %v4499_v17 = vrot.slane %v7165_v61, 3 }
0x236e   :  { %v4376_v24 = vsel %vm337_vm4, %v4375_v11, %v4374_v42  ;;  %v4500_v5 = vrot.slane %v7167_v54, 2 }
0x236f   :  { %v4378_v18 = vsel %vm7692_vm5, %v4370_v44, %v4376_v24 }
0x2370   :  { %4381 = vrot.lane.b32.xlu0 %v4378_v18, %s7414_s4  ;;  %v4501_v8 = vsel %vm337_vm4, %v4500_v5, %v4499_v17  ;;  %v4379_v26 = vmul.f32 %v4378_v18, %v8540_v60 }
0x2371   :  { %v4503_v15 = vsel %vm7692_vm5, %v4495_v56, %v4501_v8 }
0x2372   :  { %4506 = vrot.lane.b32.xlu1 %v4503_v15, %s7414_s4  ;;  %v4504_v31 = vmul.f32 %v4503_v15, %v8544_v10 }
0x23e2   :  { %v4382_v19 = vpop.permute.xlu0 %4381 }
0x23e3   :  { %v4384_v48 = vmul.f32 %v4382_v19, %v4378_v18 }
0x23e4   :  { %v4507_v53 = vpop.permute.xlu1 %4506 }
0x23e5   :  { %v4509_v39 = vmul.f32 %v4507_v53, %v4503_v15  ;;  %4386 = vrot.lane.b32.xlu0 %v4384_v48, %s7415_s25 }
0x23e7   :  { %4511 = vrot.lane.b32.xlu1 %v4509_v39, %s7415_s25 }
0x2457   :  { %v4387_v51 = vpop.permute.xlu0 %4386 }
0x2458   :  { %v8588_v28 = vadd.f32 %v4387_v51, %v4379_v26 }
0x2459   :  { %v4512_v32 = vpop.permute.xlu1 %4511 }
0x245a   :  { %7168 = vtanh.f32 %v8588_v28  ;;  %v8592_v33 = vadd.f32 %v4512_v32, %v4504_v31 }
0x245c   :  { %7170 = vtanh.f32 %v8592_v33 }
0x2464   :  { %v7169_v23 = vpop.eup %7168 }
0x2465   :  { %4392 = vrot.lane.b32.xlu0 %v7169_v23, %s7414_s4 }
0x2466   :  { %v7171_v36 = vpop.eup %7170 }
0x2467   :  { %4517 = vrot.lane.b32.xlu1 %v7171_v36, %s7414_s4 }
0x24d7   :  { %v4393_v40 = vpop.permute.xlu0 %4392 }
0x24d8   :  { %v8597_v60 = vmul.f32 %v4393_v40, %v4378_v18 }
0x24d9   :  { %v4518_v46 = vpop.permute.xlu1 %4517 }
0x24da   :  { %v8599_v49 = vmul.f32 %v4518_v46, %v4503_v15  ;;  %4599 = vrot.lane.b32.xlu0 %v8597_v60, %s7415_s25 }
0x24dc   :  { %4724 = vrot.lane.b32.xlu1 %v8599_v49, %s7415_s25 }
0x254c   :  { %v4600_v10 = vpop.permute.xlu0 %4599 }
0x254d   :  { %6474 = vmatmul.mubr.msk.f32.vlgmr.msra.gmra.mrb[28].mxu1 %vm240_vm6, %v4600_v10 }
0x254e   :  { %v4725_v52 = vpop.permute.xlu1 %4724  ;;  %6751 = vmatpush3.bf16.msra.mxu1 %v8235_v20  ;;  %6495 = vmatprep.mubr.msk.f32.mxu1 %vm7413_vm0, %v7412_v2 }
0x254f   :  { %6485 = vmatmul.mubr.msk.f32.vlgmr.msra.gmra.mrb[32].mxu0 %vm240_vm6, %v4725_v52  ;;  %6752 = vmatprep.subr.bf16.mxu1 %v7411_v1 }
0x2550   :  { %6757 = vmatpush3.bf16.msra.mxu0 %v8283_v22  ;;  %6506 = vmatprep.mubr.msk.f32.mxu0 %vm7413_vm0, %v7412_v2 }
0x2551   :  { %6758 = vmatprep.subr.bf16.mxu0 %v7411_v1 }
0x2552   :  { %6754 = vmatpush3.bf16.msra.mxu1 %v8266_v38 }
0x2553   :  { %6761 = vmatprep.subr.bf16.mxu1 %v7411_v1 }
0x2554   :  { %6760 = vmatpush3.bf16.msra.mxu0 %v8306_v63 }
0x2555   :  { %6767 = vmatprep.subr.bf16.mxu0 %v7411_v1 }
0x2620   :  { %v4669_v14 = vpop.f32.mrb[28].mxu1 }
0x2621   :  { %v4674_v12 = vrot.slane %v4669_v14, 3  ;;  %v4675_v30 = vrot.slane %v4669_v14, 4  ;;  %v6475_v9 = vpop.f32.mrb[29].mxu1 }
0x2622   :  { %v4794_v37 = vpop.f32.mrb[32].mxu0 }
0x2623   :  { %v4678_v58 = vadd.f32 %v4674_v12, %v8373_v43  ;;  %v4679_v59 = vadd.f32 %v4675_v30, %v8379_v4  ;;  %v4799_v45 = vrot.slane %v4794_v37, 6  ;;  %v4800_v16 = vrot.slane %v4794_v37, 7  ;;  %v6486_v47 = vpop.f32.mrb[33].mxu0 }
0x2625   :  { %v5978_v35 = vmul.f32 -1.442695, %v4678_v58  ;;  %v5979_v42 = vmul.f32 -1.442695, %v4679_v59  ;;  %v4803_v61 = vadd.f32 %v4799_v45, %v8375_v21  ;;  %v4804_v62 = vadd.f32 %v4800_v16, %v8381_v29 }
0x2627   :  { %7172 = vpow2.f32 %v5978_v35  ;;  %v5981_v0 = vmul.f32 -1.442695, %v4803_v61  ;;  %v5982_v11 = vmul.f32 -1.442695, %v4804_v62 }
0x2628   :  { %7174 = vpow2.f32 %v5979_v42 }
0x2629   :  { %7176 = vpow2.f32 %v5981_v0 }
0x262a   :  { %7178 = vpow2.f32 %v5982_v11 }
0x262b   :  { %7180 = vtanh.f32 %v4678_v58 }
0x262c   :  { %7182 = vtanh.f32 %v4679_v59 }
0x262d   :  { %7184 = vtanh.f32 %v4803_v61 }
0x262e   :  { %7186 = vtanh.f32 %v4804_v62 }
0x2631   :  { %v7173_v54 = vpop.eup %7172 }
0x2632   :  { %v7175_v17 = vpop.eup %7174  ;;  %v4686_v44 = vadd.f32 1.0, %v7173_v54 }
0x2633   :  { %v7177_v24 = vpop.eup %7176  ;;  %v4687_v5 = vadd.f32 1.0, %v7175_v17 }
0x2634   :  { %v7179_v18 = vpop.eup %7178  ;;  %7188 = vrcp.f32 %v4686_v44  ;;  %v4811_v56 = vadd.f32 1.0, %v7177_v24 }
0x2635   :  { %7190 = vrcp.f32 %v4687_v5  ;;  %v4812_v8 = vadd.f32 1.0, %v7179_v18  ;;  %v7181_v15 = vpop.eup %7180 }
0x2636   :  { %7192 = vrcp.f32 %v4811_v56  ;;  %v7183_v19 = vpop.eup %7182  ;;  %v4696_v26 = vrot.slane %v7181_v15, 5 }
0x2637   :  { %7194 = vrcp.f32 %v4812_v8  ;;  %v7185_v48 = vpop.eup %7184  ;;  %v4697_v51 = vrot.slane %v7183_v19, 4 }
0x2638   :  { %v7187_v53 = vpop.eup %7186  ;;  %v4821_v36 = vrot.slane %v7185_v48, 2 }
0x2639   :  { %v4822_v40 = vrot.slane %v7187_v53, 1  ;;  %v4698_v14 = vsel %vm337_vm4, %v4697_v51, %v4696_v26 }
0x263b   :  { %v4823_v37 = vsel %vm337_vm4, %v4822_v40, %v4821_v36 }
0x263e   :  { %v7189_v39 = vpop.eup %7188 }
0x263f   :  { %v7191_v31 = vpop.eup %7190  ;;  %v4702_v32 = vrot.slane %v7189_v39, 5 }
0x2640   :  { %v7193_v23 = vpop.eup %7192  ;;  %v4703_v46 = vrot.slane %v7191_v31, 4 }
0x2641   :  { %v7195_v10 = vpop.eup %7194  ;;  %v4827_v52 = vrot.slane %v7193_v23, 2 }
0x2642   :  { %v4704_v12 = vsel %vm337_vm4, %v4703_v46, %v4702_v32  ;;  %v4828_v30 = vrot.slane %v7195_v10, 1 }
0x2643   :  { %v4706_v9 = vsel %vm7692_vm5, %v4698_v14, %v4704_v12 }
0x2644   :  { %4709 = vrot.lane.b32.xlu0 %v4706_v9, %s7414_s4  ;;  %v4829_v58 = vsel %vm337_vm4, %v4828_v30, %v4827_v52  ;;  %v4707_v42 = vmul.f32 %v4706_v9, %v8588_v28 }
0x2645   :  { %v4831_v59 = vsel %vm7692_vm5, %v4823_v37, %v4829_v58 }
0x2646   :  { %4834 = vrot.lane.b32.xlu1 %v4831_v59, %s7414_s4  ;;  %v4832_v0 = vmul.f32 %v4831_v59, %v8592_v33 }
0x26b6   :  { %v4710_v45 = vpop.permute.xlu0 %4709 }
0x26b7   :  { %v4712_v16 = vmul.f32 %v4710_v45, %v4706_v9 }
0x26b8   :  { %v4835_v47 = vpop.permute.xlu1 %4834 }
0x26b9   :  { %v4837_v35 = vmul.f32 %v4835_v47, %v4831_v59  ;;  %4714 = vrot.lane.b32.xlu0 %v4712_v16, %s7415_s25 }
0x26bb   :  { %4839 = vrot.lane.b32.xlu1 %v4837_v35, %s7415_s25 }
0x272b   :  { %v4715_v61 = vpop.permute.xlu0 %4714 }
0x272c   :  { %v8636_v62 = vadd.f32 %v4715_v61, %v4707_v42 }
0x272d   :  { %v4840_v11 = vpop.permute.xlu1 %4839 }
0x272e   :  { %7196 = vtanh.f32 %v8636_v62  ;;  %v8640_v54 = vadd.f32 %v4840_v11, %v4832_v0 }
0x2730   :  { %7198 = vtanh.f32 %v8640_v54 }
0x2738   :  { %v7197_v17 = vpop.eup %7196 }
0x2739   :  { %4720 = vrot.lane.b32.xlu0 %v7197_v17, %s7414_s4 }
0x273a   :  { %v7199_v44 = vpop.eup %7198 }
0x273b   :  { %4845 = vrot.lane.b32.xlu1 %v7199_v44, %s7414_s4 }
0x27ab   :  { %v4721_v24 = vpop.permute.xlu0 %4720 }
0x27ac   :  { %v8645_v28 = vmul.f32 %v4721_v24, %v4706_v9 }
0x27ad   :  { %v4846_v5 = vpop.permute.xlu1 %4845 }
0x27ae   :  { %v8647_v18 = vmul.f32 %v4846_v5, %v4831_v59  ;;  %4927 = vrot.lane.b32.xlu0 %v8645_v28, %s7415_s25 }
0x27b0   :  { %5052 = vrot.lane.b32.xlu1 %v8647_v18, %s7415_s25 }
0x2820   :  { %v4928_v33 = vpop.permute.xlu0 %4927 }
0x2821   :  { %6496 = vmatmul.mubr.msk.f32.vlgmr.msra.gmra.mrb[30].mxu1 %vm240_vm6, %v4928_v33 }
0x2822   :  { %v5053_v56 = vpop.permute.xlu1 %5052  ;;  %6763 = vmatpush3.bf16.msra.mxu1 %v8235_v20  ;;  %6517 = vmatprep.mubr.msk.f32.mxu1 %vm7413_vm0, %v7412_v2 }
0x2823   :  { %6507 = vmatmul.mubr.msk.f32.vlgmr.msra.gmra.mrb[34].mxu0 %vm240_vm6, %v5053_v56  ;;  %6764 = vmatprep.subr.bf16.mxu1 %v7411_v1 }
0x2824   :  { %6769 = vmatpush3.bf16.msra.mxu0 %v8283_v22  ;;  %6528 = vmatprep.mubr.msk.f32.mxu0 %vm7413_vm0, %v7412_v2 }
0x2825   :  { %6770 = vmatprep.subr.bf16.mxu0 %v7411_v1 }
0x2826   :  { %6766 = vmatpush3.bf16.msra.mxu1 %v8266_v38 }
0x2827   :  { %6773 = vmatprep.subr.bf16.mxu1 %v7411_v1 }
0x2828   :  { %6772 = vmatpush3.bf16.msra.mxu0 %v8306_v63 }
0x2829   :  { %6785 = vmatprep.subr.bf16.mxu0 %v7411_v1 }
0x28f4   :  { %v4997_v20 = vpop.f32.mrb[30].mxu1 }
0x28f5   :  { %v5002_v8 = vrot.slane %v4997_v20, 2  ;;  %v5003_v15 = vrot.slane %v4997_v20, 3  ;;  %v6497_v19 = vpop.f32.mrb[31].mxu1 }
0x28f6   :  { %v5122_v48 = vpop.f32.mrb[34].mxu0 }
0x28f7   :  { %v5006_v22 = vadd.f32 %v5002_v8, %v8373_v43  ;;  %v5007_v53 = vadd.f32 %v5003_v15, %v8379_v4  ;;  %v5127_v39 = vrot.slane %v5122_v48, 7  ;;  %v5131_v26 = vadd.f32 %v5122_v48, %v8381_v29  ;;  %v6508_v51 = vpop.f32.mrb[35].mxu0 }
0x28f9   :  { %v5984_v38 = vmul.f32 -1.442695, %v5006_v22  ;;  %v5985_v31 = vmul.f32 -1.442695, %v5007_v53  ;;  %v5130_v32 = vadd.f32 %v5127_v39, %v8375_v21  ;;  %v5988_v63 = vmul.f32 -1.442695, %v5131_v26 }
0x28fb   :  { %7200 = vpow2.f32 %v5984_v38  ;;  %v5987_v23 = vmul.f32 -1.442695, %v5130_v32 }
0x28fc   :  { %7202 = vpow2.f32 %v5985_v31 }
0x28fd   :  { %7204 = vpow2.f32 %v5987_v23 }
0x28fe   :  { %7206 = vpow2.f32 %v5988_v63 }
0x28ff   :  { %7208 = vtanh.f32 %v5006_v22 }
0x2900   :  { %7210 = vtanh.f32 %v5007_v53 }
0x2901   :  { %7212 = vtanh.f32 %v5130_v32 }
0x2905   :  { %v7201_v36 = vpop.eup %7200 }
0x2906   :  { %v7203_v40 = vpop.eup %7202  ;;  %v5014_v46 = vadd.f32 1.0, %v7201_v36 }
0x2907   :  { %v7205_v10 = vpop.eup %7204  ;;  %v5015_v52 = vadd.f32 1.0, %v7203_v40 }
0x2908   :  { %v7207_v14 = vpop.eup %7206  ;;  %7214 = vrcp.f32 %v5014_v46  ;;  %v5138_v12 = vadd.f32 1.0, %v7205_v10 }
0x2909   :  { %7216 = vrcp.f32 %v5015_v52  ;;  %v5139_v30 = vadd.f32 1.0, %v7207_v14  ;;  %v7209_v9 = vpop.eup %7208 }
0x290a   :  { %7218 = vrcp.f32 %v5138_v12  ;;  %v7211_v37 = vpop.eup %7210  ;;  %v5024_v45 = vrot.slane %v7209_v9, 6 }
0x290b   :  { %7220 = vtanh.f32 %v5131_v26  ;;  %v7213_v58 = vpop.eup %7212  ;;  %v5025_v16 = vrot.slane %v7211_v37, 5 }
0x290c   :  { %7222 = vrcp.f32 %v5139_v30  ;;  %v5148_v35 = vrot.slane %v7213_v58, 1 }
0x290d   :  { %v5026_v24 = vsel %vm337_vm4, %v5025_v16, %v5024_v45 }
0x2912   :  { %v7215_v59 = vpop.eup %7214 }
0x2913   :  { %v7217_v47 = vpop.eup %7216  ;;  %v5030_v42 = vrot.slane %v7215_v59, 6 }
0x2914   :  { %v7219_v61 = vpop.eup %7218  ;;  %v5031_v0 = vrot.slane %v7217_v47, 5 }
0x2915   :  { %v7221_v11 = vpop.eup %7220  ;;  %v5153_v17 = vrot.slane %v7219_v61, 1 }
0x2916   :  { %v7223_v44 = vpop.eup %7222  ;;  %v5032_v5 = vsel %vm337_vm4, %v5031_v0, %v5030_v42  ;;  %v5149_v56 = vsel %vm337_vm4, %v7221_v11, %v5148_v35 }
0x2917   :  { %v5034_v33 = vsel %vm7692_vm5, %v5026_v24, %v5032_v5  ;;  %v5154_v20 = vsel %vm337_vm4, %v7223_v44, %v5153_v17 }
0x2918   :  { %5037 = vrot.lane.b32.xlu0 %v5034_v33, %s7414_s4  ;;  %v5156_v8 = vsel %vm7692_vm5, %v5149_v56, %v5154_v20  ;;  %v5035_v53 = vmul.f32 %v5034_v33, %v8636_v62 }
0x2919   :  { %5159 = vrot.lane.b32.xlu1 %v5156_v8, %s7414_s4  ;;  %v5157_v26 = vmul.f32 %v5156_v8, %v8640_v54 }
0x298a   :  { %v5038_v15 = vpop.permute.xlu0 %5037 }
0x298b   :  { %v5040_v19 = vmul.f32 %v5038_v15, %v5034_v33  ;;  %v5160_v48 = vpop.permute.xlu1 %5159 }
0x298c   :  { %v5162_v22 = vmul.f32 %v5160_v48, %v5156_v8 }
0x298d   :  { %5042 = vrot.lane.b32.xlu0 %v5040_v19, %s7415_s25 }
0x298e   :  { %5164 = vrot.lane.b32.xlu1 %v5162_v22, %s7415_s25 }
0x29ff   :  { %v5043_v39 = vpop.permute.xlu0 %5042 }
0x2a00   :  { %v8685_v51 = vadd.f32 %v5043_v39, %v5035_v53  ;;  %v5165_v38 = vpop.permute.xlu1 %5164 }
0x2a01   :  { %v8687_v31 = vadd.f32 %v5165_v38, %v5157_v26 }
0x2a02   :  { %7224 = vtanh.f32 %v8685_v51 }
0x2a03   :  { %7226 = vtanh.f32 %v8687_v31 }
0x2a0c   :  { %v7225_v32 = vpop.eup %7224 }
0x2a0d   :  { %v7227_v63 = vpop.eup %7226  ;;  %5048 = vrot.lane.b32.xlu0 %v7225_v32, %s7414_s4 }
0x2a0e   :  { %5170 = vrot.lane.b32.xlu1 %v7227_v63, %s7414_s4 }
0x2a7f   :  { %v5049_v23 = vpop.permute.xlu0 %5048 }
0x2a80   :  { %v8693_v62 = vmul.f32 %v5049_v23, %v5034_v33  ;;  %v5171_v36 = vpop.permute.xlu1 %5170 }
0x2a81   :  { %v8695_v54 = vmul.f32 %v5171_v36, %v5156_v8 }
0x2a82   :  { %5252 = vrot.lane.b32.xlu0 %v8693_v62, %s7415_s25 }
0x2a83   :  { %5377 = vrot.lane.b32.xlu1 %v8695_v54, %s7415_s25 }
0x2af4   :  { %v5253_v40 = vpop.permute.xlu0 %5252 }
0x2af5   :  { %v5378_v46 = vpop.permute.xlu1 %5377  ;;  %6518 = vmatmul.mubr.msk.f32.vlgmr.msra.gmra.mrb[32].mxu1 %vm240_vm6, %v5253_v40 }
0x2af6   :  { %6529 = vmatmul.mubr.msk.f32.vlgmr.msra.gmra.mrb[36].mxu0 %vm240_vm6, %v5378_v46  ;;  %6547 = vmatprep.mubr.msk.f32.mxu1 %vm7413_vm0, %v7412_v2 }
0x2af7   :  { %6558 = vmatprep.mubr.msk.f32.mxu0 %vm7413_vm0, %v7412_v2 }
0x2bc8   :  { %v5322_v10 = vpop.f32.mrb[32].mxu1 }
0x2bc9   :  { %v5327_v52 = vrot.slane %v5322_v10, 1  ;;  %v5328_v14 = vrot.slane %v5322_v10, 2  ;;  %v6519_v12 = vpop.f32.mrb[33].mxu1  ;;  %v5447_v30 = vpop.f32.mrb[36].mxu0 }
0x2bca   :  { %v5452_v9 = vrot.slane %v5447_v30, 1  ;;  %v5455_v37 = vadd.f32 %v5447_v30, %v8375_v21  ;;  %v6530_v58 = vpop.f32.mrb[37].mxu0 }
0x2bcb   :  { %v5331_v59 = vadd.f32 %v5327_v52, %v8373_v43  ;;  %v5332_v45 = vadd.f32 %v5328_v14, %v8379_v4 }
0x2bcc   :  { %v5456_v16 = vadd.f32 %v5452_v9, %v8381_v29  ;;  %v5993_v42 = vmul.f32 -1.442695, %v5455_v37 }
0x2bcd   :  { %v5990_v47 = vmul.f32 -1.442695, %v5331_v59  ;;  %v5991_v35 = vmul.f32 -1.442695, %v5332_v45 }
0x2bce   :  { %v5994_v61 = vmul.f32 -1.442695, %v5456_v16 }
0x2bcf   :  { %7228 = vpow2.f32 %v5990_v47  ;;  %v8753_v47 = vrot.slane %v8455_v55, %v8045_v50 }
0x2bd0   :  { %7230 = vpow2.f32 %v5991_v35  ;;  %v8760_v35 = vrot.slane %v8501_v7, %v8045_v50  ;;  %v8775_v7 = vrot.slane %v8549_v34, %v8045_v50 }
0x2bd1   :  { %7232 = vpow2.f32 %v5993_v42 }
0x2bd2   :  { %7234 = vpow2.f32 %v5994_v61  ;;  %v3584_v61 = vcombine.high %v8753_v47, %v8753_v47 }
0x2bd3   :  { %7236 = vtanh.f32 %v5331_v59  ;;  %v8737_v59 = vrot.slane %v8405_v3, %v8045_v50 }
0x2bd4   :  { %7238 = vtanh.f32 %v5332_v45  ;;  %v8741_v45 = vrot.slane %v8407_v27, %v8045_v50 }
0x2bd5   :  { %7240 = vtanh.f32 %v5456_v16  ;;  %v8747_v16 = vrot.slane %v8453_v13, %v8045_v50 }
0x2bd7   :  { %v3545_v27 = vcombine.high %v8747_v16, %v8747_v16 }
0x2bd9   :  { %v7229_v2 = vpop.eup %7228 }
0x2bda   :  { %v7231_v0 = vpop.eup %7230  ;;  %v5339_v21 = vadd.f32 1.0, %v7229_v2  ;;  %v8767_v2 = vrot.slane %v8503_v57, %v8045_v50 }
0x2bdb   :  { %v7233_v11 = vpop.eup %7232  ;;  %v5340_v17 = vadd.f32 1.0, %v7231_v0  ;;  %v3559_v0 = vrot.slane %v3545_v27, %v8045_v50  ;;  %v3591_v27 = vrot.slane %v8753_v47, %v8045_v50  ;;  %v4208_v47 = vrot.slane %v8775_v7, %v8045_v50 }
0x2bdc   :  { %v7235_v43 = vpop.eup %7234  ;;  %7242 = vrcp.f32 %v5339_v21  ;;  %v5463_v4 = vadd.f32 1.0, %v7233_v11  ;;  %v3873_v21 = vcombine.high %v8760_v35, %v8760_v35  ;;  %v3912_v57 = vcombine.high %v8767_v2, %v8767_v2 }
0x2bdd   :  { %7244 = vrcp.f32 %v5340_v17  ;;  %v5464_v29 = vadd.f32 1.0, %v7235_v43  ;;  %v7237_v44 = vpop.eup %7236  ;;  %v3598_v17 = vrot.slane %v3584_v61, %v8045_v50  ;;  %v8784_v43 = vrot.slane %v8551_v41, %v8045_v50 }
0x2bde   :  { %v7239_v24 = vpop.eup %7238  ;;  %v5349_v56 = vrot.slane %v7237_v44, 7  ;;  %v3887_v34 = vrot.slane %v3873_v21, %v8045_v50  ;;  %v8793_v44 = vrot.slane %v8597_v60, %v8045_v50  ;;  %v3926_v41 = vrot.slane %v3912_v57, %v8045_v50 }
0x2bdf   :  { %7246 = vrcp.f32 %v5464_v29  ;;  %v7241_v5 = vpop.eup %7240  ;;  %v5350_v20 = vrot.slane %v7239_v24, 6  ;;  %v4201_v29 = vcombine.high %v8775_v7, %v8775_v7  ;;  %v3567_v24 = vrot.slane %v3559_v0, %v7674_v25 }
0x2be0   :  { %7248 = vtanh.f32 %v5455_v37  ;;  %v5473_v19 = vrot.slane %v7241_v5, 7  ;;  %v4240_v5 = vcombine.high %v8784_v43, %v8784_v43  ;;  %v4219_v0 = vrot.slane %v4208_v47, %v7674_v25 }
0x2be1   :  { %7250 = vrcp.f32 %v5463_v4  ;;  %v5351_v39 = vsel %vm337_vm4, %v5350_v20, %v5349_v56  ;;  %v3606_v56 = vrot.slane %v3598_v17, %v7674_v25  ;;  %v4215_v60 = vrot.slane %v4201_v29, %v8045_v50 }
0x2be2   :  { %v4529_v20 = vcombine.high %v8793_v44, %v8793_v44 }
0x2be6   :  { %v7243_v33 = vpop.eup %7242 }
0x2be7   :  { %v7245_v8 = vpop.eup %7244  ;;  %v5355_v15 = vrot.slane %v7243_v33, 7  ;;  %v8802_v33 = vrot.slane %v8599_v49, %v8045_v50  ;;  %v4254_v49 = vrot.slane %v4240_v5, %v8045_v50 }
0x2be8   :  { %v5356_v48 = vrot.slane %v7245_v8, 6  ;;  %v8811_v8 = vrot.slane %v8645_v28, %v8045_v50  ;;  %v4543_v28 = vrot.slane %v4529_v20, %v8045_v50 }
0x2be9   :  { %v7247_v22 = vpop.eup %7246  ;;  %v4575_v7 = vrot.slane %v8802_v33, %v8045_v50 }
0x2bea   :  { %v7249_v53 = vpop.eup %7248  ;;  %v5357_v26 = vsel %vm337_vm4, %v5356_v48, %v5355_v15  ;;  %v5478_v38 = vrot.slane %v7247_v22, 7  ;;  %v3895_v15 = vrot.slane %v3887_v34, %v7674_v25  ;;  %v8820_v48 = vrot.slane %v8647_v18, %v8045_v50 }
0x2beb   :  { %v7251_v32 = vpop.eup %7250  ;;  %v8715_v63 = vsel %vm7692_vm5, %v5351_v39, %v5357_v26  ;;  %v5474_v23 = vsel %vm337_vm4, %v5473_v19, %v7249_v53  ;;  %v4568_v19 = vcombine.high %v8802_v33, %v8802_v33  ;;  %v3934_v22 = vrot.slane %v3926_v41, %v7674_v25 }
0x2bec   :  { %5362 = vrot.lane.b32.xlu0 %v8715_v63, %s7414_s4  ;;  %v5479_v36 = vsel %vm337_vm4, %v5478_v38, %v7251_v32  ;;  %v5360_v12 = vmul.f32 %v8715_v63, %v8685_v51  ;;  %v3220_v51 = vcombine.high %v8737_v59, %v8737_v59  ;;  %v4857_v53 = vcombine.high %v8811_v8, %v8811_v8 }
0x2bed   :  { %v8723_v40 = vsel %vm7692_vm5, %v5474_v23, %v5479_v36  ;;  %v8829_v39 = vrot.slane %v8693_v62, %v8045_v50  ;;  %v4223_v26 = vrot.slane %v4215_v60, %v7674_v25  ;;  %v4582_v18 = vrot.slane %v4568_v19, %v8045_v50 }
0x2bee   :  { %5484 = vrot.lane.b32.xlu1 %v8723_v40, %s7414_s4  ;;  %v5482_v9 = vmul.f32 %v8723_v40, %v8687_v31  ;;  %v3259_v31 = vcombine.high %v8741_v45, %v8741_v45  ;;  %v3234_v3 = vrot.slane %v3220_v51, %v8045_v50  ;;  %v4896_v38 = vcombine.high %v8820_v48, %v8820_v48 }
0x2bef   :  { %v5220_v32 = vrot.slane %v8695_v54, %v8045_v50  ;;  %v4262_v23 = vrot.slane %v4254_v49, %v7674_v25  ;;  %v4871_v36 = vrot.slane %v4857_v53, %v8045_v50  ;;  %v5182_v62 = vcombine.high %v8829_v39, %v8829_v39 }
0x2bf0   :  { %v3273_v13 = vrot.slane %v3259_v31, %v8045_v50  ;;  %v3242_v11 = vrot.slane %v3234_v3, %v7674_v25  ;;  %v4590_v54 = vrot.slane %v4582_v18, %v7674_v25  ;;  %v3552_v3 = vrot.slane %v8747_v16, %v8045_v50 }
0x2bf1   :  { %v3919_v16 = vrot.slane %v8767_v2, %v8045_v50  ;;  %v4536_v2 = vrot.slane %v8793_v44, %v8045_v50  ;;  %v4864_v17 = vrot.slane %v8811_v8, %v8045_v50  ;;  %v4586_v57 = vrot.slane %v4575_v7, %v7674_v25 }
0x2bf2   :  { %v3281_v4 = vrot.slane %v3273_v13, %v7674_v25  ;;  %v3602_v13 = vrot.slane %v3591_v27, %v7674_v25  ;;  %v5189_v34 = vrot.slane %v8829_v39, %v8045_v50  ;;  %v5228_v44 = vrot.slane %v5220_v32, %v8045_v50 }
0x2bf4   :  { %v5239_v41 = vrot.slane %v5228_v44, %v7674_v25 }
0x2c5e   :  { %v5363_v46 = vpop.permute.xlu0 %5362 }
0x2c5f   :  { %v5365_v10 = vmul.f32 %v5363_v46, %v8715_v63  ;;  %v4551_v46 = vrot.slane %v4543_v28, %v7674_v25 }
0x2c60   :  { %v5485_v52 = vpop.permute.xlu1 %5484 }
0x2c61   :  { %v5487_v14 = vmul.f32 %v5485_v52, %v8723_v40  ;;  %5367 = vrot.lane.b32.xlu0 %v5365_v10, %s7415_s25  ;;  %v4910_v10 = vrot.slane %v4896_v38, %v8045_v50  ;;  %v5221_v52 = vcombine.high %v5220_v32, %v5220_v32 }
0x2c63   :  { %5489 = vrot.lane.b32.xlu1 %v5487_v14, %s7415_s25  ;;  %v5196_v14 = vrot.slane %v5182_v62, %v8045_v50 }
0x2cd3   :  { %v5368_v30 = vpop.permute.xlu0 %5367 }
0x2cd4   :  { %v5370_v6 = vadd.f32 %v5368_v30, %v5360_v12  ;;  %v4879_v12 = vrot.slane %v4871_v36, %v7674_v25  ;;  %v5235_v30 = vrot.slane %v5221_v52, %v8045_v50 }
0x2cd5   :  { %v5490_v37 = vpop.permute.xlu1 %5489 }
0x2cd6   :  { %7252 = vtanh.f32 %v5370_v6  ;;  %v5492_v58 = vadd.f32 %v5490_v37, %v5482_v9  ;;  %v4918_v6 = vrot.slane %v4910_v10, %v7674_v25  ;;  %v3227_v9 = vrot.slane %v8737_v59, %v8045_v50 }
0x2cd7   :  { %v5204_v37 = vrot.slane %v5196_v14, %v7674_v25  ;;  %v5243_v51 = vrot.slane %v5235_v30, %v7674_v25 }
0x2cd8   :  { %7254 = vtanh.f32 %v5492_v58  ;;  %v3266_v58 = vrot.slane %v8741_v45, %v8045_v50  ;;  %v3238_v31 = vrot.slane %v3227_v9, %v7674_v25  ;;  %v3563_v45 = vrot.slane %v3552_v3, %v7674_v25 }
0x2cda   :  { %v3277_v59 = vrot.slane %v3266_v58, %v7674_v25 }
0x2ce0   :  { %v7253_v42 = vpop.eup %7252 }
0x2ce1   :  { %5373 = vrot.lane.b32.xlu0 %v7253_v42, %s7414_s4  ;;  %v3880_v42 = vrot.slane %v8760_v35, %v8045_v50  ;;  %v4247_v35 = vrot.slane %v8784_v43, %v8045_v50  ;;  %v4903_v43 = vrot.slane %v8820_v48, %v8045_v50 }
0x2ce2   :  { %v7255_v55 = vpop.eup %7254 }
0x2ce3   :  { %5495 = vrot.lane.b32.xlu1 %v7255_v55, %s7414_s4  ;;  %v3891_v61 = vrot.slane %v3880_v42, %v7674_v25  ;;  %v3930_v55 = vrot.slane %v3919_v16, %v7674_v25  ;;  %v4258_v21 = vrot.slane %v4247_v35, %v7674_v25  ;;  %v4914_v29 = vrot.slane %v4903_v43, %v7674_v25 }
0x2ce5   :  { %3245 = vrot.lane.b32.xlu0 %v3242_v11, %s7415_s25  ;;  %v4547_v11 = vrot.slane %v4536_v2, %v7674_v25 }
0x2ce7   :  { %3284 = vrot.lane.b32.xlu1 %v3281_v4, %s7414_s4  ;;  %v4875_v4 = vrot.slane %v4864_v17, %v7674_v25 }
0x2ce9   :  { %3570 = vrot.lane.b32.xlu0 %v3567_v24, %s7415_s25  ;;  %v5200_v24 = vrot.slane %v5189_v34, %v7674_v25  ;;  %v5996_v34 = vld [vmem:[#allocation4] ss:$0 sm:$0xff] }
0x2ceb   :  { %3609 = vrot.lane.b32.xlu1 %v3606_v56, %s7414_s4 }
0x2ced   :  { %3898 = vrot.lane.b32.xlu0 %v3895_v15, %s7415_s25 }
0x2cef   :  { %3937 = vrot.lane.b32.xlu1 %v3934_v22, %s7414_s4 }
0x2cf1   :  { %4226 = vrot.lane.b32.xlu0 %v4223_v26, %s7415_s25 }
0x2cf3   :  { %4265 = vrot.lane.b32.xlu1 %v4262_v23, %s7414_s4 }
0x2cf5   :  { %4554 = vrot.lane.b32.xlu0 %v4551_v46, %s7415_s25 }
0x2cf7   :  { %4593 = vrot.lane.b32.xlu1 %v4590_v54, %s7414_s4 }
0x2cf9   :  { %4882 = vrot.lane.b32.xlu0 %v4879_v12, %s7415_s25 }
0x2cfb   :  { %4921 = vrot.lane.b32.xlu1 %v4918_v6, %s7414_s4 }
0x2cfd   :  { %5207 = vrot.lane.b32.xlu0 %v5204_v37, %s7415_s25 }
0x2cff   :  { %5246 = vrot.lane.b32.xlu1 %v5243_v51, %s7414_s4 }
0x2d01   :  { %3243 = vrot.lane.b32.xlu0 %v3238_v31, %s7415_s25 }
0x2d03   :  { %3282 = vrot.lane.b32.xlu1 %v3277_v59, %s7414_s4 }
0x2d05   :  { %3568 = vrot.lane.b32.xlu0 %v3563_v45, %s7415_s25 }
0x2d07   :  { %3607 = vrot.lane.b32.xlu1 %v3602_v13, %s7414_s4 }
0x2d09   :  { %3896 = vrot.lane.b32.xlu0 %v3891_v61, %s7415_s25 }
0x2d0b   :  { %3935 = vrot.lane.b32.xlu1 %v3930_v55, %s7414_s4 }
0x2d0d   :  { %4224 = vrot.lane.b32.xlu0 %v4219_v0, %s7415_s25  ;;  %v5995_v0 = vld [vmem:[%s9063_s9] ss:$0 sm:$0xff] }
0x2d0f   :  { %4263 = vrot.lane.b32.xlu1 %v4258_v21, %s7414_s4 }
0x2d11   :  { %4552 = vrot.lane.b32.xlu0 %v4547_v11, %s7415_s25 }
0x2d13   :  { %4591 = vrot.lane.b32.xlu1 %v4586_v57, %s7414_s4 }
0x2d15   :  { %4880 = vrot.lane.b32.xlu0 %v4875_v4, %s7415_s25  ;;  %v7417_v4 = vmov 0  }
0x2d16   :  { %6806 = vset.pattern.permute.xlu0 %v7417_v4  ;;  %6807 = vset.pattern.permute.xlu1 %v7417_v4 }
0x2d17   :  { %4919 = vrot.lane.b32.xlu1 %v4914_v29, %s7414_s4 }
0x2d19   :  { %5205 = vrot.lane.b32.xlu0 %v5200_v24, %s7415_s25 }
0x2d1b   :  { %5244 = vrot.lane.b32.xlu1 %v5239_v41, %s7414_s4 }
0x2d53   :  { %v5374_v5 = vpop.permute.xlu0 %5373 }
0x2d54   :  { %v5376_v33 = vmul.f32 %v5374_v5, %v8715_v63 }
0x2d55   :  { %v5496_v56 = vpop.permute.xlu1 %5495 }
0x2d56   :  { %v5506_v60 = vrot.slane %v5376_v33, %v8045_v50  ;;  %v5498_v20 = vmul.f32 %v5496_v56, %v8723_v40 }
0x2d57   :  { %v3246_v8 = vpop.permute.xlu0 %3245 }
0x2d58   :  { %v5507_v15 = vcombine.high %v5506_v60, %v5506_v60  ;;  %v5545_v49 = vrot.slane %v5498_v20, %v8045_v50  ;;  %3250 = vst.msk [vmem:[#allocation3 + $0x8] sm:$0x1] %vm521_vm7, %v3246_v8  ;;  %v5514_v63 = vrot.slane %v5506_v60, %v8045_v50 }
0x2d59   :  { %v3285_v19 = vpop.permute.xlu1 %3284 }
0x2d5a   :  { %v5521_v48 = vrot.slane %v5507_v15, %v8045_v50  ;;  %v5546_v22 = vcombine.high %v5545_v49, %v5545_v49  ;;  %3289 = vst.msk [vmem:[#allocation3 + $0xf] sm:$0x1] %vm561_vm8, %v3285_v19  ;;  %v5553_v26 = vrot.slane %v5545_v49, %v8045_v50  ;;  %v5525_v32 = vrot.slane %v5514_v63, %v7674_v25 }
0x2d5b   :  { %v3571_v28 = vpop.permute.xlu0 %3570 }
0x2d5c   :  { %v5560_v53 = vrot.slane %v5546_v22, %v8045_v50  ;;  %3575 = vst.msk [vmem:[#allocation3 + $0x9] sm:$0x1] %vm521_vm7, %v3571_v28  ;;  %v5529_v40 = vrot.slane %v5521_v48, %v7674_v25  ;;  %v5564_v36 = vrot.slane %v5553_v26, %v7674_v25 }
0x2d5d   :  { %v3610_v39 = vpop.permute.xlu1 %3609 }
0x2d5e   :  { %3614 = vst.msk [vmem:[#allocation3 + $0xe] sm:$0x1] %vm561_vm8, %v3610_v39  ;;  %5532 = vrot.lane.b32.xlu0 %v5529_v40, %s7415_s25  ;;  %v5568_v18 = vrot.slane %v5560_v53, %v7674_v25 }
0x2d5f   :  { %v3899_v38 = vpop.permute.xlu0 %3898 }
0x2d60   :  { %5571 = vrot.lane.b32.xlu1 %v5568_v18, %s7414_s4  ;;  %3903 = vst.msk [vmem:[#allocation3 + $0xa] sm:$0x1] %vm521_vm7, %v3899_v38 }
0x2d61   :  { %v3938_v23 = vpop.permute.xlu1 %3937 }
0x2d62   :  { %3942 = vst.msk [vmem:[#allocation3 + $0xd] sm:$0x1] %vm561_vm8, %v3938_v23  ;;  %5530 = vrot.lane.b32.xlu0 %v5525_v32, %s7415_s25 }
0x2d63   :  { %v4227_v50 = vpop.permute.xlu0 %4226 }
0x2d64   :  { %5569 = vrot.lane.b32.xlu1 %v5564_v36, %s7414_s4  ;;  %4231 = vst.msk [vmem:[#allocation3 + $0xb] sm:$0x1] %vm521_vm7, %v4227_v50 }
0x2d65   :  { %v4266_v62 = vpop.permute.xlu1 %4265 }
0x2d66   :  { %4270 = vst.msk [vmem:[#allocation3 + $0xc] sm:$0x1] %vm561_vm8, %v4266_v62 }
0x2d67   :  { %v4555_v46 = vpop.permute.xlu0 %4554 }
0x2d68   :  { %4559 = vst.msk [vmem:[#allocation3 + $0xc] sm:$0x1] %vm521_vm7, %v4555_v46 }
0x2d69   :  { %v4594_v10 = vpop.permute.xlu1 %4593 }
0x2d6a   :  { %4598 = vst.msk [vmem:[#allocation3 + $0xb] sm:$0x1] %vm561_vm8, %v4594_v10 }
0x2d6b   :  { %v4883_v52 = vpop.permute.xlu0 %4882 }
0x2d6c   :  { %4887 = vst.msk [vmem:[#allocation3 + $0xd] sm:$0x1] %vm521_vm7, %v4883_v52 }
0x2d6d   :  { %v4922_v25 = vpop.permute.xlu1 %4921 }
0x2d6e   :  { %4926 = vst.msk [vmem:[#allocation3 + $0xa] sm:$0x1] %vm561_vm8, %v4922_v25 }
0x2d6f   :  { %v5208_v54 = vpop.permute.xlu0 %5207 }
0x2d70   :  { %5212 = vst.msk [vmem:[#allocation3 + $0xe] sm:$0x1] %vm521_vm7, %v5208_v54 }
0x2d71   :  { %v5247_v14 = vpop.permute.xlu1 %5246 }
0x2d72   :  { %5251 = vst.msk [vmem:[#allocation3 + $0x9] sm:$0x1] %vm561_vm8, %v5247_v14 }
0x2d73   :  { %v3244_v12 = vpop.permute.xlu0 %3243 }
0x2d74   :  { %3249 = vst.msk [vmem:[#allocation3] sm:$0x1] %vm521_vm7, %v3244_v12 }
0x2d75   :  { %v3283_v30 = vpop.permute.xlu1 %3282 }
0x2d76   :  { %3288 = vst.msk [vmem:[#allocation3 + $0x7] sm:$0x1] %vm561_vm8, %v3283_v30 }
0x2d77   :  { %v3569_v6 = vpop.permute.xlu0 %3568 }
0x2d78   :  { %3574 = vst.msk [vmem:[#allocation3 + $0x1] sm:$0x1] %vm521_vm7, %v3569_v6 }
0x2d79   :  { %v3608_v9 = vpop.permute.xlu1 %3607 }
0x2d7a   :  { %3613 = vst.msk [vmem:[#allocation3 + $0x6] sm:$0x1] %vm561_vm8, %v3608_v9 }
0x2d7b   :  { %v3897_v37 = vpop.permute.xlu0 %3896 }
0x2d7c   :  { %3902 = vst.msk [vmem:[#allocation3 + $0x2] sm:$0x1] %vm521_vm7, %v3897_v37 }
0x2d7d   :  { %v3936_v58 = vpop.permute.xlu1 %3935 }
0x2d7e   :  { %3941 = vst.msk [vmem:[#allocation3 + $0x5] sm:$0x1] %vm561_vm8, %v3936_v58 }
0x2d7f   :  { %v4225_v51 = vpop.permute.xlu0 %4224 }
0x2d80   :  { %4230 = vst.msk [vmem:[#allocation3 + $0x3] sm:$0x1] %vm521_vm7, %v4225_v51 }
0x2d81   :  { %v4264_v31 = vpop.permute.xlu1 %4263 }
0x2d82   :  { %4269 = vst.msk [vmem:[#allocation3 + $0x4] sm:$0x1] %vm561_vm8, %v4264_v31 }
0x2d83   :  { %v4553_v3 = vpop.permute.xlu0 %4552 }
0x2d84   :  { %4558 = vst.msk [vmem:[#allocation3 + $0x4] sm:$0x1] %vm521_vm7, %v4553_v3  ;;  %v5688_v3 = vld [vmem:[%s9067_s13] sm:$0xff] }
0x2d85   :  { %v4592_v59 = vpop.permute.xlu1 %4591 }
0x2d86   :  { %4597 = vst.msk [vmem:[#allocation3 + $0x3] sm:$0x1] %vm561_vm8, %v4592_v59  ;;  %v5689_v59 = vld [vmem:[%s9067_s13 + $0x8] sm:$0xff] }
0x2d87   :  { %v4881_v27 = vpop.permute.xlu0 %4880 }
0x2d88   :  { %4886 = vst.msk [vmem:[#allocation3 + $0x5] sm:$0x1] %vm521_vm7, %v4881_v27  ;;  %v6774_v27 = vpack.c.bf16 %v5689_v59, %v5688_v3 }
0x2d89   :  { %v4920_v45 = vpop.permute.xlu1 %4919 }
0x2d8a   :  { %4925 = vst.msk [vmem:[#allocation3 + $0x2] sm:$0x1] %vm561_vm8, %v4920_v45  ;;  %6775 = vmatpush3.bf16.msra.mxu1 %v6774_v27  ;;  %v5690_v45 = vld [vmem:[%s9067_s13 + $0x10] sm:$0xff] }
0x2d8b   :  { %v5206_v42 = vpop.permute.xlu0 %5205  ;;  %6776 = vmatprep.subr.bf16.mxu1 %v7411_v1 }
0x2d8c   :  { %5211 = vst.msk [vmem:[#allocation3 + $0x6] sm:$0x1] %vm521_vm7, %v5206_v42  ;;  %v5691_v42 = vld [vmem:[%s9067_s13 + $0x18] sm:$0xff] }
0x2d8d   :  { %v5245_v13 = vpop.permute.xlu1 %5244 }
0x2d8e   :  { %5250 = vst.msk [vmem:[#allocation3 + $0x1] sm:$0x1] %vm561_vm8, %v5245_v13  ;;  %v6777_v13 = vpack.c.bf16 %v5691_v42, %v5690_v45 }
0x2d90   :  { %6778 = vmatpush3.bf16.msra.mxu1 %v6777_v13 }
0x2d91   :  { %6779 = vmatprep.subr.bf16.mxu1 %v7411_v1 }
0x2dd0   :  { %v5533_v16 = vpop.permute.xlu0 %5532 }
0x2dd1   :  { %5537 = vst.msk [vmem:[#allocation3 + $0xf] sm:$0x1] %vm521_vm7, %v5533_v16  ;;  %v5692_v16 = vld [vmem:[%s9067_s13 + $0x20] sm:$0xff] }
0x2dd2   :  { %v5572_v61 = vpop.permute.xlu1 %5571 }
0x2dd3   :  { %5576 = vst.msk [vmem:[#allocation3 + $0x8] sm:$0x1] %vm561_vm8, %v5572_v61  ;;  %v5693_v61 = vld [vmem:[%s9067_s13 + $0x28] sm:$0xff] }
0x2dd4   :  { %v5531_v47 = vpop.permute.xlu0 %5530 }
0x2dd5   :  { %5536 = vst.msk [vmem:[#allocation3 + $0x7] sm:$0x1] %vm521_vm7, %v5531_v47  ;;  %v5694_v47 = vld [vmem:[%s9067_s13 + $0x30] sm:$0xff] }
0x2dd6   :  { %v5570_v55 = vpop.permute.xlu1 %5569 }
0x2dd7   :  { %5575 = vst.msk [vmem:[#allocation3] sm:$0x1] %vm561_vm8, %v5570_v55  ;;  %v6780_v55 = vpack.c.bf16 %v5693_v61, %v5692_v16 }
0x2dd9   :  { %6781 = vmatpush3.bf16.msra.mxu1 %v6780_v55 }
0x2dda   :  { %v8962_v35 = vld [vmem:[#allocation3 + $0x8] sm:$0xff]  ;;  %6782 = vmatprep.subr.bf16.mxu1 %v7411_v1 }
0x2ddb   :  { %v5580_v2 = vmax.f32 %v8962_v35, 0.0 }
0x2ddd   :  { %v5589_v21 = vmul.f32 %v5995_v0, %v5580_v2 }
0x2dde   :  { %v8970_v7 = vld [vmem:[#allocation3] sm:$0xff] }
0x2ddf   :  { %v5593_v11 = vsel %vm2881_vm9, %v5589_v21, 0.0  ;;  %v5579_v17 = vmax.f32 %v8970_v7, 0.0 }
0x2de0   :  { %5594 = vadd.xlane.f32.xlu0 %v5593_v11 }
0x2de1   :  { %v5588_v57 = vmul.f32 %v5995_v0, %v5579_v17  ;;  %v5695_v0 = vld [vmem:[%s9067_s13 + $0x38] sm:$0xff] }
0x2de2   :  { %v6783_v21 = vpack.c.bf16 %v5695_v0, %v5694_v47 }
0x2de3   :  { %v5590_v43 = vsel %vm2881_vm9, %v5588_v57, 0.0 }
0x2de4   :  { %5591 = vadd.xlane.f32.xlu1 %v5590_v43  ;;  %6784 = vmatpush3.bf16.msra.mxu1 %v6783_v21 }
0x2e6d   :  { %v5595_v29 = vpop.xlane.xlu0 %5594 }
0x2e6e   :  { %v5604_v44 = vadd.f32 %v5996_v34, %v5595_v29 }
0x2e70   :  { %v5613_v24 = vsel %vm5605_vm10, %v5604_v44, -inf }
0x2e71   :  { %v5614_v41 = vrot.slane %v5613_v24, 4  ;;  %v5592_v5 = vpop.xlane.xlu1 %5591 }
0x2e72   :  { %v5603_v33 = vadd.f32 %v5996_v34, %v5592_v5 }
0x2e73   :  { %v5615_v56 = vmax.f32 %v5613_v24, %v5614_v41 }
0x2e74   :  { %v5606_v60 = vsel %vm5605_vm10, %v5603_v33, -inf }
0x2e75   :  { %v5616_v20 = vrot.slane %v5615_v56, 2  ;;  %v5607_v8 = vrot.slane %v5606_v60, 4 }
0x2e77   :  { %v5617_v15 = vmax.f32 %v5615_v56, %v5616_v20  ;;  %v5608_v49 = vmax.f32 %v5606_v60, %v5607_v8  ;;  %v5997_v8 = vld [vmem:[#allocation11] ss:$0 sm:$0xff] }
0x2e79   :  { %v5618_v19 = vrot.slane %v5617_v15, 1  ;;  %v5609_v48 = vrot.slane %v5608_v49, 2 }
0x2e7b   :  { %v5619_v22 = vmax.f32 %v5617_v15, %v5618_v19  ;;  %v5610_v28 = vmax.f32 %v5608_v49, %v5609_v48 }
0x2e7d   :  { %v5621_v63 = vsub.f32 %v5604_v44, %v5619_v22  ;;  %v5611_v53 = vrot.slane %v5610_v28, 1 }
0x2e7f   :  { %v5624_v40 = vmul.f32 1.442695, %v5621_v63  ;;  %v5612_v39 = vmax.f32 %v5610_v28, %v5611_v53  ;;  %v5796_v53 = vld [vmem:[%s9071_s17] sm:$0xff] }
0x2e81   :  { %7256 = vpow2.f32 %v5624_v40  ;;  %v5620_v26 = vsub.f32 %v5603_v33, %v5612_v39  ;;  %v5797_v40 = vld [vmem:[%s9071_s17 + $0x8] sm:$0xff] }
0x2e82   :  { %v6786_v39 = vpack.c.bf16 %v5797_v40, %v5796_v53 }
0x2e83   :  { %v5622_v18 = vmul.f32 1.442695, %v5620_v26  ;;  %v5798_v26 = vld [vmem:[%s9071_s17 + $0x10] sm:$0xff] }
0x2e84   :  { %6787 = vmatpush3.bf16.msra.mxu0 %v6786_v39 }
0x2e85   :  { %7258 = vpow2.f32 %v5622_v18  ;;  %v5799_v18 = vld [vmem:[%s9071_s17 + $0x18] sm:$0xff]  ;;  %6788 = vmatprep.subr.bf16.mxu0 %v7411_v1 }
0x2e8b   :  { %v7257_v38 = vpop.eup %7256 }
0x2e8c   :  { %v5633_v32 = vsel %vm5605_vm10, %v7257_v38, 0.0 }
0x2e8d   :  { %v5634_v23 = vrot.slane %v5633_v32, 4 }
0x2e8f   :  { %v7259_v36 = vpop.eup %7258  ;;  %v5635_v50 = vadd.f32 %v5634_v23, %v5633_v32  ;;  %v5999_v32 = vld [vmem:[%s9068_s14] ss:$0 sm:$0xff]  ;;  %s7418_s14 = smov [#allocation14]  }
0x2e90   :  { %v5626_v62 = vsel %vm5605_vm10, %v7259_v36, 0.0  ;;  %s5888_s8 = sshll.u32 %s7418_s14, 4  ;;  %s5889_s8 = int_to_ptr.vmem [resolvable:$true] %s5888_s8 }
0x2e91   :  { %v5636_v46 = vrot.slane %v5635_v50, 2  ;;  %v5627_v10 = vrot.slane %v5626_v62, 4  ;;  %p7379_p13 = scmp.lt.s32.totalorder %s5889_s8, %s5889_s8 }
0x2e93   :  { %v5637_v52 = vadd.f32 %v5636_v46, %v5635_v50  ;;  %v5628_v25 = vadd.f32 %v5627_v10, %v5626_v62  ;;  %v6001_v62 = vld [vmem:[%s9069_s15] ss:$0 sm:$0xff]  ;;  %s7374_s15 = scalar_lea.vmem %s5889_s8, 32 }
0x2e94   :  { %v6002_v10 = vld [vmem:[%s9070_s16] ss:$0 sm:$0xff]  ;;  %p7375_p12 = scmp.ne.s32.totalorder %s5889_s8, %s7374_s15  ;;  %p7380_p0 = scmp.lt.s32.totalorder %s7374_s15, %s7374_s15 }
0x2e95   :  { %v5638_v54 = vrot.slane %v5637_v52, 1  ;;  %v5629_v14 = vrot.slane %v5628_v25, 2 }
0x2e96   :  { %p7381_p1 = por %p7380_p0, %p7379_p13 }
0x2e97   :  { %v5639_v12 = vadd.f32 %v5638_v54, %v5637_v52  ;;  %v5630_v30 = vadd.f32 %v5629_v14, %v5628_v25  ;;  %v6003_v25 = vld [vmem:[%s9072_s18] ss:$0 sm:$0xff] }
0x2e98   :  { %p7382_p2 = pnand %p7381_p1, %p7375_p12 }
0x2e99   :  { %7260 = vrcp.f32 %v5639_v12  ;;  %v5631_v6 = vrot.slane %v5630_v30, 1 }
0x2e9b   :  { %v5632_v9 = vadd.f32 %v5631_v6, %v5630_v30 }
0x2e9d   :  { %7262 = vrcp.f32 %v5632_v9 }
0x2ea3   :  { %v7261_v37 = vpop.eup %7260 }
0x2ea4   :  { %v5643_v58 = vmul.f32 %v7261_v37, %v7257_v38  ;;  %v6789_v38 = vpack.c.bf16 %v5799_v18, %v5798_v26 }
0x2ea6   :  { %5651 = vperm.xlu0 %6806, %v5643_v58   ;;  %6790 = vmatpush3.bf16.msra.mxu0 %v6789_v38 }
0x2ea7   :  { %v7263_v51 = vpop.eup %7262 }
0x2ea8   :  { %v5641_v31 = vmul.f32 %v7263_v51, %v7259_v36 }
0x2eaa   :  { %5646 = vperm.xlu1 %6807, %v5641_v31  }
0x2f25   :  { %v5652_v11 = vpop.permute.xlu0 %5651 }
0x2f26   :  { %v5655_v57 = vmul.f32 %v5652_v11, %v5580_v2  ;;  %v5998_v2 = vld [vmem:[#allocation13] ss:$0 sm:$0xff] }
0x2f28   :  { %v5663_v43 = vsel %vm2881_vm9, %v5655_v57, 0.0 }
0x2f29   :  { %v5664_v4 = vrot.slane %v5663_v43, 4  ;;  %v5647_v34 = vpop.permute.xlu1 %5646 }
0x2f2a   :  { %v5654_v29 = vmul.f32 %v5647_v34, %v5579_v17 }
0x2f2b   :  { %v5665_v44 = vadd.f32 %v5664_v4, %v5663_v43 }
0x2f2c   :  { %v5656_v24 = vsel %vm2881_vm9, %v5654_v29, 0.0 }
0x2f2d   :  { %v5666_v41 = vrot.slane %v5665_v44, 2  ;;  %v5657_v5 = vrot.slane %v5656_v24, 4 }
0x2f2f   :  { %v5667_v33 = vadd.f32 %v5666_v41, %v5665_v44  ;;  %v5658_v56 = vadd.f32 %v5657_v5, %v5656_v24 }
0x2f31   :  { %v5668_v60 = vrot.slane %v5667_v33, 1  ;;  %v5659_v20 = vrot.slane %v5658_v56, 2 }
0x2f33   :  { %v5669_v15 = vadd.f32 %v5668_v60, %v5667_v33  ;;  %v5660_v35 = vadd.f32 %v5659_v20, %v5658_v56 }
0x2f35   :  { %v5678_v49 = vmul.f32 %v5997_v8, %v5669_v15  ;;  %v5661_v19 = vrot.slane %v5660_v35, 1 }
0x2f37   :  { %v5662_v48 = vadd.f32 %v5661_v19, %v5660_v35  ;;  %v5687_v22 = vadd.f32 %v5998_v2, %v5678_v49 }
0x2f39   :  { %v5677_v28 = vmul.f32 %v5997_v8, %v5662_v48  ;;  %v5705_v17 = vrot.slane %v5687_v22, 7 }
0x2f3b   :  { %v5686_v7 = vadd.f32 %v5998_v2, %v5677_v28 }
0x2f3d   :  { %v5706_v63 = vsel %vm337_vm4, %v5705_v17, %v5686_v7 }
0x2f3e   :  { %6548 = vmatmul.mubr.msk.f32.vlgmr.msra.gmra.mrb[34].mxu1 %vm2881_vm9, %v5706_v63 }
0x3011   :  { %v5775_v23 = vpop.f32.mrb[34].mxu1 }
0x3012   :  { %v5776_v36 = vadd.f32 %v5999_v32, %v5775_v23  ;;  %v6549_v50 = vpop.f32.mrb[35].mxu1 }
0x3014   :  { %v5779_v46 = vmax.f32 %v5776_v36, 0.0 }
0x3016   :  { %v5787_v52 = vmul.f32 %v6001_v62, %v5779_v46 }
0x3018   :  { %v5795_v1 = vadd.f32 %v6002_v10, %v5787_v52 }
0x301a   :  { %6559 = vmatmul.mubr.msk.f32.vlgmr.msra.gmra.mrb[38].mxu0 %vm240_vm6, %v5795_v1 }
0x30ed   :  { %v5876_v54 = vpop.f32.mrb[38].mxu0 }
0x30ee   :  { %v5877_v14 = vadd.f32 %v6003_v25, %v5876_v54  ;;  %v6560_v12 = vpop.f32.mrb[39].mxu0 }
0x30f0   :  { %5881 = vst.msk [vmem:[#allocation14] sm:$0x3] %vm5880_vm11, %v5877_v14 }
0x30f1   :  { %7385 = shalt.err (!%p7382_p2)
}
0x30f2   :  { %s7386_s29 = scalar_lea.hbm %s9073_s19, 32 }
0x30f3   :  { %p7387_p3 = scmp.ne.s32.totalorder %s9073_s19, %s7386_s29  ;;  %p7390_p4 = scmp.lt.u32.totalorder %s7386_s29, %s9073_s19 }
0x30f5   :  { %p7392_p5 = pnand %p7390_p4, %p7387_p3 }
0x30f7   :  { %7395 = shalt.err (!%p7392_p5)
}
0x30f8   :  { %5891 = dma.vmem_to_hbm [thread:$0]  %s5889_s8, 32, %s9073_s19, [#allocation7]  }
0x30f9   :  { %7402 = dma.done.wait [#allocation7], 32  }
0x30fa   :  { %7403 = vsyncadd [#allocation7], 4294967264 }
0x30fb   :  { %5895 = vsyncpa [#allocation6], 1 }
0x30fc   :  { %5896 = vsyncpa [#allocation9], 1 }
0x30fd   :  { %5897 = vsyncpa [#allocation12], 1 }
0x30fe   :  { %5898 = vsyncpa [#allocation7], 1 }

</bundles_post_ra>
